<compile_context>
chip_gen: v6e
topology: v6e:2x2x1
jax: 0.10.0
libtpu: 0.0.40
codegen_flags: <defaults>
</compile_context>

<pallas_src>
import jax
import jax.numpy as jnp
from jax import lax
from jax.experimental import pallas as pl
from jax.experimental.pallas import tpu as pltpu


# ---------------------------------------------------------------------------
# Fused Pallas kernel: 2-layer bidirectional LSTM + linear + tanh
# ---------------------------------------------------------------------------
def _lstmnet_kernel(
    x_ref,                                       # (B*T, Din)  batch-major rows
    wih0f_ref, whh0f_ref, b0f_ref,               # layer 0, forward
    wih0b_ref, whh0b_ref, b0b_ref,               # layer 0, backward
    wih1ff_ref, wih1fb_ref, whh1f_ref, b1f_ref,  # layer 1, forward  (W_ih split)
    wih1bf_ref, wih1bb_ref, b1b_ref,             # layer 1, backward (single step)
    wlinf_ref, wlinb_ref, blin_ref,              # head (W split fwd/bwd halves)
    out_ref,                                     # (B, C)
    y0f_sc, y0b_sc,                              # (B, T, H)  layer-0 outputs
):
    B, T, H = y0f_sc.shape
    H = whh0f_ref.shape[0]

    def project(flat_sources, b_ref):
        """ONE batched (B*T, d) @ (d, 4H) matmul per source, summed + bias.

        All timesteps at once: these matmuls sit OFF the serial recurrence
        critical path and fill the MXU rows with B*T instead of B."""
        acc = b_ref[...]                          # (1, 4H), broadcast on add
        for src, w_ref in flat_sources:
            acc = acc + jnp.dot(src, w_ref[...],
                                preferred_element_type=jnp.float32)
        return acc.reshape(B, T, 4 * H)           # tile-aligned split (T % 8 == 0)

    def run_recurrence(gx, whh_ref, reverse, y_store):
        """Sequential LSTM scan over T with register-carried (h, c).

        Statically unrolled (T is small); backward direction via index math,
        no data reversal.  Only the y0 store (not read back until after the
        loop) touches VMEM per step."""
        w_hh = whh_ref[...]                       # hoisted, VMEM-resident
        h = jnp.zeros((B, H), jnp.float32)
        c = jnp.zeros((B, H), jnp.float32)
        ts = range(T - 1, -1, -1) if reverse else range(T)
        for t in ts:                              # static indices only
            gates = gx[:, t, :] + jnp.dot(h, w_hh,
                                          preferred_element_type=jnp.float32)
            # i and f are contiguous in [i, f, g, o] -> one sigmoid call.
            s_if = jax.nn.sigmoid(gates[:, :2 * H])
            i_g = s_if[:, :H]
            f_g = s_if[:, H:]
            g_g = jnp.tanh(gates[:, 2 * H:3 * H])
            o_g = jax.nn.sigmoid(gates[:, 3 * H:])
            c = f_g * c + i_g * g_g
            h = o_g * jnp.tanh(c)
            if y_store is not None:
                y_store[:, t, :] = h
        return h

    x_flat = x_ref[...]                           # (B*T, Din)

    # ---- layer 0, forward direction ---------------------------------------
    gx0f = project([(x_flat, wih0f_ref)], b0f_ref)
    run_recurrence(gx0f, whh0f_ref, reverse=False, y_store=y0f_sc)

    # ---- layer 0, backward direction (in-kernel index reversal) -----------
    gx0b = project([(x_flat, wih0b_ref)], b0b_ref)
    run_recurrence(gx0b, whh0b_ref, reverse=True, y_store=y0b_sc)

    # ---- layer 1, forward direction ----------------------------------------
    # Input is concat(y0_fwd, y0_bwd); the concat is folded into two matmuls.
    y0f = y0f_sc[...]                             # (B, T, H)
    y0b = y0b_sc[...]
    y0f_flat = y0f.reshape(B * T, H)              # tile-aligned collapse
    y0b_flat = y0b.reshape(B * T, H)
    gx1f = project([(y0f_flat, wih1ff_ref), (y0b_flat, wih1fb_ref)], b1f_ref)
    h1f_last = run_recurrence(gx1f, whh1f_ref, reverse=False, y_store=None)

    # ---- layer 1, backward direction ---------------------------------------
    # The head only consumes out[:, -1, :].  For the backward direction that is
    # its FIRST step (t = T-1) from zero initial state, so the W_hh term is
    # zero (h0 == 0) and the forget-gate term vanishes (f * c0 == 0).  This
    # shortcut is exact ONLY under those two conditions; if the head ever
    # changes (e.g. pooling over time), run the full backward scan instead.
    gb = (jnp.dot(y0f[:, T - 1, :], wih1bf_ref[...],
                  preferred_element_type=jnp.float32)
          + jnp.dot(y0b[:, T - 1, :], wih1bb_ref[...],
                    preferred_element_type=jnp.float32)
          + b1b_ref[...])
    i_b = jax.nn.sigmoid(gb[:, :H])
    g_b = jnp.tanh(gb[:, 2 * H:3 * H])
    o_b = jax.nn.sigmoid(gb[:, 3 * H:])
    h1b_last = o_b * jnp.tanh(i_b * g_b)

    # ---- head: tanh(concat(h_fwd, h_bwd) @ W + b), concat folded into dots --
    out_ref[...] = jnp.tanh(
        jnp.dot(h1f_last, wlinf_ref[...], preferred_element_type=jnp.float32)
        + jnp.dot(h1b_last, wlinb_ref[...], preferred_element_type=jnp.float32)
        + blin_ref[...]
    ).astype(out_ref.dtype)


# ---------------------------------------------------------------------------
# Wrapper
# ---------------------------------------------------------------------------
def _full_spec(shape):
    n = len(shape)
    return pl.BlockSpec(shape, lambda i, n=n: (0,) * n)


def lstmnet_forward(x, params):
    """Forward pass matching PyTorch LSTMnet.forward. x: (B, T, in_dim)."""
    B, T, Din = x.shape
    p0f, p0b = params["lstm"][0]["fwd"], params["lstm"][0]["bwd"]
    p1f, p1b = params["lstm"][1]["fwd"], params["lstm"][1]["bwd"]
    lin = params["linear"]
    H = p0f["w_hh"].shape[0]
    C = lin["w"].shape[1]

    # Row-major (B,T,Din) -> (B*T,Din) flatten is metadata-only in XLA — unlike
    # the old wrapper transpose, no extra HBM pass on x.
    x_flat = x.astype(jnp.float32).reshape(B * T, Din)

    args = (
        x_flat,
        p0f["w_ih"], p0f["w_hh"], p0f["b"].reshape(1, 4 * H),
        p0b["w_ih"], p0b["w_hh"], p0b["b"].reshape(1, 4 * H),
        p1f["w_ih"][:H, :], p1f["w_ih"][H:, :], p1f["w_hh"],
        p1f["b"].reshape(1, 4 * H),
        p1b["w_ih"][:H, :], p1b["w_ih"][H:, :],
        p1b["b"].reshape(1, 4 * H),
        lin["w"][:H, :], lin["w"][H:, :], lin["b"].reshape(1, C),
    )

    return pl.pallas_call(
        _lstmnet_kernel,
        out_shape=jax.ShapeDtypeStruct((B, C), jnp.float32),
        grid=(1,),
        in_specs=[_full_spec(a.shape) for a in args],
        out_specs=_full_spec((B, C)),
        scratch_shapes=[
            pltpu.VMEM((B, T, H), jnp.float32),    # y0f_sc
            pltpu.VMEM((B, T, H), jnp.float32),    # y0b_sc
        ],
        compiler_params=pltpu.CompilerParams(
            dimension_semantics=("arbitrary",),
            # Explicit scoped-VMEM budget: above v5e's 16 MiB default, below
            # every generation's physical VMEM (v7x: 64 MiB).
            vmem_limit_bytes=32 * 1024 * 1024,
        ),
    )(*args)


# ---------------------------------------------------------------------------
# Pure-JAX reference (for correctness check)
# ---------------------------------------------------------------------------
def _ref_lstm_dir(x_tbd, w_ih, w_hh, b):
    B = x_tbd.shape[1]
    H = w_hh.shape[0]

    def step(carry, x_t):
        h, c = carry
        gates = x_t @ w_ih + h @ w_hh + b
        i, f, g, o = jnp.split(gates, 4, axis=-1)
        i, f, o = jax.nn.sigmoid(i), jax.nn.sigmoid(f), jax.nn.sigmoid(o)
        g = jnp.tanh(g)
        c = f * c + i * g
        h = o * jnp.tanh(c)
        return (h, c), h

    init = (jnp.zeros((B, H), jnp.float32), jnp.zeros((B, H), jnp.float32))
    _, ys = lax.scan(step, init, x_tbd)
    return ys


def lstmnet_reference(x, params):
    h = x.astype(jnp.float32)
    for layer_params in params["lstm"]:
        x_tbd = jnp.transpose(h, (1, 0, 2))
        pf, pb = layer_params["fwd"], layer_params["bwd"]
        y_f = _ref_lstm_dir(x_tbd, pf["w_ih"], pf["w_hh"], pf["b"])
        y_b = _ref_lstm_dir(x_tbd[::-1], pb["w_ih"], pb["w_hh"], pb["b"])[::-1]
        h = jnp.transpose(jnp.concatenate([y_f, y_b], axis=-1), (1, 0, 2))
    last = h[:, -1, :]
    return jnp.tanh(last @ params["linear"]["w"]
                    + params["linear"]["b"][None, :])


# ---------------------------------------------------------------------------
# Deterministic parameter init
# ---------------------------------------------------------------------------
def init_params(key, in_dim, hidden_dim, n_layer, n_class):
    H = hidden_dim // 2
    params = {"lstm": []}
    scale = 1.0 / jnp.sqrt(jnp.float32(H))
    for layer in range(n_layer):
        d_in = in_dim if layer == 0 else hidden_dim
        layer_p = {}
        for direction in ("fwd", "bwd"):
            key, k1, k2, k3 = jax.random.split(key, 4)
            layer_p[direction] = {
                "w_ih": jax.random.uniform(k1, (d_in, 4 * H), jnp.float32,
                                           -scale, scale),
                "w_hh": jax.random.uniform(k2, (H, 4 * H), jnp.float32,
                                           -scale, scale),
                "b": jax.random.uniform(k3, (4 * H,), jnp.float32,
                                        -scale, scale),
            }
        params["lstm"].append(layer_p)
    key, k1, k2 = jax.random.split(key, 3)
    lscale = 1.0 / jnp.sqrt(jnp.float32(hidden_dim))
    params["linear"] = {
        "w": jax.random.uniform(k1, (hidden_dim, n_class), jnp.float32,
                                -lscale, lscale),
        "b": jax.random.uniform(k2, (n_class,), jnp.float32, -lscale, lscale),
    }
    return params


# ---------------------------------------------------------------------------
if __name__ == "__main__":
    # Small, forward-consistent shapes: x is (batch, seq, in_dim).
    B, T, IN_DIM = 2, 8, 16
    HIDDEN_DIM, N_LAYER, N_CLASS = 32, 2, 1

    key = jax.random.PRNGKey(0)
    key, kx = jax.random.split(key)
    x = jax.random.normal(kx, (B, T, IN_DIM), dtype=jnp.float32)

    params = init_params(key, IN_DIM, HIDDEN_DIM, N_LAYER, N_CLASS)

    fwd = jax.jit(lstmnet_forward)
    out = jax.block_until_ready(fwd(x, params))
    ref = jax.block_until_ready(lstmnet_reference(x, params))

    assert out.shape == (B, N_CLASS), out.shape
    assert jnp.allclose(out, ref, atol=2e-4, rtol=1e-4), (out, ref)

    print("KERNEL_OK")
</pallas_src>

<mosaic_0001>
module attributes {stable_mosaic.version = 11 : i64} {
  func.func @_lstmnet_kernel(%arg0: i32, %arg1: memref<16x16xf32, #tpu.memory_space<vmem>>, %arg2: memref<16x64xf32, #tpu.memory_space<vmem>>, %arg3: memref<16x64xf32, #tpu.memory_space<vmem>>, %arg4: memref<1x64xf32, #tpu.memory_space<vmem>>, %arg5: memref<16x64xf32, #tpu.memory_space<vmem>>, %arg6: memref<16x64xf32, #tpu.memory_space<vmem>>, %arg7: memref<1x64xf32, #tpu.memory_space<vmem>>, %arg8: memref<16x64xf32, #tpu.memory_space<vmem>>, %arg9: memref<16x64xf32, #tpu.memory_space<vmem>>, %arg10: memref<16x64xf32, #tpu.memory_space<vmem>>, %arg11: memref<1x64xf32, #tpu.memory_space<vmem>>, %arg12: memref<16x64xf32, #tpu.memory_space<vmem>>, %arg13: memref<16x64xf32, #tpu.memory_space<vmem>>, %arg14: memref<1x64xf32, #tpu.memory_space<vmem>>, %arg15: memref<16x1xf32, #tpu.memory_space<vmem>>, %arg16: memref<16x1xf32, #tpu.memory_space<vmem>>, %arg17: memref<1x1xf32, #tpu.memory_space<vmem>>, %arg18: memref<2x1xf32, #tpu.memory_space<vmem>>, %arg19: memref<2x8x16xf32, #tpu.memory_space<vmem>>, %arg20: memref<2x8x16xf32, #tpu.memory_space<vmem>>) attributes {dimension_semantics = [#tpu.dimension_semantics<arbitrary>], iteration_bounds = array<i64: 1>, scalar_prefetch = 0 : i64, scratch_operands = 2 : i64, tpu.core_type = #tpu.core_type<tc>, window_params = [{pipeline_mode = #tpu.pipeline_mode<synchronous>, transform_indices = @transform_0, window_bounds = array<i64: 16, 16>}, {pipeline_mode = #tpu.pipeline_mode<synchronous>, transform_indices = @transform_1, window_bounds = array<i64: 16, 64>}, {pipeline_mode = #tpu.pipeline_mode<synchronous>, transform_indices = @transform_2, window_bounds = array<i64: 16, 64>}, {pipeline_mode = #tpu.pipeline_mode<synchronous>, transform_indices = @transform_3, window_bounds = array<i64: 1, 64>}, {pipeline_mode = #tpu.pipeline_mode<synchronous>, transform_indices = @transform_4, window_bounds = array<i64: 16, 64>}, {pipeline_mode = #tpu.pipeline_mode<synchronous>, transform_indices = @transform_5, window_bounds = array<i64: 16, 64>}, {pipeline_mode = #tpu.pipeline_mode<synchronous>, transform_indices = @transform_6, window_bounds = array<i64: 1, 64>}, {pipeline_mode = #tpu.pipeline_mode<synchronous>, transform_indices = @transform_7, window_bounds = array<i64: 16, 64>}, {pipeline_mode = #tpu.pipeline_mode<synchronous>, transform_indices = @transform_8, window_bounds = array<i64: 16, 64>}, {pipeline_mode = #tpu.pipeline_mode<synchronous>, transform_indices = @transform_9, window_bounds = array<i64: 16, 64>}, {pipeline_mode = #tpu.pipeline_mode<synchronous>, transform_indices = @transform_10, window_bounds = array<i64: 1, 64>}, {pipeline_mode = #tpu.pipeline_mode<synchronous>, transform_indices = @transform_11, window_bounds = array<i64: 16, 64>}, {pipeline_mode = #tpu.pipeline_mode<synchronous>, transform_indices = @transform_12, window_bounds = array<i64: 16, 64>}, {pipeline_mode = #tpu.pipeline_mode<synchronous>, transform_indices = @transform_13, window_bounds = array<i64: 1, 64>}, {pipeline_mode = #tpu.pipeline_mode<synchronous>, transform_indices = @transform_14, window_bounds = array<i64: 16, 1>}, {pipeline_mode = #tpu.pipeline_mode<synchronous>, transform_indices = @transform_15, window_bounds = array<i64: 16, 1>}, {pipeline_mode = #tpu.pipeline_mode<synchronous>, transform_indices = @transform_16, window_bounds = array<i64: 1, 1>}, {pipeline_mode = #tpu.pipeline_mode<synchronous>, transform_indices = @transform_17, window_bounds = array<i64: 2, 1>}]} {
    %c0 = arith.constant 0 : index
    %c0_0 = arith.constant 0 : index
    %0 = vector.load %arg1[%c0, %c0_0] : memref<16x16xf32, #tpu.memory_space<vmem>>, vector<16x16xf32>
    %c0_1 = arith.constant 0 : index
    %c0_2 = arith.constant 0 : index
    %1 = vector.load %arg4[%c0_1, %c0_2] : memref<1x64xf32, #tpu.memory_space<vmem>>, vector<1x64xf32>
    %c0_3 = arith.constant 0 : index
    %c0_4 = arith.constant 0 : index
    %2 = vector.load %arg2[%c0_3, %c0_4] : memref<16x64xf32, #tpu.memory_space<vmem>>, vector<16x64xf32>
    %cst = arith.constant dense<0.000000e+00> : vector<16x64xf32>
    %3 = tpu.matmul %0, %2, %cst {dimension_numbers = #tpu.dot_dimension_numbers<[1], [0], [0], [1], [0, 0, 1, 1], [], []>} : vector<16x16xf32>, vector<16x64xf32>, vector<16x64xf32> -> vector<16x64xf32>
    %4 = vector.broadcast %1 : vector<1x64xf32> to vector<16x64xf32>
    %5 = arith.addf %4, %3 : vector<16x64xf32>
    %6 = vector.shape_cast %5 : vector<16x64xf32> to vector<2x8x64xf32>
    %c0_5 = arith.constant 0 : index
    %c0_6 = arith.constant 0 : index
    %7 = vector.load %arg3[%c0_5, %c0_6] : memref<16x64xf32, #tpu.memory_space<vmem>>, vector<16x64xf32>
    %cst_7 = arith.constant 0.000000e+00 : f32
    %8 = vector.broadcast %cst_7 : f32 to vector<2x16xf32>
    %cst_8 = arith.constant 0.000000e+00 : f32
    %9 = vector.broadcast %cst_8 : f32 to vector<2x16xf32>
    %10 = vector.extract_strided_slice %6 {offsets = [0, 0, 0], sizes = [2, 1, 64], strides = [1, 1, 1]} : vector<2x8x64xf32> to vector<2x1x64xf32>
    %11 = vector.shape_cast %10 : vector<2x1x64xf32> to vector<2x64xf32>
    %cst_9 = arith.constant dense<0.000000e+00> : vector<2x64xf32>
    %12 = tpu.matmul %8, %7, %cst_9 {dimension_numbers = #tpu.dot_dimension_numbers<[1], [0], [0], [1], [0, 0, 1, 1], [], []>} : vector<2x16xf32>, vector<16x64xf32>, vector<2x64xf32> -> vector<2x64xf32>
    %13 = arith.addf %11, %12 : vector<2x64xf32>
    %14 = vector.extract_strided_slice %13 {offsets = [0, 0], sizes = [2, 32], strides = [1, 1]} : vector<2x64xf32> to vector<2x32xf32>
    %15 = arith.negf %14 : vector<2x32xf32>
    %16 = math.exp %15 : vector<2x32xf32>
    %cst_10 = arith.constant 1.000000e+00 : f32
    %17 = vector.broadcast %cst_10 : f32 to vector<2x32xf32>
    %18 = arith.addf %17, %16 : vector<2x32xf32>
    %19 = arith.divf %17, %18 : vector<2x32xf32>
    %20 = vector.extract_strided_slice %19 {offsets = [0, 0], sizes = [2, 16], strides = [1, 1]} : vector<2x32xf32> to vector<2x16xf32>
    %21 = vector.extract_strided_slice %19 {offsets = [0, 16], sizes = [2, 16], strides = [1, 1]} : vector<2x32xf32> to vector<2x16xf32>
    %22 = vector.extract_strided_slice %13 {offsets = [0, 32], sizes = [2, 16], strides = [1, 1]} : vector<2x64xf32> to vector<2x16xf32>
    %23 = math.tanh %22 : vector<2x16xf32>
    %24 = vector.extract_strided_slice %13 {offsets = [0, 48], sizes = [2, 16], strides = [1, 1]} : vector<2x64xf32> to vector<2x16xf32>
    %25 = arith.negf %24 : vector<2x16xf32>
    %26 = math.exp %25 : vector<2x16xf32>
    %cst_11 = arith.constant 1.000000e+00 : f32
    %27 = vector.broadcast %cst_11 : f32 to vector<2x16xf32>
    %28 = arith.addf %27, %26 : vector<2x16xf32>
    %29 = arith.divf %27, %28 : vector<2x16xf32>
    %30 = arith.mulf %21, %9 : vector<2x16xf32>
    %31 = arith.mulf %20, %23 : vector<2x16xf32>
    %32 = arith.addf %30, %31 : vector<2x16xf32>
    %33 = math.tanh %32 : vector<2x16xf32>
    %34 = arith.mulf %29, %33 : vector<2x16xf32>
    %c0_12 = arith.constant 0 : index
    %c0_13 = arith.constant 0 : index
    %c0_14 = arith.constant 0 : index
    %35 = vector.load %arg19[%c0_12, %c0_13, %c0_14] : memref<2x8x16xf32, #tpu.memory_space<vmem>>, vector<2x1x16xf32>
    %36 = vector.shape_cast %35 : vector<2x1x16xf32> to vector<2x16xf32>
    %37 = vector.shape_cast %34 : vector<2x16xf32> to vector<2x1x16xf32>
    tpu.vector_store %arg19[%c0_12, %c0_13, %c0_14], %37 {strides = array<i32>} : memref<2x8x16xf32, #tpu.memory_space<vmem>>, vector<2x1x16xf32>,
    %38 = vector.extract_strided_slice %6 {offsets = [0, 1, 0], sizes = [2, 1, 64], strides = [1, 1, 1]} : vector<2x8x64xf32> to vector<2x1x64xf32>
    %39 = vector.shape_cast %38 : vector<2x1x64xf32> to vector<2x64xf32>
    %cst_15 = arith.constant dense<0.000000e+00> : vector<2x64xf32>
    %40 = tpu.matmul %34, %7, %cst_15 {dimension_numbers = #tpu.dot_dimension_numbers<[1], [0], [0], [1], [0, 0, 1, 1], [], []>} : vector<2x16xf32>, vector<16x64xf32>, vector<2x64xf32> -> vector<2x64xf32>
    %41 = arith.addf %39, %40 : vector<2x64xf32>
    %42 = vector.extract_strided_slice %41 {offsets = [0, 0], sizes = [2, 32], strides = [1, 1]} : vector<2x64xf32> to vector<2x32xf32>
    %43 = arith.negf %42 : vector<2x32xf32>
    %44 = math.exp %43 : vector<2x32xf32>
    %cst_16 = arith.constant 1.000000e+00 : f32
    %45 = vector.broadcast %cst_16 : f32 to vector<2x32xf32>
    %46 = arith.addf %45, %44 : vector<2x32xf32>
    %47 = arith.divf %45, %46 : vector<2x32xf32>
    %48 = vector.extract_strided_slice %47 {offsets = [0, 0], sizes = [2, 16], strides = [1, 1]} : vector<2x32xf32> to vector<2x16xf32>
    %49 = vector.extract_strided_slice %47 {offsets = [0, 16], sizes = [2, 16], strides = [1, 1]} : vector<2x32xf32> to vector<2x16xf32>
    %50 = vector.extract_strided_slice %41 {offsets = [0, 32], sizes = [2, 16], strides = [1, 1]} : vector<2x64xf32> to vector<2x16xf32>
    %51 = math.tanh %50 : vector<2x16xf32>
    %52 = vector.extract_strided_slice %41 {offsets = [0, 48], sizes = [2, 16], strides = [1, 1]} : vector<2x64xf32> to vector<2x16xf32>
    %53 = arith.negf %52 : vector<2x16xf32>
    %54 = math.exp %53 : vector<2x16xf32>
    %cst_17 = arith.constant 1.000000e+00 : f32
    %55 = vector.broadcast %cst_17 : f32 to vector<2x16xf32>
    %56 = arith.addf %55, %54 : vector<2x16xf32>
    %57 = arith.divf %55, %56 : vector<2x16xf32>
    %58 = arith.mulf %49, %32 : vector<2x16xf32>
    %59 = arith.mulf %48, %51 : vector<2x16xf32>
    %60 = arith.addf %58, %59 : vector<2x16xf32>
    %61 = math.tanh %60 : vector<2x16xf32>
    %62 = arith.mulf %57, %61 : vector<2x16xf32>
    %c0_18 = arith.constant 0 : index
    %c1 = arith.constant 1 : index
    %c0_19 = arith.constant 0 : index
    %63 = vector.load %arg19[%c0_18, %c1, %c0_19] : memref<2x8x16xf32, #tpu.memory_space<vmem>>, vector<2x1x16xf32>
    %64 = vector.shape_cast %63 : vector<2x1x16xf32> to vector<2x16xf32>
    %65 = vector.shape_cast %62 : vector<2x16xf32> to vector<2x1x16xf32>
    tpu.vector_store %arg19[%c0_18, %c1, %c0_19], %65 {strides = array<i32>} : memref<2x8x16xf32, #tpu.memory_space<vmem>>, vector<2x1x16xf32>,
    %66 = vector.extract_strided_slice %6 {offsets = [0, 2, 0], sizes = [2, 1, 64], strides = [1, 1, 1]} : vector<2x8x64xf32> to vector<2x1x64xf32>
    %67 = vector.shape_cast %66 : vector<2x1x64xf32> to vector<2x64xf32>
    %cst_20 = arith.constant dense<0.000000e+00> : vector<2x64xf32>
    %68 = tpu.matmul %62, %7, %cst_20 {dimension_numbers = #tpu.dot_dimension_numbers<[1], [0], [0], [1], [0, 0, 1, 1], [], []>} : vector<2x16xf32>, vector<16x64xf32>, vector<2x64xf32> -> vector<2x64xf32>
    %69 = arith.addf %67, %68 : vector<2x64xf32>
    %70 = vector.extract_strided_slice %69 {offsets = [0, 0], sizes = [2, 32], strides = [1, 1]} : vector<2x64xf32> to vector<2x32xf32>
    %71 = arith.negf %70 : vector<2x32xf32>
    %72 = math.exp %71 : vector<2x32xf32>
    %cst_21 = arith.constant 1.000000e+00 : f32
    %73 = vector.broadcast %cst_21 : f32 to vector<2x32xf32>
    %74 = arith.addf %73, %72 : vector<2x32xf32>
    %75 = arith.divf %73, %74 : vector<2x32xf32>
    %76 = vector.extract_strided_slice %75 {offsets = [0, 0], sizes = [2, 16], strides = [1, 1]} : vector<2x32xf32> to vector<2x16xf32>
    %77 = vector.extract_strided_slice %75 {offsets = [0, 16], sizes = [2, 16], strides = [1, 1]} : vector<2x32xf32> to vector<2x16xf32>
    %78 = vector.extract_strided_slice %69 {offsets = [0, 32], sizes = [2, 16], strides = [1, 1]} : vector<2x64xf32> to vector<2x16xf32>
    %79 = math.tanh %78 : vector<2x16xf32>
    %80 = vector.extract_strided_slice %69 {offsets = [0, 48], sizes = [2, 16], strides = [1, 1]} : vector<2x64xf32> to vector<2x16xf32>
    %81 = arith.negf %80 : vector<2x16xf32>
    %82 = math.exp %81 : vector<2x16xf32>
    %cst_22 = arith.constant 1.000000e+00 : f32
    %83 = vector.broadcast %cst_22 : f32 to vector<2x16xf32>
    %84 = arith.addf %83, %82 : vector<2x16xf32>
    %85 = arith.divf %83, %84 : vector<2x16xf32>
    %86 = arith.mulf %77, %60 : vector<2x16xf32>
    %87 = arith.mulf %76, %79 : vector<2x16xf32>
    %88 = arith.addf %86, %87 : vector<2x16xf32>
    %89 = math.tanh %88 : vector<2x16xf32>
    %90 = arith.mulf %85, %89 : vector<2x16xf32>
    %c0_23 = arith.constant 0 : index
    %c2 = arith.constant 2 : index
    %c0_24 = arith.constant 0 : index
    %91 = vector.load %arg19[%c0_23, %c2, %c0_24] : memref<2x8x16xf32, #tpu.memory_space<vmem>>, vector<2x1x16xf32>
    %92 = vector.shape_cast %91 : vector<2x1x16xf32> to vector<2x16xf32>
    %93 = vector.shape_cast %90 : vector<2x16xf32> to vector<2x1x16xf32>
    tpu.vector_store %arg19[%c0_23, %c2, %c0_24], %93 {strides = array<i32>} : memref<2x8x16xf32, #tpu.memory_space<vmem>>, vector<2x1x16xf32>,
    %94 = vector.extract_strided_slice %6 {offsets = [0, 3, 0], sizes = [2, 1, 64], strides = [1, 1, 1]} : vector<2x8x64xf32> to vector<2x1x64xf32>
    %95 = vector.shape_cast %94 : vector<2x1x64xf32> to vector<2x64xf32>
    %cst_25 = arith.constant dense<0.000000e+00> : vector<2x64xf32>
    %96 = tpu.matmul %90, %7, %cst_25 {dimension_numbers = #tpu.dot_dimension_numbers<[1], [0], [0], [1], [0, 0, 1, 1], [], []>} : vector<2x16xf32>, vector<16x64xf32>, vector<2x64xf32> -> vector<2x64xf32>
    %97 = arith.addf %95, %96 : vector<2x64xf32>
    %98 = vector.extract_strided_slice %97 {offsets = [0, 0], sizes = [2, 32], strides = [1, 1]} : vector<2x64xf32> to vector<2x32xf32>
    %99 = arith.negf %98 : vector<2x32xf32>
    %100 = math.exp %99 : vector<2x32xf32>
    %cst_26 = arith.constant 1.000000e+00 : f32
    %101 = vector.broadcast %cst_26 : f32 to vector<2x32xf32>
    %102 = arith.addf %101, %100 : vector<2x32xf32>
    %103 = arith.divf %101, %102 : vector<2x32xf32>
    %104 = vector.extract_strided_slice %103 {offsets = [0, 0], sizes = [2, 16], strides = [1, 1]} : vector<2x32xf32> to vector<2x16xf32>
    %105 = vector.extract_strided_slice %103 {offsets = [0, 16], sizes = [2, 16], strides = [1, 1]} : vector<2x32xf32> to vector<2x16xf32>
    %106 = vector.extract_strided_slice %97 {offsets = [0, 32], sizes = [2, 16], strides = [1, 1]} : vector<2x64xf32> to vector<2x16xf32>
    %107 = math.tanh %106 : vector<2x16xf32>
    %108 = vector.extract_strided_slice %97 {offsets = [0, 48], sizes = [2, 16], strides = [1, 1]} : vector<2x64xf32> to vector<2x16xf32>
    %109 = arith.negf %108 : vector<2x16xf32>
    %110 = math.exp %109 : vector<2x16xf32>
    %cst_27 = arith.constant 1.000000e+00 : f32
    %111 = vector.broadcast %cst_27 : f32 to vector<2x16xf32>
    %112 = arith.addf %111, %110 : vector<2x16xf32>
    %113 = arith.divf %111, %112 : vector<2x16xf32>
    %114 = arith.mulf %105, %88 : vector<2x16xf32>
    %115 = arith.mulf %104, %107 : vector<2x16xf32>
    %116 = arith.addf %114, %115 : vector<2x16xf32>
    %117 = math.tanh %116 : vector<2x16xf32>
    %118 = arith.mulf %113, %117 : vector<2x16xf32>
    %c0_28 = arith.constant 0 : index
    %c3 = arith.constant 3 : index
    %c0_29 = arith.constant 0 : index
    %119 = vector.load %arg19[%c0_28, %c3, %c0_29] : memref<2x8x16xf32, #tpu.memory_space<vmem>>, vector<2x1x16xf32>
    %120 = vector.shape_cast %119 : vector<2x1x16xf32> to vector<2x16xf32>
    %121 = vector.shape_cast %118 : vector<2x16xf32> to vector<2x1x16xf32>
    tpu.vector_store %arg19[%c0_28, %c3, %c0_29], %121 {strides = array<i32>} : memref<2x8x16xf32, #tpu.memory_space<vmem>>, vector<2x1x16xf32>,
    %122 = vector.extract_strided_slice %6 {offsets = [0, 4, 0], sizes = [2, 1, 64], strides = [1, 1, 1]} : vector<2x8x64xf32> to vector<2x1x64xf32>
    %123 = vector.shape_cast %122 : vector<2x1x64xf32> to vector<2x64xf32>
    %cst_30 = arith.constant dense<0.000000e+00> : vector<2x64xf32>
    %124 = tpu.matmul %118, %7, %cst_30 {dimension_numbers = #tpu.dot_dimension_numbers<[1], [0], [0], [1], [0, 0, 1, 1], [], []>} : vector<2x16xf32>, vector<16x64xf32>, vector<2x64xf32> -> vector<2x64xf32>
    %125 = arith.addf %123, %124 : vector<2x64xf32>
    %126 = vector.extract_strided_slice %125 {offsets = [0, 0], sizes = [2, 32], strides = [1, 1]} : vector<2x64xf32> to vector<2x32xf32>
    %127 = arith.negf %126 : vector<2x32xf32>
    %128 = math.exp %127 : vector<2x32xf32>
    %cst_31 = arith.constant 1.000000e+00 : f32
    %129 = vector.broadcast %cst_31 : f32 to vector<2x32xf32>
    %130 = arith.addf %129, %128 : vector<2x32xf32>
    %131 = arith.divf %129, %130 : vector<2x32xf32>
    %132 = vector.extract_strided_slice %131 {offsets = [0, 0], sizes = [2, 16], strides = [1, 1]} : vector<2x32xf32> to vector<2x16xf32>
    %133 = vector.extract_strided_slice %131 {offsets = [0, 16], sizes = [2, 16], strides = [1, 1]} : vector<2x32xf32> to vector<2x16xf32>
    %134 = vector.extract_strided_slice %125 {offsets = [0, 32], sizes = [2, 16], strides = [1, 1]} : vector<2x64xf32> to vector<2x16xf32>
    %135 = math.tanh %134 : vector<2x16xf32>
    %136 = vector.extract_strided_slice %125 {offsets = [0, 48], sizes = [2, 16], strides = [1, 1]} : vector<2x64xf32> to vector<2x16xf32>
    %137 = arith.negf %136 : vector<2x16xf32>
    %138 = math.exp %137 : vector<2x16xf32>
    %cst_32 = arith.constant 1.000000e+00 : f32
    %139 = vector.broadcast %cst_32 : f32 to vector<2x16xf32>
    %140 = arith.addf %139, %138 : vector<2x16xf32>
    %141 = arith.divf %139, %140 : vector<2x16xf32>
    %142 = arith.mulf %133, %116 : vector<2x16xf32>
    %143 = arith.mulf %132, %135 : vector<2x16xf32>
    %144 = arith.addf %142, %143 : vector<2x16xf32>
    %145 = math.tanh %144 : vector<2x16xf32>
    %146 = arith.mulf %141, %145 : vector<2x16xf32>
    %c0_33 = arith.constant 0 : index
    %c4 = arith.constant 4 : index
    %c0_34 = arith.constant 0 : index
    %147 = vector.load %arg19[%c0_33, %c4, %c0_34] : memref<2x8x16xf32, #tpu.memory_space<vmem>>, vector<2x1x16xf32>
    %148 = vector.shape_cast %147 : vector<2x1x16xf32> to vector<2x16xf32>
    %149 = vector.shape_cast %146 : vector<2x16xf32> to vector<2x1x16xf32>
    tpu.vector_store %arg19[%c0_33, %c4, %c0_34], %149 {strides = array<i32>} : memref<2x8x16xf32, #tpu.memory_space<vmem>>, vector<2x1x16xf32>,
    %150 = vector.extract_strided_slice %6 {offsets = [0, 5, 0], sizes = [2, 1, 64], strides = [1, 1, 1]} : vector<2x8x64xf32> to vector<2x1x64xf32>
    %151 = vector.shape_cast %150 : vector<2x1x64xf32> to vector<2x64xf32>
    %cst_35 = arith.constant dense<0.000000e+00> : vector<2x64xf32>
    %152 = tpu.matmul %146, %7, %cst_35 {dimension_numbers = #tpu.dot_dimension_numbers<[1], [0], [0], [1], [0, 0, 1, 1], [], []>} : vector<2x16xf32>, vector<16x64xf32>, vector<2x64xf32> -> vector<2x64xf32>
    %153 = arith.addf %151, %152 : vector<2x64xf32>
    %154 = vector.extract_strided_slice %153 {offsets = [0, 0], sizes = [2, 32], strides = [1, 1]} : vector<2x64xf32> to vector<2x32xf32>
    %155 = arith.negf %154 : vector<2x32xf32>
    %156 = math.exp %155 : vector<2x32xf32>
    %cst_36 = arith.constant 1.000000e+00 : f32
    %157 = vector.broadcast %cst_36 : f32 to vector<2x32xf32>
    %158 = arith.addf %157, %156 : vector<2x32xf32>
    %159 = arith.divf %157, %158 : vector<2x32xf32>
    %160 = vector.extract_strided_slice %159 {offsets = [0, 0], sizes = [2, 16], strides = [1, 1]} : vector<2x32xf32> to vector<2x16xf32>
    %161 = vector.extract_strided_slice %159 {offsets = [0, 16], sizes = [2, 16], strides = [1, 1]} : vector<2x32xf32> to vector<2x16xf32>
    %162 = vector.extract_strided_slice %153 {offsets = [0, 32], sizes = [2, 16], strides = [1, 1]} : vector<2x64xf32> to vector<2x16xf32>
    %163 = math.tanh %162 : vector<2x16xf32>
    %164 = vector.extract_strided_slice %153 {offsets = [0, 48], sizes = [2, 16], strides = [1, 1]} : vector<2x64xf32> to vector<2x16xf32>
    %165 = arith.negf %164 : vector<2x16xf32>
    %166 = math.exp %165 : vector<2x16xf32>
    %cst_37 = arith.constant 1.000000e+00 : f32
    %167 = vector.broadcast %cst_37 : f32 to vector<2x16xf32>
    %168 = arith.addf %167, %166 : vector<2x16xf32>
    %169 = arith.divf %167, %168 : vector<2x16xf32>
    %170 = arith.mulf %161, %144 : vector<2x16xf32>
    %171 = arith.mulf %160, %163 : vector<2x16xf32>
    %172 = arith.addf %170, %171 : vector<2x16xf32>
    %173 = math.tanh %172 : vector<2x16xf32>
    %174 = arith.mulf %169, %173 : vector<2x16xf32>
    %c0_38 = arith.constant 0 : index
    %c5 = arith.constant 5 : index
    %c0_39 = arith.constant 0 : index
    %175 = vector.load %arg19[%c0_38, %c5, %c0_39] : memref<2x8x16xf32, #tpu.memory_space<vmem>>, vector<2x1x16xf32>
    %176 = vector.shape_cast %175 : vector<2x1x16xf32> to vector<2x16xf32>
    %177 = vector.shape_cast %174 : vector<2x16xf32> to vector<2x1x16xf32>
    tpu.vector_store %arg19[%c0_38, %c5, %c0_39], %177 {strides = array<i32>} : memref<2x8x16xf32, #tpu.memory_space<vmem>>, vector<2x1x16xf32>,
    %178 = vector.extract_strided_slice %6 {offsets = [0, 6, 0], sizes = [2, 1, 64], strides = [1, 1, 1]} : vector<2x8x64xf32> to vector<2x1x64xf32>
    %179 = vector.shape_cast %178 : vector<2x1x64xf32> to vector<2x64xf32>
    %cst_40 = arith.constant dense<0.000000e+00> : vector<2x64xf32>
    %180 = tpu.matmul %174, %7, %cst_40 {dimension_numbers = #tpu.dot_dimension_numbers<[1], [0], [0], [1], [0, 0, 1, 1], [], []>} : vector<2x16xf32>, vector<16x64xf32>, vector<2x64xf32> -> vector<2x64xf32>
    %181 = arith.addf %179, %180 : vector<2x64xf32>
    %182 = vector.extract_strided_slice %181 {offsets = [0, 0], sizes = [2, 32], strides = [1, 1]} : vector<2x64xf32> to vector<2x32xf32>
    %183 = arith.negf %182 : vector<2x32xf32>
    %184 = math.exp %183 : vector<2x32xf32>
    %cst_41 = arith.constant 1.000000e+00 : f32
    %185 = vector.broadcast %cst_41 : f32 to vector<2x32xf32>
    %186 = arith.addf %185, %184 : vector<2x32xf32>
    %187 = arith.divf %185, %186 : vector<2x32xf32>
    %188 = vector.extract_strided_slice %187 {offsets = [0, 0], sizes = [2, 16], strides = [1, 1]} : vector<2x32xf32> to vector<2x16xf32>
    %189 = vector.extract_strided_slice %187 {offsets = [0, 16], sizes = [2, 16], strides = [1, 1]} : vector<2x32xf32> to vector<2x16xf32>
    %190 = vector.extract_strided_slice %181 {offsets = [0, 32], sizes = [2, 16], strides = [1, 1]} : vector<2x64xf32> to vector<2x16xf32>
    %191 = math.tanh %190 : vector<2x16xf32>
    %192 = vector.extract_strided_slice %181 {offsets = [0, 48], sizes = [2, 16], strides = [1, 1]} : vector<2x64xf32> to vector<2x16xf32>
    %193 = arith.negf %192 : vector<2x16xf32>
    %194 = math.exp %193 : vector<2x16xf32>
    %cst_42 = arith.constant 1.000000e+00 : f32
    %195 = vector.broadcast %cst_42 : f32 to vector<2x16xf32>
    %196 = arith.addf %195, %194 : vector<2x16xf32>
    %197 = arith.divf %195, %196 : vector<2x16xf32>
    %198 = arith.mulf %189, %172 : vector<2x16xf32>
    %199 = arith.mulf %188, %191 : vector<2x16xf32>
    %200 = arith.addf %198, %199 : vector<2x16xf32>
    %201 = math.tanh %200 : vector<2x16xf32>
    %202 = arith.mulf %197, %201 : vector<2x16xf32>
    %c0_43 = arith.constant 0 : index
    %c6 = arith.constant 6 : index
    %c0_44 = arith.constant 0 : index
    %203 = vector.load %arg19[%c0_43, %c6, %c0_44] : memref<2x8x16xf32, #tpu.memory_space<vmem>>, vector<2x1x16xf32>
    %204 = vector.shape_cast %203 : vector<2x1x16xf32> to vector<2x16xf32>
    %205 = vector.shape_cast %202 : vector<2x16xf32> to vector<2x1x16xf32>
    tpu.vector_store %arg19[%c0_43, %c6, %c0_44], %205 {strides = array<i32>} : memref<2x8x16xf32, #tpu.memory_space<vmem>>, vector<2x1x16xf32>,
    %206 = vector.extract_strided_slice %6 {offsets = [0, 7, 0], sizes = [2, 1, 64], strides = [1, 1, 1]} : vector<2x8x64xf32> to vector<2x1x64xf32>
    %207 = vector.shape_cast %206 : vector<2x1x64xf32> to vector<2x64xf32>
    %cst_45 = arith.constant dense<0.000000e+00> : vector<2x64xf32>
    %208 = tpu.matmul %202, %7, %cst_45 {dimension_numbers = #tpu.dot_dimension_numbers<[1], [0], [0], [1], [0, 0, 1, 1], [], []>} : vector<2x16xf32>, vector<16x64xf32>, vector<2x64xf32> -> vector<2x64xf32>
    %209 = arith.addf %207, %208 : vector<2x64xf32>
    %210 = vector.extract_strided_slice %209 {offsets = [0, 0], sizes = [2, 32], strides = [1, 1]} : vector<2x64xf32> to vector<2x32xf32>
    %211 = arith.negf %210 : vector<2x32xf32>
    %212 = math.exp %211 : vector<2x32xf32>
    %cst_46 = arith.constant 1.000000e+00 : f32
    %213 = vector.broadcast %cst_46 : f32 to vector<2x32xf32>
    %214 = arith.addf %213, %212 : vector<2x32xf32>
    %215 = arith.divf %213, %214 : vector<2x32xf32>
    %216 = vector.extract_strided_slice %215 {offsets = [0, 0], sizes = [2, 16], strides = [1, 1]} : vector<2x32xf32> to vector<2x16xf32>
    %217 = vector.extract_strided_slice %215 {offsets = [0, 16], sizes = [2, 16], strides = [1, 1]} : vector<2x32xf32> to vector<2x16xf32>
    %218 = vector.extract_strided_slice %209 {offsets = [0, 32], sizes = [2, 16], strides = [1, 1]} : vector<2x64xf32> to vector<2x16xf32>
    %219 = math.tanh %218 : vector<2x16xf32>
    %220 = vector.extract_strided_slice %209 {offsets = [0, 48], sizes = [2, 16], strides = [1, 1]} : vector<2x64xf32> to vector<2x16xf32>
    %221 = arith.negf %220 : vector<2x16xf32>
    %222 = math.exp %221 : vector<2x16xf32>
    %cst_47 = arith.constant 1.000000e+00 : f32
    %223 = vector.broadcast %cst_47 : f32 to vector<2x16xf32>
    %224 = arith.addf %223, %222 : vector<2x16xf32>
    %225 = arith.divf %223, %224 : vector<2x16xf32>
    %226 = arith.mulf %217, %200 : vector<2x16xf32>
    %227 = arith.mulf %216, %219 : vector<2x16xf32>
    %228 = arith.addf %226, %227 : vector<2x16xf32>
    %229 = math.tanh %228 : vector<2x16xf32>
    %230 = arith.mulf %225, %229 : vector<2x16xf32>
    %c0_48 = arith.constant 0 : index
    %c7 = arith.constant 7 : index
    %c0_49 = arith.constant 0 : index
    %231 = vector.load %arg19[%c0_48, %c7, %c0_49] : memref<2x8x16xf32, #tpu.memory_space<vmem>>, vector<2x1x16xf32>
    %232 = vector.shape_cast %231 : vector<2x1x16xf32> to vector<2x16xf32>
    %233 = vector.shape_cast %230 : vector<2x16xf32> to vector<2x1x16xf32>
    tpu.vector_store %arg19[%c0_48, %c7, %c0_49], %233 {strides = array<i32>} : memref<2x8x16xf32, #tpu.memory_space<vmem>>, vector<2x1x16xf32>,
    %c0_50 = arith.constant 0 : index
    %c0_51 = arith.constant 0 : index
    %234 = vector.load %arg7[%c0_50, %c0_51] : memref<1x64xf32, #tpu.memory_space<vmem>>, vector<1x64xf32>
    %c0_52 = arith.constant 0 : index
    %c0_53 = arith.constant 0 : index
    %235 = vector.load %arg5[%c0_52, %c0_53] : memref<16x64xf32, #tpu.memory_space<vmem>>, vector<16x64xf32>
    %cst_54 = arith.constant dense<0.000000e+00> : vector<16x64xf32>
    %236 = tpu.matmul %0, %235, %cst_54 {dimension_numbers = #tpu.dot_dimension_numbers<[1], [0], [0], [1], [0, 0, 1, 1], [], []>} : vector<16x16xf32>, vector<16x64xf32>, vector<16x64xf32> -> vector<16x64xf32>
    %237 = vector.broadcast %234 : vector<1x64xf32> to vector<16x64xf32>
    %238 = arith.addf %237, %236 : vector<16x64xf32>
    %239 = vector.shape_cast %238 : vector<16x64xf32> to vector<2x8x64xf32>
    %c0_55 = arith.constant 0 : index
    %c0_56 = arith.constant 0 : index
    %240 = vector.load %arg6[%c0_55, %c0_56] : memref<16x64xf32, #tpu.memory_space<vmem>>, vector<16x64xf32>
    %cst_57 = arith.constant 0.000000e+00 : f32
    %241 = vector.broadcast %cst_57 : f32 to vector<2x16xf32>
    %cst_58 = arith.constant 0.000000e+00 : f32
    %242 = vector.broadcast %cst_58 : f32 to vector<2x16xf32>
    %243 = vector.extract_strided_slice %239 {offsets = [0, 7, 0], sizes = [2, 1, 64], strides = [1, 1, 1]} : vector<2x8x64xf32> to vector<2x1x64xf32>
    %244 = vector.shape_cast %243 : vector<2x1x64xf32> to vector<2x64xf32>
    %cst_59 = arith.constant dense<0.000000e+00> : vector<2x64xf32>
    %245 = tpu.matmul %241, %240, %cst_59 {dimension_numbers = #tpu.dot_dimension_numbers<[1], [0], [0], [1], [0, 0, 1, 1], [], []>} : vector<2x16xf32>, vector<16x64xf32>, vector<2x64xf32> -> vector<2x64xf32>
    %246 = arith.addf %244, %245 : vector<2x64xf32>
    %247 = vector.extract_strided_slice %246 {offsets = [0, 0], sizes = [2, 32], strides = [1, 1]} : vector<2x64xf32> to vector<2x32xf32>
    %248 = arith.negf %247 : vector<2x32xf32>
    %249 = math.exp %248 : vector<2x32xf32>
    %cst_60 = arith.constant 1.000000e+00 : f32
    %250 = vector.broadcast %cst_60 : f32 to vector<2x32xf32>
    %251 = arith.addf %250, %249 : vector<2x32xf32>
    %252 = arith.divf %250, %251 : vector<2x32xf32>
    %253 = vector.extract_strided_slice %252 {offsets = [0, 0], sizes = [2, 16], strides = [1, 1]} : vector<2x32xf32> to vector<2x16xf32>
    %254 = vector.extract_strided_slice %252 {offsets = [0, 16], sizes = [2, 16], strides = [1, 1]} : vector<2x32xf32> to vector<2x16xf32>
    %255 = vector.extract_strided_slice %246 {offsets = [0, 32], sizes = [2, 16], strides = [1, 1]} : vector<2x64xf32> to vector<2x16xf32>
    %256 = math.tanh %255 : vector<2x16xf32>
    %257 = vector.extract_strided_slice %246 {offsets = [0, 48], sizes = [2, 16], strides = [1, 1]} : vector<2x64xf32> to vector<2x16xf32>
    %258 = arith.negf %257 : vector<2x16xf32>
    %259 = math.exp %258 : vector<2x16xf32>
    %cst_61 = arith.constant 1.000000e+00 : f32
    %260 = vector.broadcast %cst_61 : f32 to vector<2x16xf32>
    %261 = arith.addf %260, %259 : vector<2x16xf32>
    %262 = arith.divf %260, %261 : vector<2x16xf32>
    %263 = arith.mulf %254, %242 : vector<2x16xf32>
    %264 = arith.mulf %253, %256 : vector<2x16xf32>
    %265 = arith.addf %263, %264 : vector<2x16xf32>
    %266 = math.tanh %265 : vector<2x16xf32>
    %267 = arith.mulf %262, %266 : vector<2x16xf32>
    %c0_62 = arith.constant 0 : index
    %c7_63 = arith.constant 7 : index
    %c0_64 = arith.constant 0 : index
    %268 = vector.load %arg20[%c0_62, %c7_63, %c0_64] : memref<2x8x16xf32, #tpu.memory_space<vmem>>, vector<2x1x16xf32>
    %269 = vector.shape_cast %268 : vector<2x1x16xf32> to vector<2x16xf32>
    %270 = vector.shape_cast %267 : vector<2x16xf32> to vector<2x1x16xf32>
    tpu.vector_store %arg20[%c0_62, %c7_63, %c0_64], %270 {strides = array<i32>} : memref<2x8x16xf32, #tpu.memory_space<vmem>>, vector<2x1x16xf32>,
    %271 = vector.extract_strided_slice %239 {offsets = [0, 6, 0], sizes = [2, 1, 64], strides = [1, 1, 1]} : vector<2x8x64xf32> to vector<2x1x64xf32>
    %272 = vector.shape_cast %271 : vector<2x1x64xf32> to vector<2x64xf32>
    %cst_65 = arith.constant dense<0.000000e+00> : vector<2x64xf32>
    %273 = tpu.matmul %267, %240, %cst_65 {dimension_numbers = #tpu.dot_dimension_numbers<[1], [0], [0], [1], [0, 0, 1, 1], [], []>} : vector<2x16xf32>, vector<16x64xf32>, vector<2x64xf32> -> vector<2x64xf32>
    %274 = arith.addf %272, %273 : vector<2x64xf32>
    %275 = vector.extract_strided_slice %274 {offsets = [0, 0], sizes = [2, 32], strides = [1, 1]} : vector<2x64xf32> to vector<2x32xf32>
    %276 = arith.negf %275 : vector<2x32xf32>
    %277 = math.exp %276 : vector<2x32xf32>
    %cst_66 = arith.constant 1.000000e+00 : f32
    %278 = vector.broadcast %cst_66 : f32 to vector<2x32xf32>
    %279 = arith.addf %278, %277 : vector<2x32xf32>
    %280 = arith.divf %278, %279 : vector<2x32xf32>
    %281 = vector.extract_strided_slice %280 {offsets = [0, 0], sizes = [2, 16], strides = [1, 1]} : vector<2x32xf32> to vector<2x16xf32>
    %282 = vector.extract_strided_slice %280 {offsets = [0, 16], sizes = [2, 16], strides = [1, 1]} : vector<2x32xf32> to vector<2x16xf32>
    %283 = vector.extract_strided_slice %274 {offsets = [0, 32], sizes = [2, 16], strides = [1, 1]} : vector<2x64xf32> to vector<2x16xf32>
    %284 = math.tanh %283 : vector<2x16xf32>
    %285 = vector.extract_strided_slice %274 {offsets = [0, 48], sizes = [2, 16], strides = [1, 1]} : vector<2x64xf32> to vector<2x16xf32>
    %286 = arith.negf %285 : vector<2x16xf32>
    %287 = math.exp %286 : vector<2x16xf32>
    %cst_67 = arith.constant 1.000000e+00 : f32
    %288 = vector.broadcast %cst_67 : f32 to vector<2x16xf32>
    %289 = arith.addf %288, %287 : vector<2x16xf32>
    %290 = arith.divf %288, %289 : vector<2x16xf32>
    %291 = arith.mulf %282, %265 : vector<2x16xf32>
    %292 = arith.mulf %281, %284 : vector<2x16xf32>
    %293 = arith.addf %291, %292 : vector<2x16xf32>
    %294 = math.tanh %293 : vector<2x16xf32>
    %295 = arith.mulf %290, %294 : vector<2x16xf32>
    %c0_68 = arith.constant 0 : index
    %c6_69 = arith.constant 6 : index
    %c0_70 = arith.constant 0 : index
    %296 = vector.load %arg20[%c0_68, %c6_69, %c0_70] : memref<2x8x16xf32, #tpu.memory_space<vmem>>, vector<2x1x16xf32>
    %297 = vector.shape_cast %296 : vector<2x1x16xf32> to vector<2x16xf32>
    %298 = vector.shape_cast %295 : vector<2x16xf32> to vector<2x1x16xf32>
    tpu.vector_store %arg20[%c0_68, %c6_69, %c0_70], %298 {strides = array<i32>} : memref<2x8x16xf32, #tpu.memory_space<vmem>>, vector<2x1x16xf32>,
    %299 = vector.extract_strided_slice %239 {offsets = [0, 5, 0], sizes = [2, 1, 64], strides = [1, 1, 1]} : vector<2x8x64xf32> to vector<2x1x64xf32>
    %300 = vector.shape_cast %299 : vector<2x1x64xf32> to vector<2x64xf32>
    %cst_71 = arith.constant dense<0.000000e+00> : vector<2x64xf32>
    %301 = tpu.matmul %295, %240, %cst_71 {dimension_numbers = #tpu.dot_dimension_numbers<[1], [0], [0], [1], [0, 0, 1, 1], [], []>} : vector<2x16xf32>, vector<16x64xf32>, vector<2x64xf32> -> vector<2x64xf32>
    %302 = arith.addf %300, %301 : vector<2x64xf32>
    %303 = vector.extract_strided_slice %302 {offsets = [0, 0], sizes = [2, 32], strides = [1, 1]} : vector<2x64xf32> to vector<2x32xf32>
    %304 = arith.negf %303 : vector<2x32xf32>
    %305 = math.exp %304 : vector<2x32xf32>
    %cst_72 = arith.constant 1.000000e+00 : f32
    %306 = vector.broadcast %cst_72 : f32 to vector<2x32xf32>
    %307 = arith.addf %306, %305 : vector<2x32xf32>
    %308 = arith.divf %306, %307 : vector<2x32xf32>
    %309 = vector.extract_strided_slice %308 {offsets = [0, 0], sizes = [2, 16], strides = [1, 1]} : vector<2x32xf32> to vector<2x16xf32>
    %310 = vector.extract_strided_slice %308 {offsets = [0, 16], sizes = [2, 16], strides = [1, 1]} : vector<2x32xf32> to vector<2x16xf32>
    %311 = vector.extract_strided_slice %302 {offsets = [0, 32], sizes = [2, 16], strides = [1, 1]} : vector<2x64xf32> to vector<2x16xf32>
    %312 = math.tanh %311 : vector<2x16xf32>
    %313 = vector.extract_strided_slice %302 {offsets = [0, 48], sizes = [2, 16], strides = [1, 1]} : vector<2x64xf32> to vector<2x16xf32>
    %314 = arith.negf %313 : vector<2x16xf32>
    %315 = math.exp %314 : vector<2x16xf32>
    %cst_73 = arith.constant 1.000000e+00 : f32
    %316 = vector.broadcast %cst_73 : f32 to vector<2x16xf32>
    %317 = arith.addf %316, %315 : vector<2x16xf32>
    %318 = arith.divf %316, %317 : vector<2x16xf32>
    %319 = arith.mulf %310, %293 : vector<2x16xf32>
    %320 = arith.mulf %309, %312 : vector<2x16xf32>
    %321 = arith.addf %319, %320 : vector<2x16xf32>
    %322 = math.tanh %321 : vector<2x16xf32>
    %323 = arith.mulf %318, %322 : vector<2x16xf32>
    %c0_74 = arith.constant 0 : index
    %c5_75 = arith.constant 5 : index
    %c0_76 = arith.constant 0 : index
    %324 = vector.load %arg20[%c0_74, %c5_75, %c0_76] : memref<2x8x16xf32, #tpu.memory_space<vmem>>, vector<2x1x16xf32>
    %325 = vector.shape_cast %324 : vector<2x1x16xf32> to vector<2x16xf32>
    %326 = vector.shape_cast %323 : vector<2x16xf32> to vector<2x1x16xf32>
    tpu.vector_store %arg20[%c0_74, %c5_75, %c0_76], %326 {strides = array<i32>} : memref<2x8x16xf32, #tpu.memory_space<vmem>>, vector<2x1x16xf32>,
    %327 = vector.extract_strided_slice %239 {offsets = [0, 4, 0], sizes = [2, 1, 64], strides = [1, 1, 1]} : vector<2x8x64xf32> to vector<2x1x64xf32>
    %328 = vector.shape_cast %327 : vector<2x1x64xf32> to vector<2x64xf32>
    %cst_77 = arith.constant dense<0.000000e+00> : vector<2x64xf32>
    %329 = tpu.matmul %323, %240, %cst_77 {dimension_numbers = #tpu.dot_dimension_numbers<[1], [0], [0], [1], [0, 0, 1, 1], [], []>} : vector<2x16xf32>, vector<16x64xf32>, vector<2x64xf32> -> vector<2x64xf32>
    %330 = arith.addf %328, %329 : vector<2x64xf32>
    %331 = vector.extract_strided_slice %330 {offsets = [0, 0], sizes = [2, 32], strides = [1, 1]} : vector<2x64xf32> to vector<2x32xf32>
    %332 = arith.negf %331 : vector<2x32xf32>
    %333 = math.exp %332 : vector<2x32xf32>
    %cst_78 = arith.constant 1.000000e+00 : f32
    %334 = vector.broadcast %cst_78 : f32 to vector<2x32xf32>
    %335 = arith.addf %334, %333 : vector<2x32xf32>
    %336 = arith.divf %334, %335 : vector<2x32xf32>
    %337 = vector.extract_strided_slice %336 {offsets = [0, 0], sizes = [2, 16], strides = [1, 1]} : vector<2x32xf32> to vector<2x16xf32>
    %338 = vector.extract_strided_slice %336 {offsets = [0, 16], sizes = [2, 16], strides = [1, 1]} : vector<2x32xf32> to vector<2x16xf32>
    %339 = vector.extract_strided_slice %330 {offsets = [0, 32], sizes = [2, 16], strides = [1, 1]} : vector<2x64xf32> to vector<2x16xf32>
    %340 = math.tanh %339 : vector<2x16xf32>
    %341 = vector.extract_strided_slice %330 {offsets = [0, 48], sizes = [2, 16], strides = [1, 1]} : vector<2x64xf32> to vector<2x16xf32>
    %342 = arith.negf %341 : vector<2x16xf32>
    %343 = math.exp %342 : vector<2x16xf32>
    %cst_79 = arith.constant 1.000000e+00 : f32
    %344 = vector.broadcast %cst_79 : f32 to vector<2x16xf32>
    %345 = arith.addf %344, %343 : vector<2x16xf32>
    %346 = arith.divf %344, %345 : vector<2x16xf32>
    %347 = arith.mulf %338, %321 : vector<2x16xf32>
    %348 = arith.mulf %337, %340 : vector<2x16xf32>
    %349 = arith.addf %347, %348 : vector<2x16xf32>
    %350 = math.tanh %349 : vector<2x16xf32>
    %351 = arith.mulf %346, %350 : vector<2x16xf32>
    %c0_80 = arith.constant 0 : index
    %c4_81 = arith.constant 4 : index
    %c0_82 = arith.constant 0 : index
    %352 = vector.load %arg20[%c0_80, %c4_81, %c0_82] : memref<2x8x16xf32, #tpu.memory_space<vmem>>, vector<2x1x16xf32>
    %353 = vector.shape_cast %352 : vector<2x1x16xf32> to vector<2x16xf32>
    %354 = vector.shape_cast %351 : vector<2x16xf32> to vector<2x1x16xf32>
    tpu.vector_store %arg20[%c0_80, %c4_81, %c0_82], %354 {strides = array<i32>} : memref<2x8x16xf32, #tpu.memory_space<vmem>>, vector<2x1x16xf32>,
    %355 = vector.extract_strided_slice %239 {offsets = [0, 3, 0], sizes = [2, 1, 64], strides = [1, 1, 1]} : vector<2x8x64xf32> to vector<2x1x64xf32>
    %356 = vector.shape_cast %355 : vector<2x1x64xf32> to vector<2x64xf32>
    %cst_83 = arith.constant dense<0.000000e+00> : vector<2x64xf32>
    %357 = tpu.matmul %351, %240, %cst_83 {dimension_numbers = #tpu.dot_dimension_numbers<[1], [0], [0], [1], [0, 0, 1, 1], [], []>} : vector<2x16xf32>, vector<16x64xf32>, vector<2x64xf32> -> vector<2x64xf32>
    %358 = arith.addf %356, %357 : vector<2x64xf32>
    %359 = vector.extract_strided_slice %358 {offsets = [0, 0], sizes = [2, 32], strides = [1, 1]} : vector<2x64xf32> to vector<2x32xf32>
    %360 = arith.negf %359 : vector<2x32xf32>
    %361 = math.exp %360 : vector<2x32xf32>
    %cst_84 = arith.constant 1.000000e+00 : f32
    %362 = vector.broadcast %cst_84 : f32 to vector<2x32xf32>
    %363 = arith.addf %362, %361 : vector<2x32xf32>
    %364 = arith.divf %362, %363 : vector<2x32xf32>
    %365 = vector.extract_strided_slice %364 {offsets = [0, 0], sizes = [2, 16], strides = [1, 1]} : vector<2x32xf32> to vector<2x16xf32>
    %366 = vector.extract_strided_slice %364 {offsets = [0, 16], sizes = [2, 16], strides = [1, 1]} : vector<2x32xf32> to vector<2x16xf32>
    %367 = vector.extract_strided_slice %358 {offsets = [0, 32], sizes = [2, 16], strides = [1, 1]} : vector<2x64xf32> to vector<2x16xf32>
    %368 = math.tanh %367 : vector<2x16xf32>
    %369 = vector.extract_strided_slice %358 {offsets = [0, 48], sizes = [2, 16], strides = [1, 1]} : vector<2x64xf32> to vector<2x16xf32>
    %370 = arith.negf %369 : vector<2x16xf32>
    %371 = math.exp %370 : vector<2x16xf32>
    %cst_85 = arith.constant 1.000000e+00 : f32
    %372 = vector.broadcast %cst_85 : f32 to vector<2x16xf32>
    %373 = arith.addf %372, %371 : vector<2x16xf32>
    %374 = arith.divf %372, %373 : vector<2x16xf32>
    %375 = arith.mulf %366, %349 : vector<2x16xf32>
    %376 = arith.mulf %365, %368 : vector<2x16xf32>
    %377 = arith.addf %375, %376 : vector<2x16xf32>
    %378 = math.tanh %377 : vector<2x16xf32>
    %379 = arith.mulf %374, %378 : vector<2x16xf32>
    %c0_86 = arith.constant 0 : index
    %c3_87 = arith.constant 3 : index
    %c0_88 = arith.constant 0 : index
    %380 = vector.load %arg20[%c0_86, %c3_87, %c0_88] : memref<2x8x16xf32, #tpu.memory_space<vmem>>, vector<2x1x16xf32>
    %381 = vector.shape_cast %380 : vector<2x1x16xf32> to vector<2x16xf32>
    %382 = vector.shape_cast %379 : vector<2x16xf32> to vector<2x1x16xf32>
    tpu.vector_store %arg20[%c0_86, %c3_87, %c0_88], %382 {strides = array<i32>} : memref<2x8x16xf32, #tpu.memory_space<vmem>>, vector<2x1x16xf32>,
    %383 = vector.extract_strided_slice %239 {offsets = [0, 2, 0], sizes = [2, 1, 64], strides = [1, 1, 1]} : vector<2x8x64xf32> to vector<2x1x64xf32>
    %384 = vector.shape_cast %383 : vector<2x1x64xf32> to vector<2x64xf32>
    %cst_89 = arith.constant dense<0.000000e+00> : vector<2x64xf32>
    %385 = tpu.matmul %379, %240, %cst_89 {dimension_numbers = #tpu.dot_dimension_numbers<[1], [0], [0], [1], [0, 0, 1, 1], [], []>} : vector<2x16xf32>, vector<16x64xf32>, vector<2x64xf32> -> vector<2x64xf32>
    %386 = arith.addf %384, %385 : vector<2x64xf32>
    %387 = vector.extract_strided_slice %386 {offsets = [0, 0], sizes = [2, 32], strides = [1, 1]} : vector<2x64xf32> to vector<2x32xf32>
    %388 = arith.negf %387 : vector<2x32xf32>
    %389 = math.exp %388 : vector<2x32xf32>
    %cst_90 = arith.constant 1.000000e+00 : f32
    %390 = vector.broadcast %cst_90 : f32 to vector<2x32xf32>
    %391 = arith.addf %390, %389 : vector<2x32xf32>
    %392 = arith.divf %390, %391 : vector<2x32xf32>
    %393 = vector.extract_strided_slice %392 {offsets = [0, 0], sizes = [2, 16], strides = [1, 1]} : vector<2x32xf32> to vector<2x16xf32>
    %394 = vector.extract_strided_slice %392 {offsets = [0, 16], sizes = [2, 16], strides = [1, 1]} : vector<2x32xf32> to vector<2x16xf32>
    %395 = vector.extract_strided_slice %386 {offsets = [0, 32], sizes = [2, 16], strides = [1, 1]} : vector<2x64xf32> to vector<2x16xf32>
    %396 = math.tanh %395 : vector<2x16xf32>
    %397 = vector.extract_strided_slice %386 {offsets = [0, 48], sizes = [2, 16], strides = [1, 1]} : vector<2x64xf32> to vector<2x16xf32>
    %398 = arith.negf %397 : vector<2x16xf32>
    %399 = math.exp %398 : vector<2x16xf32>
    %cst_91 = arith.constant 1.000000e+00 : f32
    %400 = vector.broadcast %cst_91 : f32 to vector<2x16xf32>
    %401 = arith.addf %400, %399 : vector<2x16xf32>
    %402 = arith.divf %400, %401 : vector<2x16xf32>
    %403 = arith.mulf %394, %377 : vector<2x16xf32>
    %404 = arith.mulf %393, %396 : vector<2x16xf32>
    %405 = arith.addf %403, %404 : vector<2x16xf32>
    %406 = math.tanh %405 : vector<2x16xf32>
    %407 = arith.mulf %402, %406 : vector<2x16xf32>
    %c0_92 = arith.constant 0 : index
    %c2_93 = arith.constant 2 : index
    %c0_94 = arith.constant 0 : index
    %408 = vector.load %arg20[%c0_92, %c2_93, %c0_94] : memref<2x8x16xf32, #tpu.memory_space<vmem>>, vector<2x1x16xf32>
    %409 = vector.shape_cast %408 : vector<2x1x16xf32> to vector<2x16xf32>
    %410 = vector.shape_cast %407 : vector<2x16xf32> to vector<2x1x16xf32>
    tpu.vector_store %arg20[%c0_92, %c2_93, %c0_94], %410 {strides = array<i32>} : memref<2x8x16xf32, #tpu.memory_space<vmem>>, vector<2x1x16xf32>,
    %411 = vector.extract_strided_slice %239 {offsets = [0, 1, 0], sizes = [2, 1, 64], strides = [1, 1, 1]} : vector<2x8x64xf32> to vector<2x1x64xf32>
    %412 = vector.shape_cast %411 : vector<2x1x64xf32> to vector<2x64xf32>
    %cst_95 = arith.constant dense<0.000000e+00> : vector<2x64xf32>
    %413 = tpu.matmul %407, %240, %cst_95 {dimension_numbers = #tpu.dot_dimension_numbers<[1], [0], [0], [1], [0, 0, 1, 1], [], []>} : vector<2x16xf32>, vector<16x64xf32>, vector<2x64xf32> -> vector<2x64xf32>
    %414 = arith.addf %412, %413 : vector<2x64xf32>
    %415 = vector.extract_strided_slice %414 {offsets = [0, 0], sizes = [2, 32], strides = [1, 1]} : vector<2x64xf32> to vector<2x32xf32>
    %416 = arith.negf %415 : vector<2x32xf32>
    %417 = math.exp %416 : vector<2x32xf32>
    %cst_96 = arith.constant 1.000000e+00 : f32
    %418 = vector.broadcast %cst_96 : f32 to vector<2x32xf32>
    %419 = arith.addf %418, %417 : vector<2x32xf32>
    %420 = arith.divf %418, %419 : vector<2x32xf32>
    %421 = vector.extract_strided_slice %420 {offsets = [0, 0], sizes = [2, 16], strides = [1, 1]} : vector<2x32xf32> to vector<2x16xf32>
    %422 = vector.extract_strided_slice %420 {offsets = [0, 16], sizes = [2, 16], strides = [1, 1]} : vector<2x32xf32> to vector<2x16xf32>
    %423 = vector.extract_strided_slice %414 {offsets = [0, 32], sizes = [2, 16], strides = [1, 1]} : vector<2x64xf32> to vector<2x16xf32>
    %424 = math.tanh %423 : vector<2x16xf32>
    %425 = vector.extract_strided_slice %414 {offsets = [0, 48], sizes = [2, 16], strides = [1, 1]} : vector<2x64xf32> to vector<2x16xf32>
    %426 = arith.negf %425 : vector<2x16xf32>
    %427 = math.exp %426 : vector<2x16xf32>
    %cst_97 = arith.constant 1.000000e+00 : f32
    %428 = vector.broadcast %cst_97 : f32 to vector<2x16xf32>
    %429 = arith.addf %428, %427 : vector<2x16xf32>
    %430 = arith.divf %428, %429 : vector<2x16xf32>
    %431 = arith.mulf %422, %405 : vector<2x16xf32>
    %432 = arith.mulf %421, %424 : vector<2x16xf32>
    %433 = arith.addf %431, %432 : vector<2x16xf32>
    %434 = math.tanh %433 : vector<2x16xf32>
    %435 = arith.mulf %430, %434 : vector<2x16xf32>
    %c0_98 = arith.constant 0 : index
    %c1_99 = arith.constant 1 : index
    %c0_100 = arith.constant 0 : index
    %436 = vector.load %arg20[%c0_98, %c1_99, %c0_100] : memref<2x8x16xf32, #tpu.memory_space<vmem>>, vector<2x1x16xf32>
    %437 = vector.shape_cast %436 : vector<2x1x16xf32> to vector<2x16xf32>
    %438 = vector.shape_cast %435 : vector<2x16xf32> to vector<2x1x16xf32>
    tpu.vector_store %arg20[%c0_98, %c1_99, %c0_100], %438 {strides = array<i32>} : memref<2x8x16xf32, #tpu.memory_space<vmem>>, vector<2x1x16xf32>,
    %439 = vector.extract_strided_slice %239 {offsets = [0, 0, 0], sizes = [2, 1, 64], strides = [1, 1, 1]} : vector<2x8x64xf32> to vector<2x1x64xf32>
    %440 = vector.shape_cast %439 : vector<2x1x64xf32> to vector<2x64xf32>
    %cst_101 = arith.constant dense<0.000000e+00> : vector<2x64xf32>
    %441 = tpu.matmul %435, %240, %cst_101 {dimension_numbers = #tpu.dot_dimension_numbers<[1], [0], [0], [1], [0, 0, 1, 1], [], []>} : vector<2x16xf32>, vector<16x64xf32>, vector<2x64xf32> -> vector<2x64xf32>
    %442 = arith.addf %440, %441 : vector<2x64xf32>
    %443 = vector.extract_strided_slice %442 {offsets = [0, 0], sizes = [2, 32], strides = [1, 1]} : vector<2x64xf32> to vector<2x32xf32>
    %444 = arith.negf %443 : vector<2x32xf32>
    %445 = math.exp %444 : vector<2x32xf32>
    %cst_102 = arith.constant 1.000000e+00 : f32
    %446 = vector.broadcast %cst_102 : f32 to vector<2x32xf32>
    %447 = arith.addf %446, %445 : vector<2x32xf32>
    %448 = arith.divf %446, %447 : vector<2x32xf32>
    %449 = vector.extract_strided_slice %448 {offsets = [0, 0], sizes = [2, 16], strides = [1, 1]} : vector<2x32xf32> to vector<2x16xf32>
    %450 = vector.extract_strided_slice %448 {offsets = [0, 16], sizes = [2, 16], strides = [1, 1]} : vector<2x32xf32> to vector<2x16xf32>
    %451 = vector.extract_strided_slice %442 {offsets = [0, 32], sizes = [2, 16], strides = [1, 1]} : vector<2x64xf32> to vector<2x16xf32>
    %452 = math.tanh %451 : vector<2x16xf32>
    %453 = vector.extract_strided_slice %442 {offsets = [0, 48], sizes = [2, 16], strides = [1, 1]} : vector<2x64xf32> to vector<2x16xf32>
    %454 = arith.negf %453 : vector<2x16xf32>
    %455 = math.exp %454 : vector<2x16xf32>
    %cst_103 = arith.constant 1.000000e+00 : f32
    %456 = vector.broadcast %cst_103 : f32 to vector<2x16xf32>
    %457 = arith.addf %456, %455 : vector<2x16xf32>
    %458 = arith.divf %456, %457 : vector<2x16xf32>
    %459 = arith.mulf %450, %433 : vector<2x16xf32>
    %460 = arith.mulf %449, %452 : vector<2x16xf32>
    %461 = arith.addf %459, %460 : vector<2x16xf32>
    %462 = math.tanh %461 : vector<2x16xf32>
    %463 = arith.mulf %458, %462 : vector<2x16xf32>
    %c0_104 = arith.constant 0 : index
    %c0_105 = arith.constant 0 : index
    %c0_106 = arith.constant 0 : index
    %464 = vector.load %arg20[%c0_104, %c0_105, %c0_106] : memref<2x8x16xf32, #tpu.memory_space<vmem>>, vector<2x1x16xf32>
    %465 = vector.shape_cast %464 : vector<2x1x16xf32> to vector<2x16xf32>
    %466 = vector.shape_cast %463 : vector<2x16xf32> to vector<2x1x16xf32>
    tpu.vector_store %arg20[%c0_104, %c0_105, %c0_106], %466 {strides = array<i32>} : memref<2x8x16xf32, #tpu.memory_space<vmem>>, vector<2x1x16xf32>,
    %c0_107 = arith.constant 0 : index
    %c0_108 = arith.constant 0 : index
    %c0_109 = arith.constant 0 : index
    %467 = vector.load %arg19[%c0_107, %c0_108, %c0_109] : memref<2x8x16xf32, #tpu.memory_space<vmem>>, vector<2x8x16xf32>
    %c0_110 = arith.constant 0 : index
    %c0_111 = arith.constant 0 : index
    %c0_112 = arith.constant 0 : index
    %468 = vector.load %arg20[%c0_110, %c0_111, %c0_112] : memref<2x8x16xf32, #tpu.memory_space<vmem>>, vector<2x8x16xf32>
    %469 = vector.shape_cast %467 : vector<2x8x16xf32> to vector<16x16xf32>
    %470 = vector.shape_cast %468 : vector<2x8x16xf32> to vector<16x16xf32>
    %c0_113 = arith.constant 0 : index
    %c0_114 = arith.constant 0 : index
    %471 = vector.load %arg11[%c0_113, %c0_114] : memref<1x64xf32, #tpu.memory_space<vmem>>, vector<1x64xf32>
    %c0_115 = arith.constant 0 : index
    %c0_116 = arith.constant 0 : index
    %472 = vector.load %arg8[%c0_115, %c0_116] : memref<16x64xf32, #tpu.memory_space<vmem>>, vector<16x64xf32>
    %cst_117 = arith.constant dense<0.000000e+00> : vector<16x64xf32>
    %473 = tpu.matmul %469, %472, %cst_117 {dimension_numbers = #tpu.dot_dimension_numbers<[1], [0], [0], [1], [0, 0, 1, 1], [], []>} : vector<16x16xf32>, vector<16x64xf32>, vector<16x64xf32> -> vector<16x64xf32>
    %474 = vector.broadcast %471 : vector<1x64xf32> to vector<16x64xf32>
    %475 = arith.addf %474, %473 : vector<16x64xf32>
    %c0_118 = arith.constant 0 : index
    %c0_119 = arith.constant 0 : index
    %476 = vector.load %arg9[%c0_118, %c0_119] : memref<16x64xf32, #tpu.memory_space<vmem>>, vector<16x64xf32>
    %cst_120 = arith.constant dense<0.000000e+00> : vector<16x64xf32>
    %477 = tpu.matmul %470, %476, %cst_120 {dimension_numbers = #tpu.dot_dimension_numbers<[1], [0], [0], [1], [0, 0, 1, 1], [], []>} : vector<16x16xf32>, vector<16x64xf32>, vector<16x64xf32> -> vector<16x64xf32>
    %478 = arith.addf %475, %477 : vector<16x64xf32>
    %479 = vector.shape_cast %478 : vector<16x64xf32> to vector<2x8x64xf32>
    %c0_121 = arith.constant 0 : index
    %c0_122 = arith.constant 0 : index
    %480 = vector.load %arg10[%c0_121, %c0_122] : memref<16x64xf32, #tpu.memory_space<vmem>>, vector<16x64xf32>
    %cst_123 = arith.constant 0.000000e+00 : f32
    %481 = vector.broadcast %cst_123 : f32 to vector<2x16xf32>
    %cst_124 = arith.constant 0.000000e+00 : f32
    %482 = vector.broadcast %cst_124 : f32 to vector<2x16xf32>
    %483 = vector.extract_strided_slice %479 {offsets = [0, 0, 0], sizes = [2, 1, 64], strides = [1, 1, 1]} : vector<2x8x64xf32> to vector<2x1x64xf32>
    %484 = vector.shape_cast %483 : vector<2x1x64xf32> to vector<2x64xf32>
    %cst_125 = arith.constant dense<0.000000e+00> : vector<2x64xf32>
    %485 = tpu.matmul %481, %480, %cst_125 {dimension_numbers = #tpu.dot_dimension_numbers<[1], [0], [0], [1], [0, 0, 1, 1], [], []>} : vector<2x16xf32>, vector<16x64xf32>, vector<2x64xf32> -> vector<2x64xf32>
    %486 = arith.addf %484, %485 : vector<2x64xf32>
    %487 = vector.extract_strided_slice %486 {offsets = [0, 0], sizes = [2, 32], strides = [1, 1]} : vector<2x64xf32> to vector<2x32xf32>
    %488 = arith.negf %487 : vector<2x32xf32>
    %489 = math.exp %488 : vector<2x32xf32>
    %cst_126 = arith.constant 1.000000e+00 : f32
    %490 = vector.broadcast %cst_126 : f32 to vector<2x32xf32>
    %491 = arith.addf %490, %489 : vector<2x32xf32>
    %492 = arith.divf %490, %491 : vector<2x32xf32>
    %493 = vector.extract_strided_slice %492 {offsets = [0, 0], sizes = [2, 16], strides = [1, 1]} : vector<2x32xf32> to vector<2x16xf32>
    %494 = vector.extract_strided_slice %492 {offsets = [0, 16], sizes = [2, 16], strides = [1, 1]} : vector<2x32xf32> to vector<2x16xf32>
    %495 = vector.extract_strided_slice %486 {offsets = [0, 32], sizes = [2, 16], strides = [1, 1]} : vector<2x64xf32> to vector<2x16xf32>
    %496 = math.tanh %495 : vector<2x16xf32>
    %497 = vector.extract_strided_slice %486 {offsets = [0, 48], sizes = [2, 16], strides = [1, 1]} : vector<2x64xf32> to vector<2x16xf32>
    %498 = arith.negf %497 : vector<2x16xf32>
    %499 = math.exp %498 : vector<2x16xf32>
    %cst_127 = arith.constant 1.000000e+00 : f32
    %500 = vector.broadcast %cst_127 : f32 to vector<2x16xf32>
    %501 = arith.addf %500, %499 : vector<2x16xf32>
    %502 = arith.divf %500, %501 : vector<2x16xf32>
    %503 = arith.mulf %494, %482 : vector<2x16xf32>
    %504 = arith.mulf %493, %496 : vector<2x16xf32>
    %505 = arith.addf %503, %504 : vector<2x16xf32>
    %506 = math.tanh %505 : vector<2x16xf32>
    %507 = arith.mulf %502, %506 : vector<2x16xf32>
    %508 = vector.extract_strided_slice %479 {offsets = [0, 1, 0], sizes = [2, 1, 64], strides = [1, 1, 1]} : vector<2x8x64xf32> to vector<2x1x64xf32>
    %509 = vector.shape_cast %508 : vector<2x1x64xf32> to vector<2x64xf32>
    %cst_128 = arith.constant dense<0.000000e+00> : vector<2x64xf32>
    %510 = tpu.matmul %507, %480, %cst_128 {dimension_numbers = #tpu.dot_dimension_numbers<[1], [0], [0], [1], [0, 0, 1, 1], [], []>} : vector<2x16xf32>, vector<16x64xf32>, vector<2x64xf32> -> vector<2x64xf32>
    %511 = arith.addf %509, %510 : vector<2x64xf32>
    %512 = vector.extract_strided_slice %511 {offsets = [0, 0], sizes = [2, 32], strides = [1, 1]} : vector<2x64xf32> to vector<2x32xf32>
    %513 = arith.negf %512 : vector<2x32xf32>
    %514 = math.exp %513 : vector<2x32xf32>
    %cst_129 = arith.constant 1.000000e+00 : f32
    %515 = vector.broadcast %cst_129 : f32 to vector<2x32xf32>
    %516 = arith.addf %515, %514 : vector<2x32xf32>
    %517 = arith.divf %515, %516 : vector<2x32xf32>
    %518 = vector.extract_strided_slice %517 {offsets = [0, 0], sizes = [2, 16], strides = [1, 1]} : vector<2x32xf32> to vector<2x16xf32>
    %519 = vector.extract_strided_slice %517 {offsets = [0, 16], sizes = [2, 16], strides = [1, 1]} : vector<2x32xf32> to vector<2x16xf32>
    %520 = vector.extract_strided_slice %511 {offsets = [0, 32], sizes = [2, 16], strides = [1, 1]} : vector<2x64xf32> to vector<2x16xf32>
    %521 = math.tanh %520 : vector<2x16xf32>
    %522 = vector.extract_strided_slice %511 {offsets = [0, 48], sizes = [2, 16], strides = [1, 1]} : vector<2x64xf32> to vector<2x16xf32>
    %523 = arith.negf %522 : vector<2x16xf32>
    %524 = math.exp %523 : vector<2x16xf32>
    %cst_130 = arith.constant 1.000000e+00 : f32
    %525 = vector.broadcast %cst_130 : f32 to vector<2x16xf32>
    %526 = arith.addf %525, %524 : vector<2x16xf32>
    %527 = arith.divf %525, %526 : vector<2x16xf32>
    %528 = arith.mulf %519, %505 : vector<2x16xf32>
    %529 = arith.mulf %518, %521 : vector<2x16xf32>
    %530 = arith.addf %528, %529 : vector<2x16xf32>
    %531 = math.tanh %530 : vector<2x16xf32>
    %532 = arith.mulf %527, %531 : vector<2x16xf32>
    %533 = vector.extract_strided_slice %479 {offsets = [0, 2, 0], sizes = [2, 1, 64], strides = [1, 1, 1]} : vector<2x8x64xf32> to vector<2x1x64xf32>
    %534 = vector.shape_cast %533 : vector<2x1x64xf32> to vector<2x64xf32>
    %cst_131 = arith.constant dense<0.000000e+00> : vector<2x64xf32>
    %535 = tpu.matmul %532, %480, %cst_131 {dimension_numbers = #tpu.dot_dimension_numbers<[1], [0], [0], [1], [0, 0, 1, 1], [], []>} : vector<2x16xf32>, vector<16x64xf32>, vector<2x64xf32> -> vector<2x64xf32>
    %536 = arith.addf %534, %535 : vector<2x64xf32>
    %537 = vector.extract_strided_slice %536 {offsets = [0, 0], sizes = [2, 32], strides = [1, 1]} : vector<2x64xf32> to vector<2x32xf32>
    %538 = arith.negf %537 : vector<2x32xf32>
    %539 = math.exp %538 : vector<2x32xf32>
    %cst_132 = arith.constant 1.000000e+00 : f32
    %540 = vector.broadcast %cst_132 : f32 to vector<2x32xf32>
    %541 = arith.addf %540, %539 : vector<2x32xf32>
    %542 = arith.divf %540, %541 : vector<2x32xf32>
    %543 = vector.extract_strided_slice %542 {offsets = [0, 0], sizes = [2, 16], strides = [1, 1]} : vector<2x32xf32> to vector<2x16xf32>
    %544 = vector.extract_strided_slice %542 {offsets = [0, 16], sizes = [2, 16], strides = [1, 1]} : vector<2x32xf32> to vector<2x16xf32>
    %545 = vector.extract_strided_slice %536 {offsets = [0, 32], sizes = [2, 16], strides = [1, 1]} : vector<2x64xf32> to vector<2x16xf32>
    %546 = math.tanh %545 : vector<2x16xf32>
    %547 = vector.extract_strided_slice %536 {offsets = [0, 48], sizes = [2, 16], strides = [1, 1]} : vector<2x64xf32> to vector<2x16xf32>
    %548 = arith.negf %547 : vector<2x16xf32>
    %549 = math.exp %548 : vector<2x16xf32>
    %cst_133 = arith.constant 1.000000e+00 : f32
    %550 = vector.broadcast %cst_133 : f32 to vector<2x16xf32>
    %551 = arith.addf %550, %549 : vector<2x16xf32>
    %552 = arith.divf %550, %551 : vector<2x16xf32>
    %553 = arith.mulf %544, %530 : vector<2x16xf32>
    %554 = arith.mulf %543, %546 : vector<2x16xf32>
    %555 = arith.addf %553, %554 : vector<2x16xf32>
    %556 = math.tanh %555 : vector<2x16xf32>
    %557 = arith.mulf %552, %556 : vector<2x16xf32>
    %558 = vector.extract_strided_slice %479 {offsets = [0, 3, 0], sizes = [2, 1, 64], strides = [1, 1, 1]} : vector<2x8x64xf32> to vector<2x1x64xf32>
    %559 = vector.shape_cast %558 : vector<2x1x64xf32> to vector<2x64xf32>
    %cst_134 = arith.constant dense<0.000000e+00> : vector<2x64xf32>
    %560 = tpu.matmul %557, %480, %cst_134 {dimension_numbers = #tpu.dot_dimension_numbers<[1], [0], [0], [1], [0, 0, 1, 1], [], []>} : vector<2x16xf32>, vector<16x64xf32>, vector<2x64xf32> -> vector<2x64xf32>
    %561 = arith.addf %559, %560 : vector<2x64xf32>
    %562 = vector.extract_strided_slice %561 {offsets = [0, 0], sizes = [2, 32], strides = [1, 1]} : vector<2x64xf32> to vector<2x32xf32>
    %563 = arith.negf %562 : vector<2x32xf32>
    %564 = math.exp %563 : vector<2x32xf32>
    %cst_135 = arith.constant 1.000000e+00 : f32
    %565 = vector.broadcast %cst_135 : f32 to vector<2x32xf32>
    %566 = arith.addf %565, %564 : vector<2x32xf32>
    %567 = arith.divf %565, %566 : vector<2x32xf32>
    %568 = vector.extract_strided_slice %567 {offsets = [0, 0], sizes = [2, 16], strides = [1, 1]} : vector<2x32xf32> to vector<2x16xf32>
    %569 = vector.extract_strided_slice %567 {offsets = [0, 16], sizes = [2, 16], strides = [1, 1]} : vector<2x32xf32> to vector<2x16xf32>
    %570 = vector.extract_strided_slice %561 {offsets = [0, 32], sizes = [2, 16], strides = [1, 1]} : vector<2x64xf32> to vector<2x16xf32>
    %571 = math.tanh %570 : vector<2x16xf32>
    %572 = vector.extract_strided_slice %561 {offsets = [0, 48], sizes = [2, 16], strides = [1, 1]} : vector<2x64xf32> to vector<2x16xf32>
    %573 = arith.negf %572 : vector<2x16xf32>
    %574 = math.exp %573 : vector<2x16xf32>
    %cst_136 = arith.constant 1.000000e+00 : f32
    %575 = vector.broadcast %cst_136 : f32 to vector<2x16xf32>
    %576 = arith.addf %575, %574 : vector<2x16xf32>
    %577 = arith.divf %575, %576 : vector<2x16xf32>
    %578 = arith.mulf %569, %555 : vector<2x16xf32>
    %579 = arith.mulf %568, %571 : vector<2x16xf32>
    %580 = arith.addf %578, %579 : vector<2x16xf32>
    %581 = math.tanh %580 : vector<2x16xf32>
    %582 = arith.mulf %577, %581 : vector<2x16xf32>
    %583 = vector.extract_strided_slice %479 {offsets = [0, 4, 0], sizes = [2, 1, 64], strides = [1, 1, 1]} : vector<2x8x64xf32> to vector<2x1x64xf32>
    %584 = vector.shape_cast %583 : vector<2x1x64xf32> to vector<2x64xf32>
    %cst_137 = arith.constant dense<0.000000e+00> : vector<2x64xf32>
    %585 = tpu.matmul %582, %480, %cst_137 {dimension_numbers = #tpu.dot_dimension_numbers<[1], [0], [0], [1], [0, 0, 1, 1], [], []>} : vector<2x16xf32>, vector<16x64xf32>, vector<2x64xf32> -> vector<2x64xf32>
    %586 = arith.addf %584, %585 : vector<2x64xf32>
    %587 = vector.extract_strided_slice %586 {offsets = [0, 0], sizes = [2, 32], strides = [1, 1]} : vector<2x64xf32> to vector<2x32xf32>
    %588 = arith.negf %587 : vector<2x32xf32>
    %589 = math.exp %588 : vector<2x32xf32>
    %cst_138 = arith.constant 1.000000e+00 : f32
    %590 = vector.broadcast %cst_138 : f32 to vector<2x32xf32>
    %591 = arith.addf %590, %589 : vector<2x32xf32>
    %592 = arith.divf %590, %591 : vector<2x32xf32>
    %593 = vector.extract_strided_slice %592 {offsets = [0, 0], sizes = [2, 16], strides = [1, 1]} : vector<2x32xf32> to vector<2x16xf32>
    %594 = vector.extract_strided_slice %592 {offsets = [0, 16], sizes = [2, 16], strides = [1, 1]} : vector<2x32xf32> to vector<2x16xf32>
    %595 = vector.extract_strided_slice %586 {offsets = [0, 32], sizes = [2, 16], strides = [1, 1]} : vector<2x64xf32> to vector<2x16xf32>
    %596 = math.tanh %595 : vector<2x16xf32>
    %597 = vector.extract_strided_slice %586 {offsets = [0, 48], sizes = [2, 16], strides = [1, 1]} : vector<2x64xf32> to vector<2x16xf32>
    %598 = arith.negf %597 : vector<2x16xf32>
    %599 = math.exp %598 : vector<2x16xf32>
    %cst_139 = arith.constant 1.000000e+00 : f32
    %600 = vector.broadcast %cst_139 : f32 to vector<2x16xf32>
    %601 = arith.addf %600, %599 : vector<2x16xf32>
    %602 = arith.divf %600, %601 : vector<2x16xf32>
    %603 = arith.mulf %594, %580 : vector<2x16xf32>
    %604 = arith.mulf %593, %596 : vector<2x16xf32>
    %605 = arith.addf %603, %604 : vector<2x16xf32>
    %606 = math.tanh %605 : vector<2x16xf32>
    %607 = arith.mulf %602, %606 : vector<2x16xf32>
    %608 = vector.extract_strided_slice %479 {offsets = [0, 5, 0], sizes = [2, 1, 64], strides = [1, 1, 1]} : vector<2x8x64xf32> to vector<2x1x64xf32>
    %609 = vector.shape_cast %608 : vector<2x1x64xf32> to vector<2x64xf32>
    %cst_140 = arith.constant dense<0.000000e+00> : vector<2x64xf32>
    %610 = tpu.matmul %607, %480, %cst_140 {dimension_numbers = #tpu.dot_dimension_numbers<[1], [0], [0], [1], [0, 0, 1, 1], [], []>} : vector<2x16xf32>, vector<16x64xf32>, vector<2x64xf32> -> vector<2x64xf32>
    %611 = arith.addf %609, %610 : vector<2x64xf32>
    %612 = vector.extract_strided_slice %611 {offsets = [0, 0], sizes = [2, 32], strides = [1, 1]} : vector<2x64xf32> to vector<2x32xf32>
    %613 = arith.negf %612 : vector<2x32xf32>
    %614 = math.exp %613 : vector<2x32xf32>
    %cst_141 = arith.constant 1.000000e+00 : f32
    %615 = vector.broadcast %cst_141 : f32 to vector<2x32xf32>
    %616 = arith.addf %615, %614 : vector<2x32xf32>
    %617 = arith.divf %615, %616 : vector<2x32xf32>
    %618 = vector.extract_strided_slice %617 {offsets = [0, 0], sizes = [2, 16], strides = [1, 1]} : vector<2x32xf32> to vector<2x16xf32>
    %619 = vector.extract_strided_slice %617 {offsets = [0, 16], sizes = [2, 16], strides = [1, 1]} : vector<2x32xf32> to vector<2x16xf32>
    %620 = vector.extract_strided_slice %611 {offsets = [0, 32], sizes = [2, 16], strides = [1, 1]} : vector<2x64xf32> to vector<2x16xf32>
    %621 = math.tanh %620 : vector<2x16xf32>
    %622 = vector.extract_strided_slice %611 {offsets = [0, 48], sizes = [2, 16], strides = [1, 1]} : vector<2x64xf32> to vector<2x16xf32>
    %623 = arith.negf %622 : vector<2x16xf32>
    %624 = math.exp %623 : vector<2x16xf32>
    %cst_142 = arith.constant 1.000000e+00 : f32
    %625 = vector.broadcast %cst_142 : f32 to vector<2x16xf32>
    %626 = arith.addf %625, %624 : vector<2x16xf32>
    %627 = arith.divf %625, %626 : vector<2x16xf32>
    %628 = arith.mulf %619, %605 : vector<2x16xf32>
    %629 = arith.mulf %618, %621 : vector<2x16xf32>
    %630 = arith.addf %628, %629 : vector<2x16xf32>
    %631 = math.tanh %630 : vector<2x16xf32>
    %632 = arith.mulf %627, %631 : vector<2x16xf32>
    %633 = vector.extract_strided_slice %479 {offsets = [0, 6, 0], sizes = [2, 1, 64], strides = [1, 1, 1]} : vector<2x8x64xf32> to vector<2x1x64xf32>
    %634 = vector.shape_cast %633 : vector<2x1x64xf32> to vector<2x64xf32>
    %cst_143 = arith.constant dense<0.000000e+00> : vector<2x64xf32>
    %635 = tpu.matmul %632, %480, %cst_143 {dimension_numbers = #tpu.dot_dimension_numbers<[1], [0], [0], [1], [0, 0, 1, 1], [], []>} : vector<2x16xf32>, vector<16x64xf32>, vector<2x64xf32> -> vector<2x64xf32>
    %636 = arith.addf %634, %635 : vector<2x64xf32>
    %637 = vector.extract_strided_slice %636 {offsets = [0, 0], sizes = [2, 32], strides = [1, 1]} : vector<2x64xf32> to vector<2x32xf32>
    %638 = arith.negf %637 : vector<2x32xf32>
    %639 = math.exp %638 : vector<2x32xf32>
    %cst_144 = arith.constant 1.000000e+00 : f32
    %640 = vector.broadcast %cst_144 : f32 to vector<2x32xf32>
    %641 = arith.addf %640, %639 : vector<2x32xf32>
    %642 = arith.divf %640, %641 : vector<2x32xf32>
    %643 = vector.extract_strided_slice %642 {offsets = [0, 0], sizes = [2, 16], strides = [1, 1]} : vector<2x32xf32> to vector<2x16xf32>
    %644 = vector.extract_strided_slice %642 {offsets = [0, 16], sizes = [2, 16], strides = [1, 1]} : vector<2x32xf32> to vector<2x16xf32>
    %645 = vector.extract_strided_slice %636 {offsets = [0, 32], sizes = [2, 16], strides = [1, 1]} : vector<2x64xf32> to vector<2x16xf32>
    %646 = math.tanh %645 : vector<2x16xf32>
    %647 = vector.extract_strided_slice %636 {offsets = [0, 48], sizes = [2, 16], strides = [1, 1]} : vector<2x64xf32> to vector<2x16xf32>
    %648 = arith.negf %647 : vector<2x16xf32>
    %649 = math.exp %648 : vector<2x16xf32>
    %cst_145 = arith.constant 1.000000e+00 : f32
    %650 = vector.broadcast %cst_145 : f32 to vector<2x16xf32>
    %651 = arith.addf %650, %649 : vector<2x16xf32>
    %652 = arith.divf %650, %651 : vector<2x16xf32>
    %653 = arith.mulf %644, %630 : vector<2x16xf32>
    %654 = arith.mulf %643, %646 : vector<2x16xf32>
    %655 = arith.addf %653, %654 : vector<2x16xf32>
    %656 = math.tanh %655 : vector<2x16xf32>
    %657 = arith.mulf %652, %656 : vector<2x16xf32>
    %658 = vector.extract_strided_slice %479 {offsets = [0, 7, 0], sizes = [2, 1, 64], strides = [1, 1, 1]} : vector<2x8x64xf32> to vector<2x1x64xf32>
    %659 = vector.shape_cast %658 : vector<2x1x64xf32> to vector<2x64xf32>
    %cst_146 = arith.constant dense<0.000000e+00> : vector<2x64xf32>
    %660 = tpu.matmul %657, %480, %cst_146 {dimension_numbers = #tpu.dot_dimension_numbers<[1], [0], [0], [1], [0, 0, 1, 1], [], []>} : vector<2x16xf32>, vector<16x64xf32>, vector<2x64xf32> -> vector<2x64xf32>
    %661 = arith.addf %659, %660 : vector<2x64xf32>
    %662 = vector.extract_strided_slice %661 {offsets = [0, 0], sizes = [2, 32], strides = [1, 1]} : vector<2x64xf32> to vector<2x32xf32>
    %663 = arith.negf %662 : vector<2x32xf32>
    %664 = math.exp %663 : vector<2x32xf32>
    %cst_147 = arith.constant 1.000000e+00 : f32
    %665 = vector.broadcast %cst_147 : f32 to vector<2x32xf32>
    %666 = arith.addf %665, %664 : vector<2x32xf32>
    %667 = arith.divf %665, %666 : vector<2x32xf32>
    %668 = vector.extract_strided_slice %667 {offsets = [0, 0], sizes = [2, 16], strides = [1, 1]} : vector<2x32xf32> to vector<2x16xf32>
    %669 = vector.extract_strided_slice %667 {offsets = [0, 16], sizes = [2, 16], strides = [1, 1]} : vector<2x32xf32> to vector<2x16xf32>
    %670 = vector.extract_strided_slice %661 {offsets = [0, 32], sizes = [2, 16], strides = [1, 1]} : vector<2x64xf32> to vector<2x16xf32>
    %671 = math.tanh %670 : vector<2x16xf32>
    %672 = vector.extract_strided_slice %661 {offsets = [0, 48], sizes = [2, 16], strides = [1, 1]} : vector<2x64xf32> to vector<2x16xf32>
    %673 = arith.negf %672 : vector<2x16xf32>
    %674 = math.exp %673 : vector<2x16xf32>
    %cst_148 = arith.constant 1.000000e+00 : f32
    %675 = vector.broadcast %cst_148 : f32 to vector<2x16xf32>
    %676 = arith.addf %675, %674 : vector<2x16xf32>
    %677 = arith.divf %675, %676 : vector<2x16xf32>
    %678 = arith.mulf %669, %655 : vector<2x16xf32>
    %679 = arith.mulf %668, %671 : vector<2x16xf32>
    %680 = arith.addf %678, %679 : vector<2x16xf32>
    %681 = math.tanh %680 : vector<2x16xf32>
    %682 = arith.mulf %677, %681 : vector<2x16xf32>
    %683 = vector.extract_strided_slice %467 {offsets = [0, 7, 0], sizes = [2, 1, 16], strides = [1, 1, 1]} : vector<2x8x16xf32> to vector<2x1x16xf32>
    %684 = vector.shape_cast %683 : vector<2x1x16xf32> to vector<2x16xf32>
    %c0_149 = arith.constant 0 : index
    %c0_150 = arith.constant 0 : index
    %685 = vector.load %arg12[%c0_149, %c0_150] : memref<16x64xf32, #tpu.memory_space<vmem>>, vector<16x64xf32>
    %cst_151 = arith.constant dense<0.000000e+00> : vector<2x64xf32>
    %686 = tpu.matmul %684, %685, %cst_151 {dimension_numbers = #tpu.dot_dimension_numbers<[1], [0], [0], [1], [0, 0, 1, 1], [], []>} : vector<2x16xf32>, vector<16x64xf32>, vector<2x64xf32> -> vector<2x64xf32>
    %687 = vector.extract_strided_slice %468 {offsets = [0, 7, 0], sizes = [2, 1, 16], strides = [1, 1, 1]} : vector<2x8x16xf32> to vector<2x1x16xf32>
    %688 = vector.shape_cast %687 : vector<2x1x16xf32> to vector<2x16xf32>
    %c0_152 = arith.constant 0 : index
    %c0_153 = arith.constant 0 : index
    %689 = vector.load %arg13[%c0_152, %c0_153] : memref<16x64xf32, #tpu.memory_space<vmem>>, vector<16x64xf32>
    %cst_154 = arith.constant dense<0.000000e+00> : vector<2x64xf32>
    %690 = tpu.matmul %688, %689, %cst_154 {dimension_numbers = #tpu.dot_dimension_numbers<[1], [0], [0], [1], [0, 0, 1, 1], [], []>} : vector<2x16xf32>, vector<16x64xf32>, vector<2x64xf32> -> vector<2x64xf32>
    %691 = arith.addf %686, %690 : vector<2x64xf32>
    %c0_155 = arith.constant 0 : index
    %c0_156 = arith.constant 0 : index
    %692 = vector.load %arg14[%c0_155, %c0_156] : memref<1x64xf32, #tpu.memory_space<vmem>>, vector<1x64xf32>
    %693 = vector.broadcast %692 : vector<1x64xf32> to vector<2x64xf32>
    %694 = arith.addf %691, %693 : vector<2x64xf32>
    %695 = vector.extract_strided_slice %694 {offsets = [0, 0], sizes = [2, 16], strides = [1, 1]} : vector<2x64xf32> to vector<2x16xf32>
    %696 = arith.negf %695 : vector<2x16xf32>
    %697 = math.exp %696 : vector<2x16xf32>
    %cst_157 = arith.constant 1.000000e+00 : f32
    %698 = vector.broadcast %cst_157 : f32 to vector<2x16xf32>
    %699 = arith.addf %698, %697 : vector<2x16xf32>
    %700 = arith.divf %698, %699 : vector<2x16xf32>
    %701 = vector.extract_strided_slice %694 {offsets = [0, 32], sizes = [2, 16], strides = [1, 1]} : vector<2x64xf32> to vector<2x16xf32>
    %702 = math.tanh %701 : vector<2x16xf32>
    %703 = vector.extract_strided_slice %694 {offsets = [0, 48], sizes = [2, 16], strides = [1, 1]} : vector<2x64xf32> to vector<2x16xf32>
    %704 = arith.negf %703 : vector<2x16xf32>
    %705 = math.exp %704 : vector<2x16xf32>
    %cst_158 = arith.constant 1.000000e+00 : f32
    %706 = vector.broadcast %cst_158 : f32 to vector<2x16xf32>
    %707 = arith.addf %706, %705 : vector<2x16xf32>
    %708 = arith.divf %706, %707 : vector<2x16xf32>
    %709 = arith.mulf %700, %702 : vector<2x16xf32>
    %710 = math.tanh %709 : vector<2x16xf32>
    %711 = arith.mulf %708, %710 : vector<2x16xf32>
    %c0_159 = arith.constant 0 : index
    %c0_160 = arith.constant 0 : index
    %712 = vector.load %arg15[%c0_159, %c0_160] : memref<16x1xf32, #tpu.memory_space<vmem>>, vector<16x1xf32>
    %cst_161 = arith.constant dense<0.000000e+00> : vector<2x1xf32>
    %713 = tpu.matmul %682, %712, %cst_161 {dimension_numbers = #tpu.dot_dimension_numbers<[1], [0], [0], [1], [0, 0, 1, 1], [], []>} : vector<2x16xf32>, vector<16x1xf32>, vector<2x1xf32> -> vector<2x1xf32>
    %c0_162 = arith.constant 0 : index
    %c0_163 = arith.constant 0 : index
    %714 = vector.load %arg16[%c0_162, %c0_163] : memref<16x1xf32, #tpu.memory_space<vmem>>, vector<16x1xf32>
    %cst_164 = arith.constant dense<0.000000e+00> : vector<2x1xf32>
    %715 = tpu.matmul %711, %714, %cst_164 {dimension_numbers = #tpu.dot_dimension_numbers<[1], [0], [0], [1], [0, 0, 1, 1], [], []>} : vector<2x16xf32>, vector<16x1xf32>, vector<2x1xf32> -> vector<2x1xf32>
    %716 = arith.addf %713, %715 : vector<2x1xf32>
    %c0_165 = arith.constant 0 : index
    %c0_166 = arith.constant 0 : index
    %717 = vector.load %arg17[%c0_165, %c0_166] : memref<1x1xf32, #tpu.memory_space<vmem>>, vector<1x1xf32>
    %718 = vector.broadcast %717 : vector<1x1xf32> to vector<2x1xf32>
    %719 = arith.addf %716, %718 : vector<2x1xf32>
    %720 = math.tanh %719 : vector<2x1xf32>
    %c0_167 = arith.constant 0 : index
    %c0_168 = arith.constant 0 : index
    %721 = vector.load %arg18[%c0_167, %c0_168] : memref<2x1xf32, #tpu.memory_space<vmem>>, vector<2x1xf32>
    tpu.vector_store %arg18[%c0_167, %c0_168], %720 {strides = array<i32>} : memref<2x1xf32, #tpu.memory_space<vmem>>, vector<2x1xf32>,
    return
  }
  func.func @transform_0(%arg0: i32) -> (i32, i32) {
    %c0_i32 = arith.constant 0 : i32
    %c0_i32_0 = arith.constant 0 : i32
    %c0_i32_1 = arith.constant 0 : i32
    return %c0_i32, %c0_i32_0 : i32, i32
  }
  func.func @transform_1(%arg0: i32) -> (i32, i32) {
    %c0_i32 = arith.constant 0 : i32
    %c0_i32_0 = arith.constant 0 : i32
    %c0_i32_1 = arith.constant 0 : i32
    return %c0_i32, %c0_i32_0 : i32, i32
  }
  func.func @transform_2(%arg0: i32) -> (i32, i32) {
    %c0_i32 = arith.constant 0 : i32
    %c0_i32_0 = arith.constant 0 : i32
    %c0_i32_1 = arith.constant 0 : i32
    return %c0_i32, %c0_i32_0 : i32, i32
  }
  func.func @transform_3(%arg0: i32) -> (i32, i32) {
    %c0_i32 = arith.constant 0 : i32
    %c0_i32_0 = arith.constant 0 : i32
    %c0_i32_1 = arith.constant 0 : i32
    return %c0_i32, %c0_i32_0 : i32, i32
  }
  func.func @transform_4(%arg0: i32) -> (i32, i32) {
    %c0_i32 = arith.constant 0 : i32
    %c0_i32_0 = arith.constant 0 : i32
    %c0_i32_1 = arith.constant 0 : i32
    return %c0_i32, %c0_i32_0 : i32, i32
  }
  func.func @transform_5(%arg0: i32) -> (i32, i32) {
    %c0_i32 = arith.constant 0 : i32
    %c0_i32_0 = arith.constant 0 : i32
    %c0_i32_1 = arith.constant 0 : i32
    return %c0_i32, %c0_i32_0 : i32, i32
  }
  func.func @transform_6(%arg0: i32) -> (i32, i32) {
    %c0_i32 = arith.constant 0 : i32
    %c0_i32_0 = arith.constant 0 : i32
    %c0_i32_1 = arith.constant 0 : i32
    return %c0_i32, %c0_i32_0 : i32, i32
  }
  func.func @transform_7(%arg0: i32) -> (i32, i32) {
    %c0_i32 = arith.constant 0 : i32
    %c0_i32_0 = arith.constant 0 : i32
    %c0_i32_1 = arith.constant 0 : i32
    return %c0_i32, %c0_i32_0 : i32, i32
  }
  func.func @transform_8(%arg0: i32) -> (i32, i32) {
    %c0_i32 = arith.constant 0 : i32
    %c0_i32_0 = arith.constant 0 : i32
    %c0_i32_1 = arith.constant 0 : i32
    return %c0_i32, %c0_i32_0 : i32, i32
  }
  func.func @transform_9(%arg0: i32) -> (i32, i32) {
    %c0_i32 = arith.constant 0 : i32
    %c0_i32_0 = arith.constant 0 : i32
    %c0_i32_1 = arith.constant 0 : i32
    return %c0_i32, %c0_i32_0 : i32, i32
  }
  func.func @transform_10(%arg0: i32) -> (i32, i32) {
    %c0_i32 = arith.constant 0 : i32
    %c0_i32_0 = arith.constant 0 : i32
    %c0_i32_1 = arith.constant 0 : i32
    return %c0_i32, %c0_i32_0 : i32, i32
  }
  func.func @transform_11(%arg0: i32) -> (i32, i32) {
    %c0_i32 = arith.constant 0 : i32
    %c0_i32_0 = arith.constant 0 : i32
    %c0_i32_1 = arith.constant 0 : i32
    return %c0_i32, %c0_i32_0 : i32, i32
  }
  func.func @transform_12(%arg0: i32) -> (i32, i32) {
    %c0_i32 = arith.constant 0 : i32
    %c0_i32_0 = arith.constant 0 : i32
    %c0_i32_1 = arith.constant 0 : i32
    return %c0_i32, %c0_i32_0 : i32, i32
  }
  func.func @transform_13(%arg0: i32) -> (i32, i32) {
    %c0_i32 = arith.constant 0 : i32
    %c0_i32_0 = arith.constant 0 : i32
    %c0_i32_1 = arith.constant 0 : i32
    return %c0_i32, %c0_i32_0 : i32, i32
  }
  func.func @transform_14(%arg0: i32) -> (i32, i32) {
    %c0_i32 = arith.constant 0 : i32
    %c0_i32_0 = arith.constant 0 : i32
    %c0_i32_1 = arith.constant 0 : i32
    return %c0_i32, %c0_i32_0 : i32, i32
  }
  func.func @transform_15(%arg0: i32) -> (i32, i32) {
    %c0_i32 = arith.constant 0 : i32
    %c0_i32_0 = arith.constant 0 : i32
    %c0_i32_1 = arith.constant 0 : i32
    return %c0_i32, %c0_i32_0 : i32, i32
  }
  func.func @transform_16(%arg0: i32) -> (i32, i32) {
    %c0_i32 = arith.constant 0 : i32
    %c0_i32_0 = arith.constant 0 : i32
    %c0_i32_1 = arith.constant 0 : i32
    return %c0_i32, %c0_i32_0 : i32, i32
  }
  func.func @transform_17(%arg0: i32) -> (i32, i32) {
    %c0_i32 = arith.constant 0 : i32
    %c0_i32_0 = arith.constant 0 : i32
    %c0_i32_1 = arith.constant 0 : i32
    return %c0_i32, %c0_i32_0 : i32, i32
  }
}

</mosaic_0001>

<bundles_post_ra>
// kernel: lstmnet_forward.1
= control target key start
LH: loop header
LB: loop body
LE: loop exit
PB: predicated region body
PF: predicated region fallthrough
CT: control target
= control target key end

     0   :  { %v5039_v0 = vmov 0.0   ;;  %vm5040_vm0 = vmmov 0   ;;  %vm63_vm1 = vcmask 130048   ;;  %s5041_s24 = smov 96   ;;  %s5043_s25 = smov 32   ;;  %vm294_vm2 = vcmask 1041409   ;;  %s5935_s1 = inlined_call_operand.vmem [shape: f32[16,64], index: 1, kind: input, shape index: {}]   ;;  %s5936_s2 = inlined_call_operand.vmem [shape: f32[16,64], index: 2, kind: input, shape index: {}]   ;;  %s5937_s0 = inlined_call_operand.vmem [shape: f32[16,16], index: 0, kind: input, shape index: {}]   ;;  %s5938_s3 = inlined_call_operand.vmem [shape: f32[1,64], index: 3, kind: input, shape index: {}]   ;;  %s5939_s4 = inlined_call_operand.vmem [shape: f32[16,64], index: 4, kind: input, shape index: {}]   ;;  %s5940_s5 = inlined_call_operand.vmem [shape: f32[16,64], index: 5, kind: input, shape index: {}]   ;;  %s5941_s6 = inlined_call_operand.vmem [shape: f32[1,64], index: 6, kind: input, shape index: {}]   ;;  %s5942_s7 = inlined_call_operand.vmem [shape: f32[16,64], index: 7, kind: input, shape index: {}]   ;;  %s5943_s8 = inlined_call_operand.vmem [shape: f32[16,64], index: 8, kind: input, shape index: {}]   ;;  %s5944_s9 = inlined_call_operand.vmem [shape: f32[16,64], index: 9, kind: input, shape index: {}]   ;;  %s5945_s10 = inlined_call_operand.vmem [shape: f32[1,64], index: 10, kind: input, shape index: {}]   ;;  %s5946_s12 = inlined_call_operand.vmem [shape: f32[16,64], index: 12, kind: input, shape index: {}]   ;;  %s5947_s11 = inlined_call_operand.vmem [shape: f32[16,64], index: 11, kind: input, shape index: {}]   ;;  %s5948_s13 = inlined_call_operand.vmem [shape: f32[1,64], index: 13, kind: input, shape index: {}]   ;;  %s5949_s15 = inlined_call_operand.vmem [shape: f32[16,1], index: 15, kind: input, shape index: {}]   ;;  %s5950_s14 = inlined_call_operand.vmem [shape: f32[16,1], index: 14, kind: input, shape index: {}]   ;;  %s5951_s16 = inlined_call_operand.<no memory space> [shape: f32[1,1], index: 16, kind: input, shape index: {}]   ;;  %s5952_s17 = inlined_call_operand.vmem [shape: f32[2,1], index: 17, kind: output, shape index: {}]  }
   0x1   :  { %5955 = sst [smem:[#allocation5_spill]] %s5935_s1  ;;  %4421 = vmatprep.subr.mxu1 %v5039_v0  ;;  %4425 = vmatprep.mubr.msk.f32.mxu1 %vm5040_vm0, %v5039_v0  ;;  %v5159_v5 = vld [vmem:[%s5937_s0] sm:$0xff]  ;;  %v5165_v6 = vld [vmem:[%s5937_s0 + $0x8] sm:$0xff]  ;;  %vm438_vm3 = vcmask 123905   ;;  %vm290_vm4 = vcmask 122880   ;;  %vm735_vm5 = vcmask 125955  }
   0x2   :  { %5956 = sst [smem:[#allocation6_spill]] %s5936_s2  ;;  %4418 = vmatprep.mubr.msk.f32.mxu0 %vm63_vm1, %v5159_v5  ;;  %v4229_v7 = vld [vmem:[%s5938_s3] ss:$0 sm:$0xff]  ;;  %s5042_s3 = smov 16   ;;  %vm586_vm6 = vcmask 124930   ;;  %vm1033_vm7 = vcmask 128005  }
   0x3   :  { %s5957_s26 = sld [smem:[#allocation5_spill]]  ;;  %vm884_vm8 = vcmask 126980   ;;  %vm1331_vm9 = vcmask 130055   ;;  %vm1182_vm10 = vcmask 129030   ;;  %vm4221_vm11 = vcmask 1024  }
   0x4   :  { %s5958_s29 = sld [smem:[#allocation6_spill]] }
   0x9   :  { %v62_v1 = vld [vmem:[%s5957_s26 + $0x8] sm:$0xff]  ;;  %v61_v3 = vld [vmem:[%s5957_s26] sm:$0xff]  ;;  %s5044_s26 = smov 80  }
   0xa   :  { %v5143_v2 = vld [vmem:[%s5958_s29 + $0x8] sm:$0xff]  ;;  %4414 = vmatprep.subr.mxu0 %v62_v1  ;;  %v5154_v4 = vld [vmem:[%s5958_s29] sm:$0xff] }
   0xb   :  { %4422 = vmatpush3.msra.mxu1 %v5143_v2  ;;  %4415 = vmatpush3.msra.mxu0 %v62_v1 }
   0xc   :  { %4423 = vmatprep.subr.mxu1 %v5039_v0  ;;  %4416 = vmatprep.subr.mxu0 %v61_v3 }
   0xd   :  { %4424 = vmatpush3.msra.mxu1 %v5154_v4  ;;  %4417 = vmatpush3.msra.mxu0 %v61_v3 }
   0xe   :  { %4426 = vmatmul.mubr.f32.vlgmr.msra.gmra.mxu1 %v5039_v0  ;;  %4419 = vmatmul.mubr.msk.f32.vlgmr.msra.gmra.mxu0 %vm63_vm1, %v5165_v6 }
   0xf   :  { %4428 = vmatprep.subr.mxu0 %v5039_v0  ;;  %4432 = vmatprep.mubr.msk.f32.mxu0 %vm5040_vm0, %v5039_v0 }
  0x10   :  { %4429 = vmatpush3.msra.mxu0 %v5143_v2  ;;  %4435 = vmatprep.subr.mxu1 %v5039_v0 }
  0x11   :  { %4430 = vmatprep.subr.mxu0 %v5039_v0  ;;  %4436 = vmatpush3.msra.mxu1 %v5143_v2 }
  0x12   :  { %4431 = vmatpush3.msra.mxu0 %v5154_v4  ;;  %4437 = vmatprep.subr.mxu1 %v5039_v0 }
  0x13   :  { %4438 = vmatpush3.msra.mxu1 %v5154_v4  ;;  %4439 = vmatprep.mubr.msk.f32.mxu1 %vm5040_vm0, %v5039_v0 }
  0x14   :  { %4442 = vmatprep.subr.mxu0 %v5039_v0  ;;  %4449 = vmatprep.subr.mxu1 %v5039_v0 }
  0xce   :  { %v224_v8 = vpop.f32.mrf.mxu1  ;;  %v4420_v9 = vpop.f32.mrf.mxu0 }
  0xcf   :  { %v229_v10 = vrot.slane %v224_v8, 1  ;;  %v5190_v11 = vadd.f32 %v4420_v9, %v4229_v7 }
  0xd0   :  { %v4427_v12 = vpop.f32.mrf.mxu1  ;;  %v136_v13 = vpop.f32.mrf.mxu0 }
  0xd1   :  { %v5192_v14 = vadd.f32 %v4229_v7, %v136_v13  ;;  %v233_v15 = vadd.f32 %v229_v10, %v5190_v11 }
  0xd3   :  { %v232_v16 = vadd.f32 %v224_v8, %v5192_v14  ;;  %4645 = vtanh.f32 %v233_v15  ;;  %v4231_v19 = vmul.f32 -1.442695, %v233_v15 }
  0xd5   :  { %4647 = vtanh.f32 %v232_v16  ;;  %v4230_v20 = vmul.f32 -1.442695, %v232_v16 }
  0xd6   :  { %4649 = vpow2.f32 %v4231_v19 }
  0xd7   :  { %4651 = vpow2.f32 %v4230_v20 }
  0xe0   :  { %v4646_v17 = vpop.eup %4645 }
  0xe1   :  { %254 = vrot.lane.b32.xlu0 %v4646_v17, %s5041_s24 }
  0xe2   :  { %v4648_v18 = vpop.eup %4647 }
  0xe3   :  { %v4650_v21 = vpop.eup %4649 }
  0xe4   :  { %v241_v22 = vadd.f32 1.0, %v4650_v21  ;;  %v4652_v23 = vpop.eup %4651 }
  0xe5   :  { %252 = vrot.lane.b32.xlu0 %v4648_v18, %s5041_s24  ;;  %v240_v24 = vadd.f32 1.0, %v4652_v23 }
  0xe6   :  { %4653 = vrcp.f32 %v241_v22 }
  0xe7   :  { %4655 = vrcp.f32 %v240_v24 }
  0xf3   :  { %v4654_v25 = vpop.eup %4653 }
  0xf4   :  { %v4656_v28 = vpop.eup %4655  ;;  %v249_v31 = vmul.f32 0.0, %v4654_v25 }
  0xf5   :  { %v248_v34 = vmul.f32 0.0, %v4656_v28 }
 0x153   :  { %v255_v26 = vpop.permute.xlu0 %254 }
 0x154   :  { %v259_v27 = vmul.f32 %v4654_v25, %v255_v26 }
 0x156   :  { %264 = vrot.lane.b32.xlu1 %v259_v27, %s5042_s3 }
 0x157   :  { %v253_v29 = vpop.permute.xlu0 %252 }
 0x158   :  { %v258_v30 = vmul.f32 %v4656_v28, %v253_v29 }
 0x15a   :  { %262 = vrot.lane.b32.xlu1 %v258_v30, %s5042_s3 }
 0x1c8   :  { %v265_v32 = vpop.permute.xlu1 %264 }
 0x1c9   :  { %v269_v33 = vadd.f32 %v265_v32, %v249_v31 }
 0x1cb   :  { %4657 = vtanh.f32 %v269_v33  ;;  %v393_v3 = vrot.slane %v269_v33, 7 }
 0x1cc   :  { %v263_v35 = vpop.permute.xlu1 %262 }
 0x1cd   :  { %v268_v36 = vadd.f32 %v263_v35, %v248_v34 }
 0x1cf   :  { %4659 = vtanh.f32 %v268_v36  ;;  %v392_v8 = vrot.slane %v268_v36, 7 }
 0x1d8   :  { %v4658_v37 = vpop.eup %4657 }
 0x1d9   :  { %276 = vrot.lane.b32.xlu0 %v4658_v37, %s5043_s25 }
 0x1dc   :  { %v4660_v38 = vpop.eup %4659 }
 0x1dd   :  { %274 = vrot.lane.b32.xlu1 %v4660_v38, %s5043_s25 }
 0x24b   :  { %v277_v39 = vpop.permute.xlu0 %276 }
 0x24c   :  { %v5202_v40 = vmul.f32 %v4654_v25, %v277_v39 }
 0x24e   :  { %v293_v42 = vrot.slane %v5202_v40, 7 }
 0x24f   :  { %v275_v41 = vpop.permute.xlu1 %274 }
 0x250   :  { %v5205_v43 = vmul.f32 %v4656_v28, %v275_v41 }
 0x252   :  { %v295_v44 = vsel %vm294_vm2, %v293_v42, %v5205_v43 }
 0x253   :  { %296 = vrot.lane.b32.xlu0 %v295_v44, %s5044_s26 }
 0x2c5   :  { %v297_v45 = vpop.permute.xlu0 %296 }
 0x2c6   :  { %4433 = vmatmul.mubr.msk.f32.vlgmr.msra.gmra.mxu0 %vm63_vm1, %v297_v45 }
 0x2c7   :  { %4443 = vmatpush3.msra.mxu0 %v5143_v2  ;;  %4446 = vmatprep.mubr.msk.f32.mxu0 %vm5040_vm0, %v5039_v0 }
 0x2c8   :  { %4444 = vmatprep.subr.mxu0 %v5039_v0 }
 0x2c9   :  { %4445 = vmatpush3.msra.mxu0 %v5154_v4 }
 0x2ca   :  { %4456 = vmatprep.subr.mxu0 %v5039_v0 }
 0x386   :  { %v366_v46 = vpop.f32.mrf.mxu0 }
 0x387   :  { %v371_v47 = vrot.slane %v366_v46, 7  ;;  %v375_v48 = vadd.f32 %v366_v46, %v5190_v11 }
 0x388   :  { %v4434_v49 = vpop.f32.mrf.mxu0 }
 0x389   :  { %v374_v50 = vadd.f32 %v371_v47, %v5192_v14  ;;  %4661 = vtanh.f32 %v375_v48  ;;  %v4234_v53 = vmul.f32 -1.442695, %v375_v48 }
 0x38b   :  { %4663 = vtanh.f32 %v374_v50  ;;  %v4233_v54 = vmul.f32 -1.442695, %v374_v50 }
 0x38c   :  { %4665 = vpow2.f32 %v4234_v53 }
 0x38d   :  { %4667 = vpow2.f32 %v4233_v54 }
 0x396   :  { %v4662_v51 = vpop.eup %4661 }
 0x397   :  { %402 = vrot.lane.b32.xlu0 %v4662_v51, %s5041_s24 }
 0x398   :  { %v4664_v52 = vpop.eup %4663 }
 0x399   :  { %400 = vrot.lane.b32.xlu1 %v4664_v52, %s5041_s24  ;;  %v4666_v55 = vpop.eup %4665 }
 0x39a   :  { %v4668_v56 = vpop.eup %4667  ;;  %v383_v57 = vadd.f32 1.0, %v4666_v55 }
 0x39b   :  { %v382_v58 = vadd.f32 1.0, %v4668_v56 }
 0x39c   :  { %4669 = vrcp.f32 %v383_v57 }
 0x39d   :  { %4671 = vrcp.f32 %v382_v58 }
 0x3a9   :  { %v4670_v59 = vpop.eup %4669 }
 0x3aa   :  { %v4672_v62 = vpop.eup %4671  ;;  %v397_v7 = vmul.f32 %v4670_v59, %v393_v3 }
 0x3ab   :  { %v396_v12 = vmul.f32 %v4672_v62, %v392_v8 }
 0x409   :  { %v403_v60 = vpop.permute.xlu0 %402 }
 0x40a   :  { %v407_v61 = vmul.f32 %v4670_v59, %v403_v60 }
 0x40b   :  { %v401_v63 = vpop.permute.xlu1 %400 }
 0x40c   :  { %412 = vrot.lane.b32.xlu0 %v407_v61, %s5042_s3  ;;  %v406_v1 = vmul.f32 %v4672_v62, %v401_v63 }
 0x40e   :  { %410 = vrot.lane.b32.xlu1 %v406_v1, %s5042_s3 }
 0x47e   :  { %v413_v9 = vpop.permute.xlu0 %412 }
 0x47f   :  { %v417_v10 = vadd.f32 %v413_v9, %v397_v7 }
 0x480   :  { %v411_v13 = vpop.permute.xlu1 %410 }
 0x481   :  { %4673 = vtanh.f32 %v417_v10  ;;  %v416_v15 = vadd.f32 %v411_v13, %v396_v12  ;;  %v541_v48 = vrot.slane %v417_v10, 7 }
 0x483   :  { %4675 = vtanh.f32 %v416_v15  ;;  %v540_v47 = vrot.slane %v416_v15, 7 }
 0x48e   :  { %v4674_v16 = vpop.eup %4673 }
 0x48f   :  { %424 = vrot.lane.b32.xlu0 %v4674_v16, %s5043_s25 }
 0x490   :  { %v4676_v17 = vpop.eup %4675 }
 0x491   :  { %422 = vrot.lane.b32.xlu1 %v4676_v17, %s5043_s25 }
 0x501   :  { %v425_v18 = vpop.permute.xlu0 %424 }
 0x502   :  { %v5227_v21 = vmul.f32 %v4670_v59, %v425_v18 }
 0x503   :  { %v423_v19 = vpop.permute.xlu1 %422 }
 0x504   :  { %v5225_v20 = vmul.f32 %v4672_v62, %v423_v19 }
 0x506   :  { %v441_v22 = vrot.slane %v5225_v20, 1 }
 0x508   :  { %v442_v23 = vsel %vm294_vm2, %v5227_v21, %v441_v22 }
 0x509   :  { %443 = vrot.lane.b32.xlu1 %v442_v23, %s5044_s26 }
 0x57b   :  { %v444_v24 = vpop.permute.xlu1 %443 }
 0x57c   :  { %4440 = vmatmul.mubr.msk.f32.vlgmr.msra.gmra.mxu1 %vm63_vm1, %v444_v24 }
 0x57d   :  { %4450 = vmatpush3.msra.mxu1 %v5143_v2  ;;  %4453 = vmatprep.mubr.msk.f32.mxu1 %vm5040_vm0, %v5039_v0 }
 0x57e   :  { %4451 = vmatprep.subr.mxu1 %v5039_v0 }
 0x57f   :  { %4452 = vmatpush3.msra.mxu1 %v5154_v4 }
 0x580   :  { %4463 = vmatprep.subr.mxu1 %v5039_v0 }
 0x63c   :  { %v513_v25 = vpop.f32.mrf.mxu1 }
 0x63d   :  { %v518_v26 = vrot.slane %v513_v25, 6  ;;  %v519_v27 = vrot.slane %v513_v25, 7 }
 0x63e   :  { %v4441_v28 = vpop.f32.mrf.mxu1 }
 0x63f   :  { %v522_v29 = vadd.f32 %v518_v26, %v5192_v14  ;;  %v523_v30 = vadd.f32 %v519_v27, %v5190_v11 }
 0x641   :  { %4677 = vtanh.f32 %v522_v29  ;;  %v4236_v33 = vmul.f32 -1.442695, %v522_v29  ;;  %v4237_v34 = vmul.f32 -1.442695, %v523_v30 }
 0x642   :  { %4679 = vtanh.f32 %v523_v30 }
 0x643   :  { %4681 = vpow2.f32 %v4236_v33 }
 0x644   :  { %4683 = vpow2.f32 %v4237_v34 }
 0x64e   :  { %v4678_v31 = vpop.eup %4677 }
 0x64f   :  { %v4680_v32 = vpop.eup %4679  ;;  %548 = vrot.lane.b32.xlu0 %v4678_v31, %s5041_s24 }
 0x650   :  { %550 = vrot.lane.b32.xlu1 %v4680_v32, %s5041_s24  ;;  %v4682_v35 = vpop.eup %4681 }
 0x651   :  { %v4684_v36 = vpop.eup %4683  ;;  %v530_v37 = vadd.f32 1.0, %v4682_v35 }
 0x652   :  { %v531_v38 = vadd.f32 1.0, %v4684_v36 }
 0x653   :  { %4685 = vrcp.f32 %v530_v37 }
 0x654   :  { %4687 = vrcp.f32 %v531_v38 }
 0x660   :  { %v4686_v39 = vpop.eup %4685 }
 0x661   :  { %v4688_v42 = vpop.eup %4687  ;;  %v544_v49 = vmul.f32 %v4686_v39, %v540_v47 }
 0x662   :  { %v545_v50 = vmul.f32 %v4688_v42, %v541_v48 }
 0x6c1   :  { %v549_v41 = vpop.permute.xlu0 %548 }
 0x6c2   :  { %v551_v44 = vpop.permute.xlu1 %550  ;;  %v554_v45 = vmul.f32 %v4686_v39, %v549_v41 }
 0x6c3   :  { %v555_v46 = vmul.f32 %v4688_v42, %v551_v44 }
 0x6c4   :  { %558 = vrot.lane.b32.xlu0 %v554_v45, %s5042_s3 }
 0x6c5   :  { %560 = vrot.lane.b32.xlu1 %v555_v46, %s5042_s3 }
 0x736   :  { %v559_v51 = vpop.permute.xlu0 %558 }
 0x737   :  { %v561_v52 = vpop.permute.xlu1 %560  ;;  %v564_v53 = vadd.f32 %v559_v51, %v544_v49 }
 0x738   :  { %v565_v54 = vadd.f32 %v561_v52, %v545_v50 }
 0x739   :  { %4689 = vtanh.f32 %v564_v53  ;;  %v689_v30 = vrot.slane %v564_v53, 7 }
 0x73a   :  { %4691 = vtanh.f32 %v565_v54  ;;  %v690_v31 = vrot.slane %v565_v54, 7 }
 0x746   :  { %v4690_v55 = vpop.eup %4689 }
 0x747   :  { %v4692_v56 = vpop.eup %4691  ;;  %570 = vrot.lane.b32.xlu0 %v4690_v55, %s5043_s25 }
 0x748   :  { %572 = vrot.lane.b32.xlu1 %v4692_v56, %s5043_s25 }
 0x7b9   :  { %v571_v57 = vpop.permute.xlu0 %570 }
 0x7ba   :  { %v573_v58 = vpop.permute.xlu1 %572  ;;  %v5248_v59 = vmul.f32 %v4686_v39, %v571_v57 }
 0x7bb   :  { %v5250_v60 = vmul.f32 %v4688_v42, %v573_v58 }
 0x7bc   :  { %v589_v61 = vrot.slane %v5248_v59, 2 }
 0x7bd   :  { %v590_v62 = vrot.slane %v5250_v60, 1 }
 0x7bf   :  { %v591_v63 = vsel %vm294_vm2, %v590_v62, %v589_v61 }
 0x7c0   :  { %592 = vrot.lane.b32.xlu0 %v591_v63, %s5044_s26 }
 0x832   :  { %v593_v1 = vpop.permute.xlu0 %592 }
 0x833   :  { %4447 = vmatmul.mubr.msk.f32.vlgmr.msra.gmra.mxu0 %vm63_vm1, %v593_v1 }
 0x834   :  { %4457 = vmatpush3.msra.mxu0 %v5143_v2  ;;  %4460 = vmatprep.mubr.msk.f32.mxu0 %vm5040_vm0, %v5039_v0 }
 0x835   :  { %4458 = vmatprep.subr.mxu0 %v5039_v0 }
 0x836   :  { %4459 = vmatpush3.msra.mxu0 %v5154_v4 }
 0x837   :  { %4470 = vmatprep.subr.mxu0 %v5039_v0 }
 0x8f3   :  { %v662_v3 = vpop.f32.mrf.mxu0 }
 0x8f4   :  { %v667_v7 = vrot.slane %v662_v3, 5  ;;  %v668_v8 = vrot.slane %v662_v3, 6 }
 0x8f5   :  { %v4448_v9 = vpop.f32.mrf.mxu0 }
 0x8f6   :  { %v671_v10 = vadd.f32 %v667_v7, %v5192_v14  ;;  %v672_v12 = vadd.f32 %v668_v8, %v5190_v11 }
 0x8f8   :  { %4693 = vtanh.f32 %v671_v10  ;;  %v4239_v16 = vmul.f32 -1.442695, %v671_v10  ;;  %v4240_v17 = vmul.f32 -1.442695, %v672_v12 }
 0x8f9   :  { %4695 = vtanh.f32 %v672_v12 }
 0x8fa   :  { %4697 = vpow2.f32 %v4239_v16 }
 0x8fb   :  { %4699 = vpow2.f32 %v4240_v17 }
 0x905   :  { %v4694_v13 = vpop.eup %4693 }
 0x906   :  { %v4696_v15 = vpop.eup %4695  ;;  %697 = vrot.lane.b32.xlu1 %v4694_v13, %s5041_s24 }
 0x907   :  { %699 = vrot.lane.b32.xlu0 %v4696_v15, %s5041_s24  ;;  %v4698_v18 = vpop.eup %4697 }
 0x908   :  { %v4700_v19 = vpop.eup %4699  ;;  %v679_v22 = vadd.f32 1.0, %v4698_v18 }
 0x909   :  { %v680_v23 = vadd.f32 1.0, %v4700_v19 }
 0x90a   :  { %4701 = vrcp.f32 %v679_v22 }
 0x90b   :  { %4703 = vrcp.f32 %v680_v23 }
 0x917   :  { %v4702_v24 = vpop.eup %4701 }
 0x918   :  { %v4704_v26 = vpop.eup %4703  ;;  %v693_v32 = vmul.f32 %v4702_v24, %v689_v30 }
 0x919   :  { %v694_v33 = vmul.f32 %v4704_v26, %v690_v31 }
 0x978   :  { %v698_v25 = vpop.permute.xlu1 %697 }
 0x979   :  { %v700_v27 = vpop.permute.xlu0 %699  ;;  %v703_v28 = vmul.f32 %v4702_v24, %v698_v25 }
 0x97a   :  { %v704_v29 = vmul.f32 %v4704_v26, %v700_v27 }
 0x97b   :  { %707 = vrot.lane.b32.xlu1 %v703_v28, %s5042_s3 }
 0x97c   :  { %709 = vrot.lane.b32.xlu0 %v704_v29, %s5042_s3 }
 0x9ed   :  { %v708_v34 = vpop.permute.xlu1 %707 }
 0x9ee   :  { %v710_v35 = vpop.permute.xlu0 %709  ;;  %v713_v36 = vadd.f32 %v708_v34, %v693_v32 }
 0x9ef   :  { %v714_v37 = vadd.f32 %v710_v35, %v694_v33 }
 0x9f0   :  { %4705 = vtanh.f32 %v713_v36  ;;  %v838_v15 = vrot.slane %v713_v36, 7 }
 0x9f1   :  { %4707 = vtanh.f32 %v714_v37  ;;  %v839_v16 = vrot.slane %v714_v37, 7 }
 0x9fd   :  { %v4706_v38 = vpop.eup %4705 }
 0x9fe   :  { %v4708_v39 = vpop.eup %4707  ;;  %719 = vrot.lane.b32.xlu1 %v4706_v38, %s5043_s25 }
 0x9ff   :  { %721 = vrot.lane.b32.xlu0 %v4708_v39, %s5043_s25 }
 0xa70   :  { %v720_v41 = vpop.permute.xlu1 %719 }
 0xa71   :  { %v722_v42 = vpop.permute.xlu0 %721  ;;  %v5271_v44 = vmul.f32 %v4702_v24, %v720_v41 }
 0xa72   :  { %v5273_v45 = vmul.f32 %v4704_v26, %v722_v42 }
 0xa73   :  { %v738_v46 = vrot.slane %v5271_v44, 3 }
 0xa74   :  { %v739_v47 = vrot.slane %v5273_v45, 2 }
 0xa76   :  { %v740_v48 = vsel %vm294_vm2, %v739_v47, %v738_v46 }
 0xa77   :  { %741 = vrot.lane.b32.xlu1 %v740_v48, %s5044_s26 }
 0xae9   :  { %v742_v49 = vpop.permute.xlu1 %741 }
 0xaea   :  { %4454 = vmatmul.mubr.msk.f32.vlgmr.msra.gmra.mxu1 %vm63_vm1, %v742_v49 }
 0xaeb   :  { %4464 = vmatpush3.msra.mxu1 %v5143_v2  ;;  %4467 = vmatprep.mubr.msk.f32.mxu1 %vm5040_vm0, %v5039_v0 }
 0xaec   :  { %4465 = vmatprep.subr.mxu1 %v5039_v0 }
 0xaed   :  { %4466 = vmatpush3.msra.mxu1 %v5154_v4 }
 0xbaa   :  { %v811_v50 = vpop.f32.mrf.mxu1 }
 0xbab   :  { %v816_v51 = vrot.slane %v811_v50, 4  ;;  %v817_v52 = vrot.slane %v811_v50, 5 }
 0xbac   :  { %v4455_v53 = vpop.f32.mrf.mxu1 }
 0xbad   :  { %v820_v54 = vadd.f32 %v816_v51, %v5192_v14  ;;  %v821_v55 = vadd.f32 %v817_v52, %v5190_v11 }
 0xbaf   :  { %4709 = vtanh.f32 %v820_v54  ;;  %v4242_v58 = vmul.f32 -1.442695, %v820_v54  ;;  %v4243_v61 = vmul.f32 -1.442695, %v821_v55 }
 0xbb0   :  { %4711 = vtanh.f32 %v821_v55 }
 0xbb1   :  { %4713 = vpow2.f32 %v4242_v58 }
 0xbb2   :  { %4715 = vpow2.f32 %v4243_v61 }
 0xbbc   :  { %v4710_v56 = vpop.eup %4709 }
 0xbbd   :  { %v4712_v57 = vpop.eup %4711  ;;  %846 = vrot.lane.b32.xlu0 %v4710_v56, %s5041_s24 }
 0xbbe   :  { %848 = vrot.lane.b32.xlu1 %v4712_v57, %s5041_s24  ;;  %v4714_v62 = vpop.eup %4713 }
 0xbbf   :  { %v4716_v63 = vpop.eup %4715  ;;  %v828_v1 = vadd.f32 1.0, %v4714_v62 }
 0xbc0   :  { %v829_v3 = vadd.f32 1.0, %v4716_v63 }
 0xbc1   :  { %4717 = vrcp.f32 %v828_v1 }
 0xbc2   :  { %4719 = vrcp.f32 %v829_v3 }
 0xbce   :  { %v4718_v7 = vpop.eup %4717 }
 0xbcf   :  { %v4720_v9 = vpop.eup %4719  ;;  %v842_v17 = vmul.f32 %v4718_v7, %v838_v15 }
 0xbd0   :  { %v843_v18 = vmul.f32 %v4720_v9, %v839_v16 }
 0xc2f   :  { %v847_v8 = vpop.permute.xlu0 %846 }
 0xc30   :  { %v849_v10 = vpop.permute.xlu1 %848  ;;  %v852_v12 = vmul.f32 %v4718_v7, %v847_v8 }
 0xc31   :  { %v853_v13 = vmul.f32 %v4720_v9, %v849_v10 }
 0xc32   :  { %856 = vrot.lane.b32.xlu0 %v852_v12, %s5042_s3 }
 0xc33   :  { %858 = vrot.lane.b32.xlu1 %v853_v13, %s5042_s3 }
 0xca4   :  { %v857_v19 = vpop.permute.xlu0 %856 }
 0xca5   :  { %v859_v22 = vpop.permute.xlu1 %858  ;;  %v862_v23 = vadd.f32 %v857_v19, %v842_v17 }
 0xca6   :  { %v863_v24 = vadd.f32 %v859_v22, %v843_v18 }
 0xca7   :  { %4721 = vtanh.f32 %v862_v23  ;;  %v987_v57 = vrot.slane %v862_v23, 7 }
 0xca8   :  { %4723 = vtanh.f32 %v863_v24  ;;  %v988_v58 = vrot.slane %v863_v24, 7 }
 0xcb4   :  { %v4722_v25 = vpop.eup %4721 }
 0xcb5   :  { %v4724_v26 = vpop.eup %4723  ;;  %868 = vrot.lane.b32.xlu0 %v4722_v25, %s5043_s25 }
 0xcb6   :  { %870 = vrot.lane.b32.xlu1 %v4724_v26, %s5043_s25 }
 0xd27   :  { %v869_v27 = vpop.permute.xlu0 %868 }
 0xd28   :  { %v871_v28 = vpop.permute.xlu1 %870  ;;  %v5293_v29 = vmul.f32 %v4718_v7, %v869_v27 }
 0xd29   :  { %v5295_v30 = vmul.f32 %v4720_v9, %v871_v28 }
 0xd2a   :  { %v887_v31 = vrot.slane %v5293_v29, 4 }
 0xd2b   :  { %v888_v32 = vrot.slane %v5295_v30, 3 }
 0xd2d   :  { %v889_v33 = vsel %vm294_vm2, %v888_v32, %v887_v31 }
 0xd2e   :  { %890 = vrot.lane.b32.xlu0 %v889_v33, %s5044_s26 }
 0xda0   :  { %v891_v34 = vpop.permute.xlu0 %890 }
 0xda1   :  { %4461 = vmatmul.mubr.msk.f32.vlgmr.msra.gmra.mxu0 %vm63_vm1, %v891_v34 }
 0xda2   :  { %4471 = vmatpush3.msra.mxu0 %v5143_v2  ;;  %4474 = vmatprep.mubr.msk.f32.mxu0 %vm5040_vm0, %v5039_v0 }
 0xda3   :  { %4472 = vmatprep.subr.mxu0 %v5039_v0 }
 0xda4   :  { %4473 = vmatpush3.msra.mxu0 %v5154_v4 }
 0xda5   :  { %4484 = vmatprep.subr.mxu0 %v5039_v0 }
 0xe61   :  { %v960_v35 = vpop.f32.mrf.mxu0 }
 0xe62   :  { %v965_v36 = vrot.slane %v960_v35, 3  ;;  %v966_v37 = vrot.slane %v960_v35, 4 }
 0xe63   :  { %v4462_v38 = vpop.f32.mrf.mxu0 }
 0xe64   :  { %v969_v39 = vadd.f32 %v965_v36, %v5192_v14  ;;  %v970_v41 = vadd.f32 %v966_v37, %v5190_v11 }
 0xe66   :  { %4725 = vtanh.f32 %v969_v39  ;;  %v4245_v46 = vmul.f32 -1.442695, %v969_v39  ;;  %v4246_v4 = vmul.f32 -1.442695, %v970_v41 }
 0xe67   :  { %4727 = vtanh.f32 %v970_v41 }
 0xe68   :  { %4729 = vpow2.f32 %v4245_v46 }
 0xe69   :  { %4731 = vpow2.f32 %v4246_v4 }
 0xe73   :  { %v4726_v2 = vpop.eup %4725 }
 0xe74   :  { %v4728_v42 = vpop.eup %4727  ;;  %995 = vrot.lane.b32.xlu1 %v4726_v2, %s5041_s24 }
 0xe75   :  { %997 = vrot.lane.b32.xlu0 %v4728_v42, %s5041_s24  ;;  %v4730_v47 = vpop.eup %4729 }
 0xe76   :  { %v4732_v48 = vpop.eup %4731  ;;  %v977_v49 = vadd.f32 1.0, %v4730_v47 }
 0xe77   :  { %v978_v50 = vadd.f32 1.0, %v4732_v48 }
 0xe78   :  { %4733 = vrcp.f32 %v977_v49 }
 0xe79   :  { %4735 = vrcp.f32 %v978_v50 }
 0xe85   :  { %v4734_v51 = vpop.eup %4733 }
 0xe86   :  { %v4736_v53 = vpop.eup %4735  ;;  %v991_v61 = vmul.f32 %v4734_v51, %v987_v57  ;;  %v5355_v57 = vld [vmem:[%s5940_s5 + $0x8] sm:$0xff] }
 0xe87   :  { %v992_v62 = vmul.f32 %v4736_v53, %v988_v58 }
 0xee6   :  { %v996_v52 = vpop.permute.xlu1 %995 }
 0xee7   :  { %v998_v54 = vpop.permute.xlu0 %997  ;;  %v1001_v55 = vmul.f32 %v4734_v51, %v996_v52 }
 0xee8   :  { %v1002_v56 = vmul.f32 %v4736_v53, %v998_v54  ;;  %v1335_v54 = vld [vmem:[%s5939_s4] sm:$0xff] }
 0xee9   :  { %1005 = vrot.lane.b32.xlu1 %v1001_v55, %s5042_s3 }
 0xeea   :  { %1007 = vrot.lane.b32.xlu0 %v1002_v56, %s5042_s3 }
 0xf5b   :  { %v1006_v63 = vpop.permute.xlu1 %1005 }
 0xf5c   :  { %v1008_v1 = vpop.permute.xlu0 %1007  ;;  %v1011_v3 = vadd.f32 %v1006_v63, %v991_v61 }
 0xf5d   :  { %v1012_v7 = vadd.f32 %v1008_v1, %v992_v62 }
 0xf5e   :  { %4737 = vtanh.f32 %v1011_v3  ;;  %v1136_v46 = vrot.slane %v1011_v3, 7 }
 0xf5f   :  { %4739 = vtanh.f32 %v1012_v7  ;;  %v1137_v4 = vrot.slane %v1012_v7, 7 }
 0xf6b   :  { %v4738_v8 = vpop.eup %4737 }
 0xf6c   :  { %v4740_v9 = vpop.eup %4739  ;;  %1017 = vrot.lane.b32.xlu1 %v4738_v8, %s5043_s25 }
 0xf6d   :  { %1019 = vrot.lane.b32.xlu0 %v4740_v9, %s5043_s25 }
 0xfde   :  { %v1018_v10 = vpop.permute.xlu1 %1017 }
 0xfdf   :  { %v1020_v12 = vpop.permute.xlu0 %1019  ;;  %v5316_v13 = vmul.f32 %v4734_v51, %v1018_v10 }
 0xfe0   :  { %v5318_v15 = vmul.f32 %v4736_v53, %v1020_v12  ;;  %v1336_v53 = vld [vmem:[%s5939_s4 + $0x8] sm:$0xff]  ;;  %v4255_v12 = vld [vmem:[%s5941_s6] ss:$0 sm:$0xff] }
 0xfe1   :  { %v1036_v16 = vrot.slane %v5316_v13, 5  ;;  %4477 = vmatprep.subr.mxu1 %v1336_v53 }
 0xfe2   :  { %v1037_v17 = vrot.slane %v5318_v15, 4 }
 0xfe4   :  { %v1038_v18 = vsel %vm294_vm2, %v1037_v17, %v1036_v16 }
 0xfe5   :  { %1039 = vrot.lane.b32.xlu1 %v1038_v18, %s5044_s26 }
0x1057   :  { %v1040_v19 = vpop.permute.xlu1 %1039 }
0x1058   :  { %4468 = vmatmul.mubr.msk.f32.vlgmr.msra.gmra.mxu1 %vm63_vm1, %v1040_v19 }
0x1059   :  { %4481 = vmatprep.mubr.msk.f32.mxu1 %vm63_vm1, %v5159_v5  ;;  %4478 = vmatpush3.msra.mxu1 %v1336_v53 }
0x105a   :  { %4479 = vmatprep.subr.mxu1 %v1335_v54 }
0x105b   :  { %4480 = vmatpush3.msra.mxu1 %v1335_v54 }
0x105c   :  { %4482 = vmatmul.mubr.msk.f32.vlgmr.msra.gmra.mxu1 %vm63_vm1, %v5165_v6  ;;  %4491 = vmatprep.subr.mxu1 %v5039_v0  ;;  %v5361_v6 = vld [vmem:[%s5940_s5] sm:$0xff] }
0x105d   :  { %4495 = vmatprep.mubr.msk.f32.mxu1 %vm5040_vm0, %v5039_v0  ;;  %4492 = vmatpush3.msra.mxu1 %v5355_v57 }
0x105e   :  { %4493 = vmatprep.subr.mxu1 %v5039_v0 }
0x105f   :  { %4494 = vmatpush3.msra.mxu1 %v5361_v6 }
0x1060   :  { %4505 = vmatprep.subr.mxu1 %v5039_v0 }
0x1118   :  { %v1109_v22 = vpop.f32.mrf.mxu1 }
0x1119   :  { %v1114_v23 = vrot.slane %v1109_v22, 2  ;;  %v1115_v24 = vrot.slane %v1109_v22, 3 }
0x111a   :  { %v4469_v25 = vpop.f32.mrf.mxu1 }
0x111b   :  { %v1118_v26 = vadd.f32 %v1114_v23, %v5192_v14  ;;  %v1119_v27 = vadd.f32 %v1115_v24, %v5190_v11 }
0x111c   :  { %v4483_v9 = vpop.f32.mrf.mxu1 }
0x111d   :  { %4741 = vtanh.f32 %v1118_v26  ;;  %v4248_v32 = vmul.f32 -1.442695, %v1118_v26  ;;  %v4249_v33 = vmul.f32 -1.442695, %v1119_v27  ;;  %v5395_v23 = vadd.f32 %v4483_v9, %v4255_v12 }
0x111e   :  { %4743 = vtanh.f32 %v1119_v27  ;;  %v1403_v17 = vpop.f32.mrf.mxu1 }
0x111f   :  { %4745 = vpow2.f32 %v4248_v32  ;;  %v5393_v19 = vadd.f32 %v4255_v12, %v1403_v17 }
0x1120   :  { %4747 = vpow2.f32 %v4249_v33 }
0x112a   :  { %v4742_v28 = vpop.eup %4741 }
0x112b   :  { %v4744_v31 = vpop.eup %4743  ;;  %1144 = vrot.lane.b32.xlu0 %v4742_v28, %s5041_s24 }
0x112c   :  { %1146 = vrot.lane.b32.xlu1 %v4744_v31, %s5041_s24  ;;  %v4746_v5 = vpop.eup %4745 }
0x112d   :  { %v4748_v34 = vpop.eup %4747  ;;  %v1126_v35 = vadd.f32 1.0, %v4746_v5 }
0x112e   :  { %v1127_v36 = vadd.f32 1.0, %v4748_v34 }
0x112f   :  { %4749 = vrcp.f32 %v1126_v35 }
0x1130   :  { %4751 = vrcp.f32 %v1127_v36 }
0x113c   :  { %v4750_v37 = vpop.eup %4749 }
0x113d   :  { %v4752_v39 = vpop.eup %4751  ;;  %v1140_v47 = vmul.f32 %v4750_v37, %v1136_v46 }
0x113e   :  { %v1141_v48 = vmul.f32 %v4752_v39, %v1137_v4 }
0x119d   :  { %v1145_v38 = vpop.permute.xlu0 %1144 }
0x119e   :  { %v1147_v41 = vpop.permute.xlu1 %1146  ;;  %v1150_v2 = vmul.f32 %v4750_v37, %v1145_v38 }
0x119f   :  { %v1151_v42 = vmul.f32 %v4752_v39, %v1147_v41 }
0x11a0   :  { %1154 = vrot.lane.b32.xlu0 %v1150_v2, %s5042_s3 }
0x11a1   :  { %1156 = vrot.lane.b32.xlu1 %v1151_v42, %s5042_s3 }
0x1212   :  { %v1155_v49 = vpop.permute.xlu0 %1154 }
0x1213   :  { %v1157_v50 = vpop.permute.xlu1 %1156  ;;  %v5333_v51 = vadd.f32 %v1155_v49, %v1140_v47 }
0x1214   :  { %v5335_v52 = vadd.f32 %v1157_v50, %v1141_v48 }
0x1215   :  { %4753 = vtanh.f32 %v5333_v51 }
0x1216   :  { %4755 = vtanh.f32 %v5335_v52 }
0x1222   :  { %v4754_v55 = vpop.eup %4753 }
0x1223   :  { %v4756_v56 = vpop.eup %4755  ;;  %1166 = vrot.lane.b32.xlu0 %v4754_v55, %s5043_s25 }
0x1224   :  { %1168 = vrot.lane.b32.xlu1 %v4756_v56, %s5043_s25 }
0x1295   :  { %v1167_v58 = vpop.permute.xlu0 %1166 }
0x1296   :  { %v1169_v61 = vpop.permute.xlu1 %1168  ;;  %v5366_v62 = vmul.f32 %v4750_v37, %v1167_v58 }
0x1297   :  { %v5368_v63 = vmul.f32 %v4752_v39, %v1169_v61 }
0x1298   :  { %v1185_v1 = vrot.slane %v5366_v62, 6 }
0x1299   :  { %v1186_v3 = vrot.slane %v5368_v63, 5 }
0x129b   :  { %v1187_v7 = vsel %vm294_vm2, %v1186_v3, %v1185_v1 }
0x129c   :  { %1188 = vrot.lane.b32.xlu0 %v1187_v7, %s5044_s26 }
0x130e   :  { %v1189_v8 = vpop.permute.xlu0 %1188 }
0x130f   :  { %4475 = vmatmul.mubr.msk.f32.vlgmr.msra.gmra.mxu0 %vm63_vm1, %v1189_v8 }
0x1310   :  { %4485 = vmatpush3.msra.mxu0 %v5355_v57  ;;  %4488 = vmatprep.mubr.msk.f32.mxu0 %vm5040_vm0, %v5039_v0 }
0x1311   :  { %4486 = vmatprep.subr.mxu0 %v5039_v0 }
0x1312   :  { %4487 = vmatpush3.msra.mxu0 %v5361_v6 }
0x1313   :  { %4489 = vmatmul.mubr.f32.vlgmr.msra.gmra.mxu0 %v5039_v0  ;;  %4498 = vmatprep.subr.mxu0 %v5039_v0 }
0x1314   :  { %4499 = vmatpush3.msra.mxu0 %v5355_v57  ;;  %4502 = vmatprep.mubr.msk.f32.mxu0 %vm5040_vm0, %v5039_v0 }
0x1315   :  { %4500 = vmatprep.subr.mxu0 %v5039_v0 }
0x1316   :  { %4501 = vmatpush3.msra.mxu0 %v5361_v6 }
0x1317   :  { %4512 = vmatprep.subr.mxu0 %v5039_v0 }
0x13cf   :  { %v5388_v10 = vpop.f32.mrf.mxu0 }
0x13d1   :  { %v4476_v16 = vpop.f32.mrf.mxu0 }
0x13d3   :  { %v1488_v18 = vpop.f32.mrf.mxu0 }
0x13d4   :  { %v1493_v22 = vrot.slane %v1488_v18, 1  ;;  %v1494_v24 = vrot.slane %v1488_v18, 2 }
0x13d5   :  { %v4490_v25 = vpop.f32.mrf.mxu0 }
0x13d6   :  { %v1497_v26 = vadd.f32 %v1493_v22, %v5393_v19  ;;  %v1498_v27 = vadd.f32 %v1494_v24, %v5395_v23 }
0x13d8   :  { %4757 = vtanh.f32 %v1497_v26  ;;  %v4256_v32 = vmul.f32 -1.442695, %v1497_v26  ;;  %v4257_v33 = vmul.f32 -1.442695, %v1498_v27 }
0x13d9   :  { %4759 = vtanh.f32 %v1498_v27 }
0x13da   :  { %4761 = vpow2.f32 %v4256_v32 }
0x13db   :  { %4763 = vpow2.f32 %v4257_v33 }
0x13e5   :  { %v4758_v28 = vpop.eup %4757 }
0x13e6   :  { %v4760_v31 = vpop.eup %4759  ;;  %1517 = vrot.lane.b32.xlu1 %v4758_v28, %s5041_s24 }
0x13e7   :  { %1519 = vrot.lane.b32.xlu0 %v4760_v31, %s5041_s24  ;;  %v4762_v5 = vpop.eup %4761 }
0x13e8   :  { %v4764_v34 = vpop.eup %4763  ;;  %v1505_v35 = vadd.f32 1.0, %v4762_v5 }
0x13e9   :  { %v1506_v36 = vadd.f32 1.0, %v4764_v34 }
0x13ea   :  { %4765 = vrcp.f32 %v1505_v35 }
0x13eb   :  { %4767 = vrcp.f32 %v1506_v36 }
0x13f7   :  { %v4766_v37 = vpop.eup %4765 }
0x13f8   :  { %v4768_v39 = vpop.eup %4767  ;;  %v1513_v46 = vmul.f32 0.0, %v4766_v37 }
0x13f9   :  { %v1514_v4 = vmul.f32 0.0, %v4768_v39 }
0x1458   :  { %v1518_v38 = vpop.permute.xlu1 %1517 }
0x1459   :  { %v1520_v41 = vpop.permute.xlu0 %1519  ;;  %v1523_v2 = vmul.f32 %v4766_v37, %v1518_v38 }
0x145a   :  { %v1524_v42 = vmul.f32 %v4768_v39, %v1520_v41 }
0x145b   :  { %1527 = vrot.lane.b32.xlu1 %v1523_v2, %s5042_s3 }
0x145c   :  { %1529 = vrot.lane.b32.xlu0 %v1524_v42, %s5042_s3 }
0x14cd   :  { %v1528_v47 = vpop.permute.xlu1 %1527 }
0x14ce   :  { %v1530_v48 = vpop.permute.xlu0 %1529  ;;  %v1533_v49 = vadd.f32 %v1528_v47, %v1513_v46 }
0x14cf   :  { %v1534_v50 = vadd.f32 %v1530_v48, %v1514_v4 }
0x14d0   :  { %4769 = vtanh.f32 %v1533_v49 }
0x14d1   :  { %4771 = vtanh.f32 %v1534_v50  ;;  %v1658_v41 = vrot.slane %v1534_v50, 1 }
0x14dd   :  { %v4770_v53 = vpop.eup %4769 }
0x14de   :  { %v4772_v54 = vpop.eup %4771  ;;  %1539 = vrot.lane.b32.xlu1 %v4770_v53, %s5043_s25 }
0x14df   :  { %1541 = vrot.lane.b32.xlu0 %v4772_v54, %s5043_s25 }
0x1550   :  { %v1540_v55 = vpop.permute.xlu1 %1539 }
0x1551   :  { %v1542_v56 = vpop.permute.xlu0 %1541  ;;  %v5405_v58 = vmul.f32 %v4766_v37, %v1540_v55 }
0x1552   :  { %v5407_v61 = vmul.f32 %v4768_v39, %v1542_v56  ;;  %v1657_v39 = vrot.slane %v1533_v49, 1 }
0x1553   :  { %v1557_v1 = vrot.slane %v5405_v58, 7 }
0x1554   :  { %v1558_v3 = vrot.slane %v5407_v61, 6 }
0x1556   :  { %v1559_v7 = vsel %vm294_vm2, %v1558_v3, %v1557_v1 }
0x1557   :  { %1560 = vrot.lane.b32.xlu1 %v1559_v7, %s5044_s26 }
0x15c9   :  { %v1561_v8 = vpop.permute.xlu1 %1560 }
0x15ca   :  { %4496 = vmatmul.mubr.msk.f32.vlgmr.msra.gmra.mxu1 %vm63_vm1, %v1561_v8 }
0x15cb   :  { %4506 = vmatpush3.msra.mxu1 %v5355_v57  ;;  %4509 = vmatprep.mubr.msk.f32.mxu1 %vm5040_vm0, %v5039_v0 }
0x15cc   :  { %4507 = vmatprep.subr.mxu1 %v5039_v0 }
0x15cd   :  { %4508 = vmatpush3.msra.mxu1 %v5361_v6 }
0x15ce   :  { %4519 = vmatprep.subr.mxu1 %v5039_v0 }
0x168a   :  { %v1630_v9 = vpop.f32.mrf.mxu1 }
0x168b   :  { %v1635_v12 = vrot.slane %v1630_v9, 2  ;;  %v1636_v16 = vrot.slane %v1630_v9, 3 }
0x168c   :  { %v4497_v17 = vpop.f32.mrf.mxu1 }
0x168d   :  { %v1639_v18 = vadd.f32 %v1635_v12, %v5393_v19  ;;  %v1640_v22 = vadd.f32 %v1636_v16, %v5395_v23 }
0x168f   :  { %4773 = vtanh.f32 %v1639_v18  ;;  %v4259_v26 = vmul.f32 -1.442695, %v1639_v18  ;;  %v4260_v27 = vmul.f32 -1.442695, %v1640_v22 }
0x1690   :  { %4775 = vtanh.f32 %v1640_v22 }
0x1691   :  { %4777 = vpow2.f32 %v4259_v26 }
0x1692   :  { %4779 = vpow2.f32 %v4260_v27 }
0x169c   :  { %v4774_v24 = vpop.eup %4773 }
0x169d   :  { %v4776_v25 = vpop.eup %4775  ;;  %1665 = vrot.lane.b32.xlu0 %v4774_v24, %s5041_s24 }
0x169e   :  { %1667 = vrot.lane.b32.xlu1 %v4776_v25, %s5041_s24  ;;  %v4778_v28 = vpop.eup %4777 }
0x169f   :  { %v4780_v31 = vpop.eup %4779  ;;  %v1647_v32 = vadd.f32 1.0, %v4778_v28 }
0x16a0   :  { %v1648_v33 = vadd.f32 1.0, %v4780_v31 }
0x16a1   :  { %4781 = vrcp.f32 %v1647_v32 }
0x16a2   :  { %4783 = vrcp.f32 %v1648_v33 }
0x16ae   :  { %v4782_v5 = vpop.eup %4781 }
0x16af   :  { %v4784_v35 = vpop.eup %4783  ;;  %v1661_v2 = vmul.f32 %v4782_v5, %v1657_v39 }
0x16b0   :  { %v1662_v42 = vmul.f32 %v4784_v35, %v1658_v41 }
0x170f   :  { %v1666_v34 = vpop.permute.xlu0 %1665 }
0x1710   :  { %v1668_v36 = vpop.permute.xlu1 %1667  ;;  %v1671_v37 = vmul.f32 %v4782_v5, %v1666_v34 }
0x1711   :  { %v1672_v38 = vmul.f32 %v4784_v35, %v1668_v36 }
0x1712   :  { %1675 = vrot.lane.b32.xlu0 %v1671_v37, %s5042_s3 }
0x1713   :  { %1677 = vrot.lane.b32.xlu1 %v1672_v38, %s5042_s3 }
0x1784   :  { %v1676_v46 = vpop.permute.xlu0 %1675 }
0x1785   :  { %v1678_v4 = vpop.permute.xlu1 %1677  ;;  %v1681_v47 = vadd.f32 %v1676_v46, %v1661_v2 }
0x1786   :  { %v1682_v48 = vadd.f32 %v1678_v4, %v1662_v42 }
0x1787   :  { %4785 = vtanh.f32 %v1681_v47  ;;  %v1805_v39 = vrot.slane %v1681_v47, 1 }
0x1788   :  { %4787 = vtanh.f32 %v1682_v48  ;;  %v1806_v41 = vrot.slane %v1682_v48, 1 }
0x1794   :  { %v4786_v53 = vpop.eup %4785 }
0x1795   :  { %v4788_v54 = vpop.eup %4787  ;;  %1687 = vrot.lane.b32.xlu0 %v4786_v53, %s5043_s25 }
0x1796   :  { %1689 = vrot.lane.b32.xlu1 %v4788_v54, %s5043_s25 }
0x1807   :  { %v1688_v55 = vpop.permute.xlu0 %1687 }
0x1808   :  { %v1690_v56 = vpop.permute.xlu1 %1689  ;;  %v5428_v1 = vmul.f32 %v4782_v5, %v1688_v55 }
0x1809   :  { %v5430_v49 = vmul.f32 %v4784_v35, %v1690_v56 }
0x180a   :  { %v1705_v50 = vrot.slane %v5428_v1, 6 }
0x180b   :  { %v1706_v3 = vrot.slane %v5430_v49, 5 }
0x180d   :  { %v1707_v7 = vsel %vm294_vm2, %v1706_v3, %v1705_v50 }
0x180e   :  { %1708 = vrot.lane.b32.xlu0 %v1707_v7, %s5044_s26 }
0x1880   :  { %v1709_v8 = vpop.permute.xlu0 %1708 }
0x1881   :  { %4503 = vmatmul.mubr.msk.f32.vlgmr.msra.gmra.mxu0 %vm63_vm1, %v1709_v8 }
0x1882   :  { %4513 = vmatpush3.msra.mxu0 %v5355_v57  ;;  %4516 = vmatprep.mubr.msk.f32.mxu0 %vm5040_vm0, %v5039_v0 }
0x1883   :  { %4514 = vmatprep.subr.mxu0 %v5039_v0 }
0x1884   :  { %4515 = vmatpush3.msra.mxu0 %v5361_v6 }
0x1885   :  { %4526 = vmatprep.subr.mxu0 %v5039_v0 }
0x1941   :  { %v1778_v9 = vpop.f32.mrf.mxu0 }
0x1942   :  { %v1783_v12 = vrot.slane %v1778_v9, 3  ;;  %v1784_v16 = vrot.slane %v1778_v9, 4 }
0x1943   :  { %v4504_v17 = vpop.f32.mrf.mxu0 }
0x1944   :  { %v1787_v18 = vadd.f32 %v1783_v12, %v5393_v19  ;;  %v1788_v22 = vadd.f32 %v1784_v16, %v5395_v23 }
0x1946   :  { %4789 = vtanh.f32 %v1787_v18  ;;  %v4262_v26 = vmul.f32 -1.442695, %v1787_v18  ;;  %v4263_v27 = vmul.f32 -1.442695, %v1788_v22 }
0x1947   :  { %4791 = vtanh.f32 %v1788_v22 }
0x1948   :  { %4793 = vpow2.f32 %v4262_v26 }
0x1949   :  { %4795 = vpow2.f32 %v4263_v27 }
0x1953   :  { %v4790_v24 = vpop.eup %4789 }
0x1954   :  { %v4792_v25 = vpop.eup %4791  ;;  %1813 = vrot.lane.b32.xlu1 %v4790_v24, %s5041_s24 }
0x1955   :  { %1815 = vrot.lane.b32.xlu0 %v4792_v25, %s5041_s24  ;;  %v4794_v28 = vpop.eup %4793 }
0x1956   :  { %v4796_v31 = vpop.eup %4795  ;;  %v1795_v32 = vadd.f32 1.0, %v4794_v28 }
0x1957   :  { %v1796_v33 = vadd.f32 1.0, %v4796_v31 }
0x1958   :  { %4797 = vrcp.f32 %v1795_v32 }
0x1959   :  { %4799 = vrcp.f32 %v1796_v33 }
0x1965   :  { %v4798_v5 = vpop.eup %4797 }
0x1966   :  { %v4800_v35 = vpop.eup %4799  ;;  %v1809_v2 = vmul.f32 %v4798_v5, %v1805_v39 }
0x1967   :  { %v1810_v42 = vmul.f32 %v4800_v35, %v1806_v41 }
0x19c6   :  { %v1814_v34 = vpop.permute.xlu1 %1813 }
0x19c7   :  { %v1816_v36 = vpop.permute.xlu0 %1815  ;;  %v1819_v37 = vmul.f32 %v4798_v5, %v1814_v34 }
0x19c8   :  { %v1820_v38 = vmul.f32 %v4800_v35, %v1816_v36 }
0x19c9   :  { %1823 = vrot.lane.b32.xlu1 %v1819_v37, %s5042_s3 }
0x19ca   :  { %1825 = vrot.lane.b32.xlu0 %v1820_v38, %s5042_s3 }
0x1a3b   :  { %v1824_v46 = vpop.permute.xlu1 %1823 }
0x1a3c   :  { %v1826_v4 = vpop.permute.xlu0 %1825  ;;  %v1829_v53 = vadd.f32 %v1824_v46, %v1809_v2 }
0x1a3d   :  { %v1830_v54 = vadd.f32 %v1826_v4, %v1810_v42 }
0x1a3e   :  { %4801 = vtanh.f32 %v1829_v53  ;;  %v1953_v2 = vrot.slane %v1829_v53, 1 }
0x1a3f   :  { %4803 = vtanh.f32 %v1830_v54  ;;  %v1954_v42 = vrot.slane %v1830_v54, 1 }
0x1a4b   :  { %v4802_v55 = vpop.eup %4801 }
0x1a4c   :  { %v4804_v56 = vpop.eup %4803  ;;  %1835 = vrot.lane.b32.xlu1 %v4802_v55, %s5043_s25 }
0x1a4d   :  { %1837 = vrot.lane.b32.xlu0 %v4804_v56, %s5043_s25 }
0x1abe   :  { %v1836_v50 = vpop.permute.xlu1 %1835 }
0x1abf   :  { %v1838_v3 = vpop.permute.xlu0 %1837  ;;  %v5451_v7 = vmul.f32 %v4798_v5, %v1836_v50 }
0x1ac0   :  { %v5453_v47 = vmul.f32 %v4800_v35, %v1838_v3 }
0x1ac1   :  { %v1853_v48 = vrot.slane %v5451_v7, 5 }
0x1ac2   :  { %v1854_v8 = vrot.slane %v5453_v47, 4 }
0x1ac4   :  { %v1855_v9 = vsel %vm294_vm2, %v1854_v8, %v1853_v48 }
0x1ac5   :  { %1856 = vrot.lane.b32.xlu1 %v1855_v9, %s5044_s26 }
0x1b37   :  { %v1857_v12 = vpop.permute.xlu1 %1856 }
0x1b38   :  { %4510 = vmatmul.mubr.msk.f32.vlgmr.msra.gmra.mxu1 %vm63_vm1, %v1857_v12 }
0x1b39   :  { %4520 = vmatpush3.msra.mxu1 %v5355_v57  ;;  %4523 = vmatprep.mubr.msk.f32.mxu1 %vm5040_vm0, %v5039_v0 }
0x1b3a   :  { %4521 = vmatprep.subr.mxu1 %v5039_v0 }
0x1b3b   :  { %4522 = vmatpush3.msra.mxu1 %v5361_v6 }
0x1b3c   :  { %4533 = vmatprep.subr.mxu1 %v5039_v0 }
0x1bf8   :  { %v1926_v16 = vpop.f32.mrf.mxu1 }
0x1bf9   :  { %v1931_v17 = vrot.slane %v1926_v16, 4  ;;  %v1932_v18 = vrot.slane %v1926_v16, 5 }
0x1bfa   :  { %v4511_v22 = vpop.f32.mrf.mxu1 }
0x1bfb   :  { %v1935_v24 = vadd.f32 %v1931_v17, %v5393_v19  ;;  %v1936_v25 = vadd.f32 %v1932_v18, %v5395_v23 }
0x1bfd   :  { %4805 = vtanh.f32 %v1935_v24  ;;  %v4265_v28 = vmul.f32 -1.442695, %v1935_v24  ;;  %v4266_v31 = vmul.f32 -1.442695, %v1936_v25 }
0x1bfe   :  { %4807 = vtanh.f32 %v1936_v25 }
0x1bff   :  { %4809 = vpow2.f32 %v4265_v28 }
0x1c00   :  { %4811 = vpow2.f32 %v4266_v31 }
0x1c0a   :  { %v4806_v26 = vpop.eup %4805 }
0x1c0b   :  { %v4808_v27 = vpop.eup %4807  ;;  %1961 = vrot.lane.b32.xlu0 %v4806_v26, %s5041_s24 }
0x1c0c   :  { %1963 = vrot.lane.b32.xlu1 %v4808_v27, %s5041_s24  ;;  %v4810_v32 = vpop.eup %4809 }
0x1c0d   :  { %v4812_v33 = vpop.eup %4811  ;;  %v1943_v5 = vadd.f32 1.0, %v4810_v32 }
0x1c0e   :  { %v1944_v34 = vadd.f32 1.0, %v4812_v33 }
0x1c0f   :  { %4813 = vrcp.f32 %v1943_v5 }
0x1c10   :  { %4815 = vrcp.f32 %v1944_v34 }
0x1c1c   :  { %v4814_v35 = vpop.eup %4813 }
0x1c1d   :  { %v4816_v37 = vpop.eup %4815  ;;  %v1957_v46 = vmul.f32 %v4814_v35, %v1953_v2 }
0x1c1e   :  { %v1958_v4 = vmul.f32 %v4816_v37, %v1954_v42 }
0x1c7d   :  { %v1962_v36 = vpop.permute.xlu0 %1961 }
0x1c7e   :  { %v1964_v38 = vpop.permute.xlu1 %1963  ;;  %v1967_v39 = vmul.f32 %v4814_v35, %v1962_v36 }
0x1c7f   :  { %v1968_v41 = vmul.f32 %v4816_v37, %v1964_v38 }
0x1c80   :  { %1971 = vrot.lane.b32.xlu0 %v1967_v39, %s5042_s3 }
0x1c81   :  { %1973 = vrot.lane.b32.xlu1 %v1968_v41, %s5042_s3 }
0x1cf2   :  { %v1972_v55 = vpop.permute.xlu0 %1971 }
0x1cf3   :  { %v1974_v56 = vpop.permute.xlu1 %1973  ;;  %v1977_v50 = vadd.f32 %v1972_v55, %v1957_v46 }
0x1cf4   :  { %v1978_v3 = vadd.f32 %v1974_v56, %v1958_v4 }
0x1cf5   :  { %4817 = vtanh.f32 %v1977_v50  ;;  %v2101_v55 = vrot.slane %v1977_v50, 1 }
0x1cf6   :  { %4819 = vtanh.f32 %v1978_v3  ;;  %v2102_v56 = vrot.slane %v1978_v3, 1 }
0x1d02   :  { %v4818_v48 = vpop.eup %4817 }
0x1d03   :  { %v4820_v8 = vpop.eup %4819  ;;  %1983 = vrot.lane.b32.xlu0 %v4818_v48, %s5043_s25 }
0x1d04   :  { %1985 = vrot.lane.b32.xlu1 %v4820_v8, %s5043_s25 }
0x1d75   :  { %v1984_v9 = vpop.permute.xlu0 %1983 }
0x1d76   :  { %v1986_v12 = vpop.permute.xlu1 %1985  ;;  %v5474_v16 = vmul.f32 %v4814_v35, %v1984_v9 }
0x1d77   :  { %v5476_v53 = vmul.f32 %v4816_v37, %v1986_v12 }
0x1d78   :  { %v2001_v54 = vrot.slane %v5474_v16, 4 }
0x1d79   :  { %v2002_v17 = vrot.slane %v5476_v53, 3 }
0x1d7b   :  { %v2003_v18 = vsel %vm294_vm2, %v2002_v17, %v2001_v54 }
0x1d7c   :  { %2004 = vrot.lane.b32.xlu0 %v2003_v18, %s5044_s26 }
0x1dee   :  { %v2005_v22 = vpop.permute.xlu0 %2004 }
0x1def   :  { %4517 = vmatmul.mubr.msk.f32.vlgmr.msra.gmra.mxu0 %vm63_vm1, %v2005_v22 }
0x1df0   :  { %4527 = vmatpush3.msra.mxu0 %v5355_v57  ;;  %4530 = vmatprep.mubr.msk.f32.mxu0 %vm5040_vm0, %v5039_v0 }
0x1df1   :  { %4528 = vmatprep.subr.mxu0 %v5039_v0 }
0x1df2   :  { %4529 = vmatpush3.msra.mxu0 %v5361_v6 }
0x1eaf   :  { %v2074_v24 = vpop.f32.mrf.mxu0 }
0x1eb0   :  { %v2079_v25 = vrot.slane %v2074_v24, 5  ;;  %v2080_v26 = vrot.slane %v2074_v24, 6 }
0x1eb1   :  { %v4518_v27 = vpop.f32.mrf.mxu0 }
0x1eb2   :  { %v2083_v28 = vadd.f32 %v2079_v25, %v5393_v19  ;;  %v2084_v31 = vadd.f32 %v2080_v26, %v5395_v23 }
0x1eb4   :  { %4821 = vtanh.f32 %v2083_v28  ;;  %v4268_v5 = vmul.f32 -1.442695, %v2083_v28  ;;  %v4269_v34 = vmul.f32 -1.442695, %v2084_v31 }
0x1eb5   :  { %4823 = vtanh.f32 %v2084_v31 }
0x1eb6   :  { %4825 = vpow2.f32 %v4268_v5 }
0x1eb7   :  { %4827 = vpow2.f32 %v4269_v34 }
0x1ec1   :  { %v4822_v32 = vpop.eup %4821 }
0x1ec2   :  { %v4824_v33 = vpop.eup %4823  ;;  %2109 = vrot.lane.b32.xlu1 %v4822_v32, %s5041_s24 }
0x1ec3   :  { %2111 = vrot.lane.b32.xlu0 %v4824_v33, %s5041_s24  ;;  %v4826_v35 = vpop.eup %4825 }
0x1ec4   :  { %v4828_v36 = vpop.eup %4827  ;;  %v2091_v37 = vadd.f32 1.0, %v4826_v35 }
0x1ec5   :  { %v2092_v38 = vadd.f32 1.0, %v4828_v36 }
0x1ec6   :  { %4829 = vrcp.f32 %v2091_v37 }
0x1ec7   :  { %4831 = vrcp.f32 %v2092_v38 }
0x1ed3   :  { %v4830_v39 = vpop.eup %4829 }
0x1ed4   :  { %v4832_v2 = vpop.eup %4831  ;;  %v2105_v48 = vmul.f32 %v4830_v39, %v2101_v55 }
0x1ed5   :  { %v2106_v8 = vmul.f32 %v4832_v2, %v2102_v56 }
0x1f34   :  { %v2110_v41 = vpop.permute.xlu1 %2109 }
0x1f35   :  { %v2112_v42 = vpop.permute.xlu0 %2111  ;;  %v2115_v46 = vmul.f32 %v4830_v39, %v2110_v41 }
0x1f36   :  { %v2116_v4 = vmul.f32 %v4832_v2, %v2112_v42 }
0x1f37   :  { %2119 = vrot.lane.b32.xlu1 %v2115_v46, %s5042_s3 }
0x1f38   :  { %2121 = vrot.lane.b32.xlu0 %v2116_v4, %s5042_s3 }
0x1fa9   :  { %v2120_v9 = vpop.permute.xlu1 %2119 }
0x1faa   :  { %v2122_v12 = vpop.permute.xlu0 %2121  ;;  %v2125_v54 = vadd.f32 %v2120_v9, %v2105_v48 }
0x1fab   :  { %v2126_v17 = vadd.f32 %v2122_v12, %v2106_v8 }
0x1fac   :  { %4833 = vtanh.f32 %v2125_v54  ;;  %v2249_v9 = vrot.slane %v2125_v54, 1 }
0x1fad   :  { %4835 = vtanh.f32 %v2126_v17  ;;  %v2250_v12 = vrot.slane %v2126_v17, 1 }
0x1fb9   :  { %v4834_v18 = vpop.eup %4833 }
0x1fba   :  { %v4836_v22 = vpop.eup %4835  ;;  %2131 = vrot.lane.b32.xlu1 %v4834_v18, %s5043_s25 }
0x1fbb   :  { %2133 = vrot.lane.b32.xlu0 %v4836_v22, %s5043_s25 }
0x202c   :  { %v2132_v24 = vpop.permute.xlu1 %2131 }
0x202d   :  { %v2134_v25 = vpop.permute.xlu0 %2133  ;;  %v5496_v26 = vmul.f32 %v4830_v39, %v2132_v24 }
0x202e   :  { %v5498_v50 = vmul.f32 %v4832_v2, %v2134_v25 }
0x202f   :  { %v2149_v3 = vrot.slane %v5496_v26, 3 }
0x2030   :  { %v2150_v27 = vrot.slane %v5498_v50, 2 }
0x2032   :  { %v2151_v28 = vsel %vm294_vm2, %v2150_v27, %v2149_v3 }
0x2033   :  { %2152 = vrot.lane.b32.xlu1 %v2151_v28, %s5044_s26 }
0x20a5   :  { %v2153_v31 = vpop.permute.xlu1 %2152 }
0x20a6   :  { %4524 = vmatmul.mubr.msk.f32.vlgmr.msra.gmra.mxu1 %vm63_vm1, %v2153_v31 }
0x20a7   :  { %4534 = vmatpush3.msra.mxu1 %v5355_v57  ;;  %4537 = vmatprep.mubr.msk.f32.mxu1 %vm5040_vm0, %v5039_v0 }
0x20a8   :  { %4535 = vmatprep.subr.mxu1 %v5039_v0 }
0x20a9   :  { %4536 = vmatpush3.msra.mxu1 %v5361_v6 }
0x2166   :  { %v2222_v32 = vpop.f32.mrf.mxu1 }
0x2167   :  { %v2227_v33 = vrot.slane %v2222_v32, 6  ;;  %v2228_v5 = vrot.slane %v2222_v32, 7 }
0x2168   :  { %v4525_v34 = vpop.f32.mrf.mxu1 }
0x2169   :  { %v2231_v35 = vadd.f32 %v2227_v33, %v5393_v19  ;;  %v2232_v36 = vadd.f32 %v2228_v5, %v5395_v23 }
0x216b   :  { %4837 = vtanh.f32 %v2231_v35  ;;  %v4271_v57 = vmul.f32 -1.442695, %v2231_v35  ;;  %v4272_v39 = vmul.f32 -1.442695, %v2232_v36 }
0x216c   :  { %4839 = vtanh.f32 %v2232_v36 }
0x216d   :  { %4841 = vpow2.f32 %v4271_v57 }
0x216e   :  { %4843 = vpow2.f32 %v4272_v39 }
0x2178   :  { %v4838_v37 = vpop.eup %4837 }
0x2179   :  { %v4840_v38 = vpop.eup %4839  ;;  %2257 = vrot.lane.b32.xlu0 %v4838_v37, %s5041_s24 }
0x217a   :  { %2259 = vrot.lane.b32.xlu1 %v4840_v38, %s5041_s24  ;;  %v4842_v6 = vpop.eup %4841 }
0x217b   :  { %v4844_v41 = vpop.eup %4843  ;;  %v2239_v2 = vadd.f32 1.0, %v4842_v6 }
0x217c   :  { %v2240_v42 = vadd.f32 1.0, %v4844_v41 }
0x217d   :  { %4845 = vrcp.f32 %v2239_v2 }
0x217e   :  { %4847 = vrcp.f32 %v2240_v42 }
0x218a   :  { %v4846_v46 = vpop.eup %4845 }
0x218b   :  { %v4848_v55 = vpop.eup %4847  ;;  %v2253_v18 = vmul.f32 %v4846_v46, %v2249_v9 }
0x218c   :  { %v2254_v22 = vmul.f32 %v4848_v55, %v2250_v12 }
0x21eb   :  { %v2258_v4 = vpop.permute.xlu0 %2257 }
0x21ec   :  { %v2260_v56 = vpop.permute.xlu1 %2259  ;;  %v2263_v48 = vmul.f32 %v4846_v46, %v2258_v4 }
0x21ed   :  { %v2264_v8 = vmul.f32 %v4848_v55, %v2260_v56 }
0x21ee   :  { %2267 = vrot.lane.b32.xlu0 %v2263_v48, %s5042_s3 }
0x21ef   :  { %2269 = vrot.lane.b32.xlu1 %v2264_v8, %s5042_s3 }
0x2260   :  { %v2268_v24 = vpop.permute.xlu0 %2267 }
0x2261   :  { %v2270_v25 = vpop.permute.xlu1 %2269  ;;  %v2273_v3 = vadd.f32 %v2268_v24, %v2253_v18 }
0x2262   :  { %v2274_v27 = vadd.f32 %v2270_v25, %v2254_v22 }
0x2263   :  { %4849 = vtanh.f32 %v2273_v3 }
0x2264   :  { %4851 = vtanh.f32 %v2274_v27  ;;  %v2397_v25 = vrot.slane %v2274_v27, 1 }
0x2270   :  { %v4850_v28 = vpop.eup %4849 }
0x2271   :  { %v4852_v31 = vpop.eup %4851  ;;  %2279 = vrot.lane.b32.xlu0 %v4850_v28, %s5043_s25  ;;  %v1263_v28 = vrot.slane %v5388_v10, 1 }
0x2272   :  { %2281 = vrot.lane.b32.xlu1 %v4852_v31, %s5043_s25 }
0x22e3   :  { %v2280_v32 = vpop.permute.xlu0 %2279 }
0x22e4   :  { %v2282_v33 = vpop.permute.xlu1 %2281  ;;  %v5518_v5 = vmul.f32 %v4846_v46, %v2280_v32  ;;  %v2396_v32 = vrot.slane %v2273_v3, 1  ;;  %v1264_v3 = vrot.slane %v5388_v10, 2 }
0x22e5   :  { %v5520_v54 = vmul.f32 %v4848_v55, %v2282_v33 }
0x22e6   :  { %v2297_v17 = vrot.slane %v5518_v5, 2 }
0x22e7   :  { %v2298_v34 = vrot.slane %v5520_v54, 1 }
0x22e9   :  { %v2299_v35 = vsel %vm294_vm2, %v2298_v34, %v2297_v17 }
0x22ea   :  { %2300 = vrot.lane.b32.xlu0 %v2299_v35, %s5044_s26  ;;  %v1267_v35 = vadd.f32 %v1263_v28, %v5192_v14  ;;  %v1268_v14 = vadd.f32 %v1264_v3, %v5190_v11 }
0x22ec   :  { %v4251_v11 = vmul.f32 -1.442695, %v1267_v35 }
0x235c   :  { %v2301_v36 = vpop.permute.xlu0 %2300 }
0x235d   :  { %4531 = vmatmul.mubr.msk.f32.vlgmr.msra.gmra.mxu0 %vm63_vm1, %v2301_v36 }
0x241d   :  { %v2370_v37 = vpop.f32.mrf.mxu0 }
0x241e   :  { %v2375_v38 = vrot.slane %v2370_v37, 7  ;;  %v2379_v57 = vadd.f32 %v2370_v37, %v5395_v23 }
0x241f   :  { %v4532_v39 = vpop.f32.mrf.mxu0 }
0x2420   :  { %v2378_v6 = vadd.f32 %v2375_v38, %v5393_v19  ;;  %4853 = vtanh.f32 %v2379_v57  ;;  %v4275_v42 = vmul.f32 -1.442695, %v2379_v57 }
0x2422   :  { %4855 = vtanh.f32 %v2378_v6  ;;  %v4274_v46 = vmul.f32 -1.442695, %v2378_v6 }
0x2423   :  { %4857 = vpow2.f32 %v4275_v42 }
0x2424   :  { %4859 = vpow2.f32 %v4274_v46 }
0x242d   :  { %v4854_v41 = vpop.eup %4853 }
0x242e   :  { %2406 = vrot.lane.b32.xlu0 %v4854_v41, %s5041_s24 }
0x242f   :  { %v4856_v2 = vpop.eup %4855 }
0x2430   :  { %2404 = vrot.lane.b32.xlu1 %v4856_v2, %s5041_s24  ;;  %v4858_v4 = vpop.eup %4857 }
0x2431   :  { %v4860_v55 = vpop.eup %4859  ;;  %v2387_v56 = vadd.f32 1.0, %v4858_v4 }
0x2432   :  { %v2386_v48 = vadd.f32 1.0, %v4860_v55  ;;  %v4252_v55 = vmul.f32 -1.442695, %v1268_v14 }
0x2433   :  { %4861 = vrcp.f32 %v2387_v56 }
0x2434   :  { %4863 = vrcp.f32 %v2386_v48 }
0x2440   :  { %v4862_v8 = vpop.eup %4861 }
0x2441   :  { %v4864_v18 = vpop.eup %4863  ;;  %v2401_v31 = vmul.f32 %v4862_v8, %v2397_v25 }
0x2442   :  { %v2400_v34 = vmul.f32 %v4864_v18, %v2396_v32 }
0x24a0   :  { %v2407_v9 = vpop.permute.xlu0 %2406 }
0x24a1   :  { %v2411_v12 = vmul.f32 %v4862_v8, %v2407_v9 }
0x24a2   :  { %v2405_v22 = vpop.permute.xlu1 %2404 }
0x24a3   :  { %2416 = vrot.lane.b32.xlu0 %v2411_v12, %s5042_s3  ;;  %v2410_v24 = vmul.f32 %v4864_v18, %v2405_v22 }
0x24a5   :  { %2414 = vrot.lane.b32.xlu1 %v2410_v24, %s5042_s3 }
0x2515   :  { %v2417_v33 = vpop.permute.xlu0 %2416 }
0x2516   :  { %v5534_v17 = vadd.f32 %v2417_v33, %v2401_v31 }
0x2517   :  { %v2415_v36 = vpop.permute.xlu1 %2414 }
0x2518   :  { %4865 = vtanh.f32 %v5534_v17  ;;  %v5538_v37 = vadd.f32 %v2415_v36, %v2400_v34 }
0x251a   :  { %4867 = vtanh.f32 %v5538_v37 }
0x251b   :  { %4869 = vtanh.f32 %v1267_v35 }
0x251c   :  { %4871 = vtanh.f32 %v1268_v14 }
0x251d   :  { %4873 = vpow2.f32 %v4251_v11 }
0x251e   :  { %4875 = vpow2.f32 %v4252_v55  ;;  %v1286_v55 = vrot.slane %v5335_v52, 7  ;;  %v2542_v52 = vrot.slane %v5538_v37, 1 }
0x2525   :  { %v4866_v38 = vpop.eup %4865 }
0x2526   :  { %2428 = vrot.lane.b32.xlu0 %v4866_v38, %s5043_s25 }
0x2527   :  { %v4868_v27 = vpop.eup %4867 }
0x2528   :  { %v4870_v57 = vpop.eup %4869  ;;  %2426 = vrot.lane.b32.xlu1 %v4868_v27, %s5043_s25 }
0x2529   :  { %v4872_v4 = vpop.eup %4871 }
0x252a   :  { %1293 = vrot.lane.b32.xlu0 %v4870_v57, %s5041_s24  ;;  %v4874_v56 = vpop.eup %4873 }
0x252b   :  { %v1275_v9 = vadd.f32 1.0, %v4874_v56 }
0x2598   :  { %v2429_v39 = vpop.permute.xlu0 %2428 }
0x2599   :  { %v5548_v2 = vmul.f32 %v4862_v8, %v2429_v39  ;;  %v4876_v8 = vpop.eup %4875 }
0x259a   :  { %v2427_v6 = vpop.permute.xlu1 %2426  ;;  %v1276_v25 = vadd.f32 1.0, %v4876_v8 }
0x259b   :  { %v5546_v41 = vmul.f32 %v4864_v18, %v2427_v6 }
0x259c   :  { %v1294_v31 = vpop.permute.xlu0 %1293 }
0x259d   :  { %v2444_v42 = vrot.slane %v5546_v41, 1 }
0x259f   :  { %v2445_v46 = vsel %vm294_vm2, %v5548_v2, %v2444_v42  ;;  %v1285_v42 = vrot.slane %v5333_v51, 7 }
0x25a0   :  { %2446 = vrot.lane.b32.xlu1 %v2445_v46, %s5044_s26 }
0x25a4   :  { %1295 = vrot.lane.b32.xlu1 %v4872_v4, %s5041_s24 }
0x2612   :  { %v2447_v10 = vpop.permute.xlu1 %2446 }
0x2613   :  { %4538 = vmatmul.mubr.msk.f32.vlgmr.msra.gmra.mxu1 %vm63_vm1, %v2447_v10 }
0x2616   :  { %v1296_v35 = vpop.permute.xlu1 %1295 }
0x26d3   :  { %v2516_v48 = vpop.f32.mrf.mxu1 }
0x26d4   :  { %v2521_v12 = vrot.slane %v2516_v48, 1  ;;  %v2524_v18 = vadd.f32 %v2516_v48, %v5393_v19 }
0x26d5   :  { %v4539_v22 = vpop.f32.mrf.mxu1 }
0x26d6   :  { %v2525_v24 = vadd.f32 %v2521_v12, %v5395_v23  ;;  %4877 = vtanh.f32 %v2524_v18  ;;  %v4277_v36 = vmul.f32 -1.442695, %v2524_v18 }
0x26d7   :  { %4879 = vrcp.f32 %v1275_v9 }
0x26d8   :  { %4881 = vtanh.f32 %v2525_v24  ;;  %v4278_v38 = vmul.f32 -1.442695, %v2525_v24 }
0x26d9   :  { %4883 = vrcp.f32 %v1276_v25  ;;  %v2543_v25 = vrot.slane %v5534_v17, 1 }
0x26da   :  { %4885 = vpow2.f32 %v4277_v36 }
0x26db   :  { %4887 = vpow2.f32 %v4278_v38 }
0x26e3   :  { %v4878_v28 = vpop.eup %4877 }
0x26e4   :  { %2550 = vrot.lane.b32.xlu0 %v4878_v28, %s5041_s24  ;;  %v5559_v32 = vpop.eup %4879 }
0x26e5   :  { %v4882_v33 = vpop.eup %4881  ;;  %v1299_v34 = vmul.f32 %v5559_v32, %v1294_v31  ;;  %v1289_v11 = vmul.f32 %v5559_v32, %v1285_v42 }
0x26e6   :  { %2552 = vrot.lane.b32.xlu1 %v4882_v33, %s5041_s24  ;;  %v5563_v19 = vpop.eup %4883 }
0x26e7   :  { %v1300_v23 = vmul.f32 %v5563_v19, %v1296_v35  ;;  %v4886_v27 = vpop.eup %4885  ;;  %v1290_v9 = vmul.f32 %v5563_v19, %v1286_v55 }
0x26e8   :  { %1303 = vrot.lane.b32.xlu0 %v1299_v34, %s5042_s3  ;;  %v4888_v57 = vpop.eup %4887  ;;  %v2532_v3 = vadd.f32 1.0, %v4886_v27 }
0x26e9   :  { %v2533_v14 = vadd.f32 1.0, %v4888_v57 }
0x26ea   :  { %1305 = vrot.lane.b32.xlu1 %v1300_v23, %s5042_s3  ;;  %4889 = vrcp.f32 %v2532_v3 }
0x26eb   :  { %4891 = vrcp.f32 %v2533_v14 }
0x26f7   :  { %v5568_v39 = vpop.eup %4889 }
0x26f8   :  { %v5572_v4 = vpop.eup %4891  ;;  %v2546_v24 = vmul.f32 %v5568_v39, %v2542_v52 }
0x26f9   :  { %v2547_v33 = vmul.f32 %v5572_v4, %v2543_v25 }
0x2756   :  { %v2551_v6 = vpop.permute.xlu0 %2550 }
0x2757   :  { %v2556_v46 = vmul.f32 %v5568_v39, %v2551_v6 }
0x2758   :  { %v2553_v10 = vpop.permute.xlu1 %2552 }
0x2759   :  { %2560 = vrot.lane.b32.xlu0 %v2556_v46, %s5042_s3  ;;  %v2557_v56 = vmul.f32 %v5572_v4, %v2553_v10 }
0x275a   :  { %v1304_v48 = vpop.permute.xlu0 %1303 }
0x275b   :  { %v1309_v8 = vadd.f32 %v1304_v48, %v1289_v11  ;;  %2562 = vrot.lane.b32.xlu1 %v2557_v56, %s5042_s3 }
0x275c   :  { %v1306_v51 = vpop.permute.xlu1 %1305 }
0x275d   :  { %4893 = vtanh.f32 %v1309_v8  ;;  %v1310_v12 = vadd.f32 %v1306_v51, %v1290_v9 }
0x275f   :  { %4895 = vtanh.f32 %v1310_v12 }
0x276a   :  { %v4894_v18 = vpop.eup %4893 }
0x276b   :  { %1315 = vrot.lane.b32.xlu0 %v4894_v18, %s5043_s25 }
0x276c   :  { %v4896_v22 = vpop.eup %4895 }
0x276d   :  { %1317 = vrot.lane.b32.xlu1 %v4896_v22, %s5043_s25 }
0x2771   :  { %432 = vrot.lane.b32.xlu1 %v5225_v20, %s5044_s26 }
0x27cb   :  { %v2561_v28 = vpop.permute.xlu0 %2560 }
0x27cc   :  { %v2566_v31 = vadd.f32 %v2561_v28, %v2546_v24 }
0x27cd   :  { %v2563_v34 = vpop.permute.xlu1 %2562 }
0x27ce   :  { %4897 = vtanh.f32 %v2566_v31  ;;  %v2567_v35 = vadd.f32 %v2563_v34, %v2547_v33 }
0x27d0   :  { %4899 = vtanh.f32 %v2567_v35  ;;  %v4281_v35 = vld [vmem:[%s5945_s10] ss:$0 sm:$0xff] }
0x27db   :  { %v4898_v23 = vpop.eup %4897 }
0x27dc   :  { %2572 = vrot.lane.b32.xlu0 %v4898_v23, %s5043_s25 }
0x27dd   :  { %v4900_v36 = vpop.eup %4899  ;;  %v1316_v37 = vpop.permute.xlu0 %1315 }
0x27de   :  { %2574 = vrot.lane.b32.xlu1 %v4900_v36, %s5043_s25  ;;  %v1321_v38 = vmul.f32 %v5559_v32, %v1316_v37 }
0x27df   :  { %v1318_v20 = vpop.permute.xlu1 %1317 }
0x27e0   :  { %284 = vrot.lane.b32.xlu0 %v5205_v43, %s5044_s26  ;;  %v2596_v43 = vld [vmem:[%s5942_s7 + $0x8] sm:$0xff] }
0x27e1   :  { %4540 = vmatprep.subr.mxu0 %v2596_v43 }
0x27e2   :  { %729 = vrot.lane.b32.xlu1 %v5271_v44, %s5044_s26  ;;  %4541 = vmatpush3.msra.mxu0 %v2596_v43 }
0x27e3   :  { %v433_v17 = vpop.permute.xlu1 %432 }
0x27e4   :  { %580 = vrot.lane.b32.xlu0 %v5248_v59, %s5044_s26  ;;  %439 = vst.msk [vmem:[#allocation2] sm:$0x2] %vm438_vm3, %v433_v17  ;;  %v2595_v59 = vld [vmem:[%s5942_s7] sm:$0xff] }
0x27e5   :  { %4542 = vmatprep.subr.mxu0 %v2595_v59 }
0x27e6   :  { %1027 = vrot.lane.b32.xlu1 %v5316_v13, %s5044_s26  ;;  %4543 = vmatpush3.msra.mxu0 %v2595_v59 }
0x27e7   :  { %4554 = vmatprep.subr.mxu0 %v5039_v0 }
0x27e8   :  { %878 = vrot.lane.b32.xlu0 %v5293_v29, %s5044_s26 }
0x27ea   :  { %1325 = vrot.lane.b32.xlu1 %v1321_v38, %s5044_s26 }
0x27ec   :  { %1176 = vrot.lane.b32.xlu0 %v5366_v62, %s5044_s26 }
0x27ee   :  { %434 = vrot.lane.b32.xlu1 %v5227_v21, %s5044_s26  ;;  %v2687_v21 = vld [vmem:[%s5943_s8 + $0x8] sm:$0xff] }
0x27ef   :  { %4547 = vmatprep.subr.mxu1 %v2687_v21 }
0x27f0   :  { %286 = vrot.lane.b32.xlu0 %v5202_v40, %s5044_s26  ;;  %v1322_v40 = vmul.f32 %v5563_v19, %v1318_v20  ;;  %4548 = vmatpush3.msra.mxu1 %v2687_v21  ;;  %v5688_v19 = vld [vmem:[%s5944_s9 + $0x8] sm:$0xff] }
0x27f2   :  { %731 = vrot.lane.b32.xlu1 %v5273_v45, %s5044_s26 }
0x27f4   :  { %582 = vrot.lane.b32.xlu0 %v5250_v60, %s5044_s26  ;;  %v2686_v60 = vld [vmem:[%s5943_s8] sm:$0xff] }
0x27f5   :  { %4549 = vmatprep.subr.mxu1 %v2686_v60 }
0x27f6   :  { %1029 = vrot.lane.b32.xlu1 %v5318_v15, %s5044_s26  ;;  %4550 = vmatpush3.msra.mxu1 %v2686_v60 }
0x27f7   :  { %4561 = vmatprep.subr.mxu1 %v5039_v0 }
0x27f8   :  { %880 = vrot.lane.b32.xlu0 %v5295_v30, %s5044_s26 }
0x27fa   :  { %1327 = vrot.lane.b32.xlu1 %v1322_v40, %s5044_s26 }
0x27fc   :  { %1178 = vrot.lane.b32.xlu0 %v5368_v63, %s5044_s26 }
0x27fe   :  { %1697 = vrot.lane.b32.xlu1 %v5428_v1, %s5044_s26 }
0x2800   :  { %1549 = vrot.lane.b32.xlu0 %v5405_v58, %s5044_s26 }
0x2802   :  { %1993 = vrot.lane.b32.xlu1 %v5474_v16, %s5044_s26 }
0x2804   :  { %1845 = vrot.lane.b32.xlu0 %v5451_v7, %s5044_s26 }
0x2806   :  { %2289 = vrot.lane.b32.xlu1 %v5518_v5, %s5044_s26 }
0x2808   :  { %2141 = vrot.lane.b32.xlu0 %v5496_v26, %s5044_s26 }
0x280a   :  { %1699 = vrot.lane.b32.xlu1 %v5430_v49, %s5044_s26 }
0x280c   :  { %2436 = vrot.lane.b32.xlu0 %v5546_v41, %s5044_s26 }
0x280e   :  { %1995 = vrot.lane.b32.xlu1 %v5476_v53, %s5044_s26 }
0x2810   :  { %1551 = vrot.lane.b32.xlu0 %v5407_v61, %s5044_s26 }
0x2812   :  { %2291 = vrot.lane.b32.xlu1 %v5520_v54, %s5044_s26 }
0x2814   :  { %1847 = vrot.lane.b32.xlu0 %v5453_v47, %s5044_s26 }
0x2818   :  { %2143 = vrot.lane.b32.xlu0 %v5498_v50, %s5044_s26 }
0x281c   :  { %2438 = vrot.lane.b32.xlu0 %v5548_v2, %s5044_s26 }
0x284e   :  { %v2573_v44 = vpop.permute.xlu0 %2572 }
0x284f   :  { %v2578_v45 = vmul.f32 %v5568_v39, %v2573_v44  ;;  %v5696_v39 = vld [vmem:[%s5944_s9] sm:$0xff] }
0x2850   :  { %v2575_v29 = vpop.permute.xlu1 %2574 }
0x2851   :  { %2582 = vrot.lane.b32.xlu1 %v2578_v45, %s5044_s26  ;;  %v2579_v13 = vmul.f32 %v5572_v4, %v2575_v29 }
0x2852   :  { %v285_v30 = vpop.permute.xlu0 %284 }
0x2853   :  { %291 = vst.msk [vmem:[#allocation2] sm:$0x1] %vm290_vm4, %v285_v30 }
0x2854   :  { %v730_v15 = vpop.permute.xlu1 %729 }
0x2855   :  { %2584 = vrot.lane.b32.xlu1 %v2579_v13, %s5044_s26  ;;  %736 = vst.msk [vmem:[#allocation2] sm:$0x8] %vm735_vm5, %v730_v15 }
0x2856   :  { %v581_v62 = vpop.permute.xlu0 %580 }
0x2857   :  { %587 = vst.msk [vmem:[#allocation2] sm:$0x4] %vm586_vm6, %v581_v62 }
0x2858   :  { %v1028_v63 = vpop.permute.xlu1 %1027 }
0x2859   :  { %1034 = vst.msk [vmem:[#allocation2] sm:$0x20] %vm1033_vm7, %v1028_v63 }
0x285a   :  { %v879_v58 = vpop.permute.xlu0 %878 }
0x285b   :  { %885 = vst.msk [vmem:[#allocation2] sm:$0x10] %vm884_vm8, %v879_v58 }
0x285c   :  { %v1326_v61 = vpop.permute.xlu1 %1325 }
0x285d   :  { %1332 = vst.msk [vmem:[#allocation2] sm:$0x80] %vm1331_vm9, %v1326_v61 }
0x285e   :  { %v1177_v1 = vpop.permute.xlu0 %1176 }
0x285f   :  { %1183 = vst.msk [vmem:[#allocation2] sm:$0x40] %vm1182_vm10, %v1177_v1 }
0x2860   :  { %v435_v49 = vpop.permute.xlu1 %434 }
0x2861   :  { %440 = vst.msk [vmem:[#allocation2 + $0x8] sm:$0x2] %vm438_vm3, %v435_v49 }
0x2862   :  { %v287_v7 = vpop.permute.xlu0 %286 }
0x2863   :  { %292 = vst.msk [vmem:[#allocation2 + $0x8] sm:$0x1] %vm290_vm4, %v287_v7 }
0x2864   :  { %v732_v47 = vpop.permute.xlu1 %731 }
0x2865   :  { %737 = vst.msk [vmem:[#allocation2 + $0x8] sm:$0x8] %vm735_vm5, %v732_v47 }
0x2866   :  { %v583_v16 = vpop.permute.xlu0 %582  ;;  %v2590_v53 = vld [vmem:[#allocation2] sm:$0xff] }
0x2867   :  { %588 = vst.msk [vmem:[#allocation2 + $0x8] sm:$0x4] %vm586_vm6, %v583_v16  ;;  %4544 = vmatprep.mubr.msk.f32.mxu0 %vm63_vm1, %v2590_v53  ;;  %v3953_v3 = vrot.slane %v2590_v53, 7 }
0x2868   :  { %v1030_v26 = vpop.permute.xlu1 %1029 }
0x2869   :  { %1035 = vst.msk [vmem:[#allocation2 + $0x8] sm:$0x20] %vm1033_vm7, %v1030_v26 }
0x286a   :  { %v881_v50 = vpop.permute.xlu0 %880 }
0x286b   :  { %886 = vst.msk [vmem:[#allocation2 + $0x8] sm:$0x10] %vm884_vm8, %v881_v50 }
0x286c   :  { %v1328_v5 = vpop.permute.xlu1 %1327 }
0x286d   :  { %1333 = vst.msk [vmem:[#allocation2 + $0x8] sm:$0x80] %vm1331_vm9, %v1328_v5 }
0x286e   :  { %v1179_v54 = vpop.permute.xlu0 %1178 }
0x286f   :  { %1184 = vst.msk [vmem:[#allocation2 + $0x8] sm:$0x40] %vm1182_vm10, %v1179_v54 }
0x2870   :  { %v1698_v41 = vpop.permute.xlu1 %1697 }
0x2871   :  { %1703 = vst.msk [vmem:[#allocation3] sm:$0x40] %vm1182_vm10, %v1698_v41 }
0x2872   :  { %v1550_v2 = vpop.permute.xlu0 %1549 }
0x2873   :  { %1555 = vst.msk [vmem:[#allocation3] sm:$0x80] %vm1331_vm9, %v1550_v2 }
0x2874   :  { %v1994_v32 = vpop.permute.xlu1 %1993 }
0x2875   :  { %1999 = vst.msk [vmem:[#allocation3] sm:$0x10] %vm884_vm8, %v1994_v32 }
0x2876   :  { %v1846_v27 = vpop.permute.xlu0 %1845  ;;  %v2591_v57 = vld [vmem:[#allocation2 + $0x8] sm:$0xff] }
0x2877   :  { %1851 = vst.msk [vmem:[#allocation3] sm:$0x20] %vm1033_vm7, %v1846_v27  ;;  %4545 = vmatmul.mubr.msk.f32.vlgmr.msra.gmra.mxu0 %vm63_vm1, %v2591_v57  ;;  %v3954_v14 = vrot.slane %v2591_v57, 6 }
0x2878   :  { %4555 = vmatpush3.msra.mxu0 %v5688_v19  ;;  %4558 = vmatprep.mubr.msk.f32.mxu0 %vm5040_vm0, %v5039_v0  ;;  %v2290_v6 = vpop.permute.xlu1 %2289 }
0x2879   :  { %4556 = vmatprep.subr.mxu0 %v5039_v0  ;;  %v5703_v42 = vsel %vm294_vm2, %v3954_v14, %v3953_v3  ;;  %2295 = vst.msk [vmem:[#allocation3] sm:$0x4] %vm586_vm6, %v2290_v6 }
0x287a   :  { %v2142_v46 = vpop.permute.xlu0 %2141  ;;  %4557 = vmatpush3.msra.mxu0 %v5696_v39 }
0x287b   :  { %2147 = vst.msk [vmem:[#allocation3] sm:$0x8] %vm735_vm5, %v2142_v46  ;;  %4559 = vmatmul.mubr.f32.vlgmr.msra.gmra.mxu0 %v5039_v0  ;;  %4568 = vmatprep.subr.mxu0 %v5039_v0 }
0x287c   :  { %4569 = vmatpush3.msra.mxu0 %v5688_v19  ;;  %4572 = vmatprep.mubr.msk.f32.mxu0 %vm5040_vm0, %v5039_v0  ;;  %v1700_v4 = vpop.permute.xlu1 %1699 }
0x287d   :  { %4570 = vmatprep.subr.mxu0 %v5039_v0  ;;  %1704 = vst.msk [vmem:[#allocation3 + $0x8] sm:$0x40] %vm1182_vm10, %v1700_v4 }
0x287e   :  { %v2437_v10 = vpop.permute.xlu0 %2436  ;;  %4571 = vmatpush3.msra.mxu0 %v5696_v39 }
0x287f   :  { %2442 = vst.msk [vmem:[#allocation3] sm:$0x2] %vm438_vm3, %v2437_v10  ;;  %4582 = vmatprep.subr.mxu0 %v5039_v0 }
0x2880   :  { %v1996_v11 = vpop.permute.xlu1 %1995 }
0x2881   :  { %2000 = vst.msk [vmem:[#allocation3 + $0x8] sm:$0x10] %vm884_vm8, %v1996_v11 }
0x2882   :  { %v1552_v55 = vpop.permute.xlu0 %1551 }
0x2883   :  { %1556 = vst.msk [vmem:[#allocation3 + $0x8] sm:$0x80] %vm1331_vm9, %v1552_v55 }
0x2884   :  { %v2292_v56 = vpop.permute.xlu1 %2291 }
0x2885   :  { %2296 = vst.msk [vmem:[#allocation3 + $0x8] sm:$0x4] %vm586_vm6, %v2292_v56 }
0x2886   :  { %v1848_v48 = vpop.permute.xlu0 %1847 }
0x2887   :  { %1852 = vst.msk [vmem:[#allocation3 + $0x8] sm:$0x20] %vm1033_vm7, %v1848_v48 }
0x288a   :  { %v2144_v8 = vpop.permute.xlu0 %2143 }
0x288b   :  { %2148 = vst.msk [vmem:[#allocation3 + $0x8] sm:$0x8] %vm735_vm5, %v2144_v8 }
0x288e   :  { %v2439_v9 = vpop.permute.xlu0 %2438 }
0x288f   :  { %2443 = vst.msk [vmem:[#allocation3 + $0x8] sm:$0x2] %vm438_vm3, %v2439_v9 }
0x28c3   :  { %v2583_v51 = vpop.permute.xlu1 %2582 }
0x28c4   :  { %2588 = vst.msk [vmem:[#allocation3] sm:$0x1] %vm290_vm4, %v2583_v51 }
0x28c7   :  { %v2585_v12 = vpop.permute.xlu1 %2584 }
0x28c8   :  { %2589 = vst.msk [vmem:[#allocation3 + $0x8] sm:$0x1] %vm290_vm4, %v2585_v12 }
0x28cb   :  { %v2592_v18 = vld [vmem:[#allocation3] sm:$0xff] }
0x28cc   :  { %4551 = vmatprep.mubr.msk.f32.mxu1 %vm63_vm1, %v2592_v18  ;;  %v3878_v52 = vrot.slane %v2592_v18, 7 }
0x28cf   :  { %v2593_v22 = vld [vmem:[#allocation3 + $0x8] sm:$0xff] }
0x28d0   :  { %4552 = vmatmul.mubr.msk.f32.vlgmr.msra.gmra.mxu1 %vm63_vm1, %v2593_v22  ;;  %v3879_v24 = vrot.slane %v2593_v22, 6 }
0x28d1   :  { %4562 = vmatpush3.msra.mxu1 %v5688_v19  ;;  %4565 = vmatprep.mubr.msk.f32.mxu1 %vm5040_vm0, %v5039_v0 }
0x28d2   :  { %4563 = vmatprep.subr.mxu1 %v5039_v0  ;;  %v5733_v25 = vsel %vm294_vm2, %v3879_v24, %v3878_v52 }
0x28d3   :  { %4564 = vmatpush3.msra.mxu1 %v5696_v39 }
0x28d4   :  { %4575 = vmatprep.subr.mxu1 %v5039_v0 }
0x2937   :  { %v4546_v28 = vpop.f32.mrf.mxu0 }
0x2938   :  { %v2685_v23 = vadd.f32 %v4546_v28, %v4281_v35 }
0x2939   :  { %v2669_v31 = vpop.f32.mrf.mxu0 }
0x293a   :  { %v2684_v17 = vadd.f32 %v4281_v35, %v2669_v31 }
0x293b   :  { %v2839_v33 = vpop.f32.mrf.mxu0 }
0x293c   :  { %v2844_v36 = vrot.slane %v2839_v33, 1 }
0x293d   :  { %v4560_v34 = vpop.f32.mrf.mxu0 }
0x2990   :  { %v4553_v20 = vpop.f32.mrf.mxu1 }
0x2991   :  { %v5740_v37 = vadd.f32 %v4553_v20, %v2685_v23 }
0x2992   :  { %v2760_v38 = vpop.f32.mrf.mxu1 }
0x2993   :  { %v2848_v43 = vadd.f32 %v2844_v36, %v5740_v37  ;;  %v5743_v59 = vadd.f32 %v2760_v38, %v2684_v17 }
0x2995   :  { %4901 = vtanh.f32 %v2848_v43  ;;  %v2847_v40 = vadd.f32 %v2839_v33, %v5743_v59  ;;  %v4285_v44 = vmul.f32 -1.442695, %v2848_v43 }
0x2997   :  { %4903 = vtanh.f32 %v2847_v40  ;;  %v4284_v45 = vmul.f32 -1.442695, %v2847_v40 }
0x2998   :  { %4905 = vpow2.f32 %v4285_v44 }
0x2999   :  { %4907 = vpow2.f32 %v4284_v45 }
0x29a2   :  { %v4902_v21 = vpop.eup %4901 }
0x29a3   :  { %2869 = vrot.lane.b32.xlu0 %v4902_v21, %s5041_s24 }
0x29a4   :  { %v4904_v60 = vpop.eup %4903 }
0x29a5   :  { %2867 = vrot.lane.b32.xlu1 %v4904_v60, %s5041_s24  ;;  %v4906_v29 = vpop.eup %4905 }
0x29a6   :  { %v4908_v30 = vpop.eup %4907  ;;  %v2856_v13 = vadd.f32 1.0, %v4906_v29 }
0x29a7   :  { %v2855_v15 = vadd.f32 1.0, %v4908_v30 }
0x29a8   :  { %4909 = vrcp.f32 %v2856_v13 }
0x29a9   :  { %4911 = vrcp.f32 %v2855_v15 }
0x29b5   :  { %v4910_v62 = vpop.eup %4909 }
0x29b6   :  { %v4912_v61 = vpop.eup %4911  ;;  %v2864_v7 = vmul.f32 0.0, %v4910_v62 }
0x29b7   :  { %v2863_v53 = vmul.f32 0.0, %v4912_v61 }
0x2a15   :  { %v2870_v63 = vpop.permute.xlu0 %2869 }
0x2a16   :  { %v2874_v58 = vmul.f32 %v4910_v62, %v2870_v63 }
0x2a17   :  { %v2868_v1 = vpop.permute.xlu1 %2867 }
0x2a18   :  { %2879 = vrot.lane.b32.xlu0 %v2874_v58, %s5042_s3  ;;  %v2873_v49 = vmul.f32 %v4912_v61, %v2868_v1 }
0x2a1a   :  { %2877 = vrot.lane.b32.xlu1 %v2873_v49, %s5042_s3 }
0x2a8a   :  { %v2880_v47 = vpop.permute.xlu0 %2879 }
0x2a8b   :  { %v2884_v16 = vadd.f32 %v2880_v47, %v2864_v7 }
0x2a8c   :  { %v2878_v26 = vpop.permute.xlu1 %2877 }
0x2a8d   :  { %4913 = vtanh.f32 %v2884_v16  ;;  %v2883_v50 = vadd.f32 %v2878_v26, %v2863_v53  ;;  %v2998_v34 = vrot.slane %v2884_v16, 7 }
0x2a8f   :  { %4915 = vtanh.f32 %v2883_v50  ;;  %v2997_v23 = vrot.slane %v2883_v50, 7 }
0x2a9a   :  { %v4914_v5 = vpop.eup %4913 }
0x2a9b   :  { %2891 = vrot.lane.b32.xlu0 %v4914_v5, %s5043_s25 }
0x2a9c   :  { %v4916_v54 = vpop.eup %4915 }
0x2a9d   :  { %2889 = vrot.lane.b32.xlu1 %v4916_v54, %s5043_s25 }
0x2b0d   :  { %v2892_v41 = vpop.permute.xlu0 %2891 }
0x2b0e   :  { %v2896_v2 = vmul.f32 %v4910_v62, %v2892_v41 }
0x2b0f   :  { %v2890_v27 = vpop.permute.xlu1 %2889 }
0x2b10   :  { %v2899_v32 = vrot.slane %v2896_v2, 7  ;;  %v2895_v57 = vmul.f32 %v4912_v61, %v2890_v27 }
0x2b12   :  { %v2900_v3 = vsel %vm294_vm2, %v2899_v32, %v2895_v57 }
0x2b13   :  { %2901 = vrot.lane.b32.xlu0 %v2900_v3, %s5044_s26 }
0x2b85   :  { %v2902_v14 = vpop.permute.xlu0 %2901 }
0x2b86   :  { %4566 = vmatmul.mubr.msk.f32.vlgmr.msra.gmra.mxu1 %vm63_vm1, %v2902_v14 }
0x2b87   :  { %4576 = vmatpush3.msra.mxu1 %v5688_v19  ;;  %4579 = vmatprep.mubr.msk.f32.mxu1 %vm5040_vm0, %v5039_v0 }
0x2b88   :  { %4577 = vmatprep.subr.mxu1 %v5039_v0 }
0x2b89   :  { %4578 = vmatpush3.msra.mxu1 %v5696_v39 }
0x2b8a   :  { %4589 = vmatprep.subr.mxu1 %v5039_v0 }
0x2c46   :  { %v2971_v6 = vpop.f32.mrf.mxu1 }
0x2c47   :  { %v2976_v46 = vrot.slane %v2971_v6, 7  ;;  %v2980_v4 = vadd.f32 %v2971_v6, %v5740_v37 }
0x2c48   :  { %v4567_v10 = vpop.f32.mrf.mxu1 }
0x2c49   :  { %v2979_v11 = vadd.f32 %v2976_v46, %v5743_v59  ;;  %4917 = vtanh.f32 %v2980_v4  ;;  %v4288_v48 = vmul.f32 -1.442695, %v2980_v4 }
0x2c4b   :  { %4919 = vtanh.f32 %v2979_v11  ;;  %v4287_v8 = vmul.f32 -1.442695, %v2979_v11 }
0x2c4c   :  { %4921 = vpow2.f32 %v4288_v48 }
0x2c4d   :  { %4923 = vpow2.f32 %v4287_v8 }
0x2c56   :  { %v4918_v55 = vpop.eup %4917 }
0x2c57   :  { %3007 = vrot.lane.b32.xlu0 %v4918_v55, %s5041_s24 }
0x2c58   :  { %v4920_v56 = vpop.eup %4919 }
0x2c59   :  { %3005 = vrot.lane.b32.xlu1 %v4920_v56, %s5041_s24  ;;  %v4922_v9 = vpop.eup %4921 }
0x2c5a   :  { %v4924_v51 = vpop.eup %4923  ;;  %v2988_v12 = vadd.f32 1.0, %v4922_v9 }
0x2c5b   :  { %v2987_v18 = vadd.f32 1.0, %v4924_v51 }
0x2c5c   :  { %4925 = vrcp.f32 %v2988_v12 }
0x2c5d   :  { %4927 = vrcp.f32 %v2987_v18 }
0x2c69   :  { %v4926_v22 = vpop.eup %4925 }
0x2c6a   :  { %v4928_v28 = vpop.eup %4927  ;;  %v3002_v35 = vmul.f32 %v4926_v22, %v2998_v34 }
0x2c6b   :  { %v3001_v17 = vmul.f32 %v4928_v28, %v2997_v23 }
0x2cc9   :  { %v3008_v52 = vpop.permute.xlu0 %3007 }
0x2cca   :  { %v3012_v24 = vmul.f32 %v4926_v22, %v3008_v52 }
0x2ccb   :  { %v3006_v31 = vpop.permute.xlu1 %3005 }
0x2ccc   :  { %3017 = vrot.lane.b32.xlu0 %v3012_v24, %s5042_s3  ;;  %v3011_v33 = vmul.f32 %v4928_v28, %v3006_v31 }
0x2cce   :  { %3015 = vrot.lane.b32.xlu1 %v3011_v33, %s5042_s3 }
0x2d3e   :  { %v3018_v36 = vpop.permute.xlu0 %3017 }
0x2d3f   :  { %v3022_v20 = vadd.f32 %v3018_v36, %v3002_v35 }
0x2d40   :  { %v3016_v38 = vpop.permute.xlu1 %3015 }
0x2d41   :  { %4929 = vtanh.f32 %v3022_v20  ;;  %v3021_v43 = vadd.f32 %v3016_v38, %v3001_v17  ;;  %v3137_v6 = vrot.slane %v3022_v20, 7 }
0x2d43   :  { %4931 = vtanh.f32 %v3021_v43  ;;  %v3136_v14 = vrot.slane %v3021_v43, 7 }
0x2d4e   :  { %v4930_v40 = vpop.eup %4929 }
0x2d4f   :  { %3029 = vrot.lane.b32.xlu0 %v4930_v40, %s5043_s25 }
0x2d50   :  { %v4932_v21 = vpop.eup %4931 }
0x2d51   :  { %3027 = vrot.lane.b32.xlu1 %v4932_v21, %s5043_s25 }
0x2dc1   :  { %v3030_v60 = vpop.permute.xlu0 %3029 }
0x2dc2   :  { %v3034_v29 = vmul.f32 %v4926_v22, %v3030_v60 }
0x2dc3   :  { %v3028_v44 = vpop.permute.xlu1 %3027 }
0x2dc4   :  { %v3033_v45 = vmul.f32 %v4928_v28, %v3028_v44 }
0x2dc6   :  { %v3037_v30 = vrot.slane %v3033_v45, 1 }
0x2dc8   :  { %v3038_v13 = vsel %vm294_vm2, %v3034_v29, %v3037_v30 }
0x2dc9   :  { %3039 = vrot.lane.b32.xlu1 %v3038_v13, %s5044_s26 }
0x2e3b   :  { %v3040_v15 = vpop.permute.xlu1 %3039 }
0x2e3c   :  { %4573 = vmatmul.mubr.msk.f32.vlgmr.msra.gmra.mxu0 %vm63_vm1, %v3040_v15 }
0x2e3d   :  { %4583 = vmatpush3.msra.mxu0 %v5688_v19  ;;  %4586 = vmatprep.mubr.msk.f32.mxu0 %vm5040_vm0, %v5039_v0 }
0x2e3e   :  { %4584 = vmatprep.subr.mxu0 %v5039_v0 }
0x2e3f   :  { %4585 = vmatpush3.msra.mxu0 %v5696_v39 }
0x2e40   :  { %4596 = vmatprep.subr.mxu0 %v5039_v0 }
0x2efc   :  { %v3109_v62 = vpop.f32.mrf.mxu0 }
0x2efd   :  { %v3114_v63 = vrot.slane %v3109_v62, 6  ;;  %v3115_v58 = vrot.slane %v3109_v62, 7 }
0x2efe   :  { %v4574_v61 = vpop.f32.mrf.mxu0 }
0x2eff   :  { %v3118_v1 = vadd.f32 %v3114_v63, %v5743_v59  ;;  %v3119_v49 = vadd.f32 %v3115_v58, %v5740_v37 }
0x2f01   :  { %4933 = vtanh.f32 %v3118_v1  ;;  %v4290_v16 = vmul.f32 -1.442695, %v3118_v1  ;;  %v4291_v53 = vmul.f32 -1.442695, %v3119_v49 }
0x2f02   :  { %4935 = vtanh.f32 %v3119_v49 }
0x2f03   :  { %4937 = vpow2.f32 %v4290_v16 }
0x2f04   :  { %4939 = vpow2.f32 %v4291_v53 }
0x2f0e   :  { %v4934_v7 = vpop.eup %4933 }
0x2f0f   :  { %v4936_v47 = vpop.eup %4935  ;;  %3144 = vrot.lane.b32.xlu0 %v4934_v7, %s5041_s24 }
0x2f10   :  { %3146 = vrot.lane.b32.xlu1 %v4936_v47, %s5041_s24  ;;  %v4938_v26 = vpop.eup %4937 }
0x2f11   :  { %v4940_v50 = vpop.eup %4939  ;;  %v3126_v5 = vadd.f32 1.0, %v4938_v26 }
0x2f12   :  { %v3127_v54 = vadd.f32 1.0, %v4940_v50 }
0x2f13   :  { %4941 = vrcp.f32 %v3126_v5 }
0x2f14   :  { %4943 = vrcp.f32 %v3127_v54 }
0x2f20   :  { %v4942_v41 = vpop.eup %4941 }
0x2f21   :  { %v4944_v32 = vpop.eup %4943  ;;  %v3140_v46 = vmul.f32 %v4942_v41, %v3136_v14 }
0x2f22   :  { %v3141_v4 = vmul.f32 %v4944_v32, %v3137_v6 }
0x2f81   :  { %v3145_v2 = vpop.permute.xlu0 %3144 }
0x2f82   :  { %v3147_v27 = vpop.permute.xlu1 %3146  ;;  %v3150_v57 = vmul.f32 %v4942_v41, %v3145_v2 }
0x2f83   :  { %v3151_v3 = vmul.f32 %v4944_v32, %v3147_v27 }
0x2f84   :  { %3154 = vrot.lane.b32.xlu0 %v3150_v57, %s5042_s3 }
0x2f85   :  { %3156 = vrot.lane.b32.xlu1 %v3151_v3, %s5042_s3 }
0x2ff6   :  { %v3155_v10 = vpop.permute.xlu0 %3154 }
0x2ff7   :  { %v3157_v11 = vpop.permute.xlu1 %3156  ;;  %v3160_v55 = vadd.f32 %v3155_v10, %v3140_v46 }
0x2ff8   :  { %v3161_v56 = vadd.f32 %v3157_v11, %v3141_v4 }
0x2ff9   :  { %4945 = vtanh.f32 %v3160_v55  ;;  %v3276_v63 = vrot.slane %v3160_v55, 7 }
0x2ffa   :  { %4947 = vtanh.f32 %v3161_v56  ;;  %v3277_v58 = vrot.slane %v3161_v56, 7 }
0x3006   :  { %v4946_v48 = vpop.eup %4945 }
0x3007   :  { %v4948_v8 = vpop.eup %4947  ;;  %3166 = vrot.lane.b32.xlu0 %v4946_v48, %s5043_s25 }
0x3008   :  { %3168 = vrot.lane.b32.xlu1 %v4948_v8, %s5043_s25 }
0x3079   :  { %v3167_v9 = vpop.permute.xlu0 %3166 }
0x307a   :  { %v3169_v51 = vpop.permute.xlu1 %3168  ;;  %v3172_v12 = vmul.f32 %v4942_v41, %v3167_v9 }
0x307b   :  { %v3173_v18 = vmul.f32 %v4944_v32, %v3169_v51 }
0x307c   :  { %v3176_v22 = vrot.slane %v3172_v12, 2 }
0x307d   :  { %v3177_v52 = vrot.slane %v3173_v18, 1 }
0x307f   :  { %v3178_v24 = vsel %vm294_vm2, %v3177_v52, %v3176_v22 }
0x3080   :  { %3179 = vrot.lane.b32.xlu0 %v3178_v24, %s5044_s26 }
0x30f2   :  { %v3180_v28 = vpop.permute.xlu0 %3179 }
0x30f3   :  { %4580 = vmatmul.mubr.msk.f32.vlgmr.msra.gmra.mxu1 %vm63_vm1, %v3180_v28 }
0x30f4   :  { %4590 = vmatpush3.msra.mxu1 %v5688_v19  ;;  %4593 = vmatprep.mubr.msk.f32.mxu1 %vm5040_vm0, %v5039_v0 }
0x30f5   :  { %4591 = vmatprep.subr.mxu1 %v5039_v0 }
0x30f6   :  { %4592 = vmatpush3.msra.mxu1 %v5696_v39 }
0x30f7   :  { %4603 = vmatprep.subr.mxu1 %v5039_v0 }
0x31b3   :  { %v3249_v31 = vpop.f32.mrf.mxu1 }
0x31b4   :  { %v3254_v33 = vrot.slane %v3249_v31, 5  ;;  %v3255_v34 = vrot.slane %v3249_v31, 6 }
0x31b5   :  { %v4581_v35 = vpop.f32.mrf.mxu1 }
0x31b6   :  { %v3258_v23 = vadd.f32 %v3254_v33, %v5743_v59  ;;  %v3259_v36 = vadd.f32 %v3255_v34, %v5740_v37 }
0x31b8   :  { %4949 = vtanh.f32 %v3258_v23  ;;  %v4293_v38 = vmul.f32 -1.442695, %v3258_v23  ;;  %v4294_v43 = vmul.f32 -1.442695, %v3259_v36 }
0x31b9   :  { %4951 = vtanh.f32 %v3259_v36 }
0x31ba   :  { %4953 = vpow2.f32 %v4293_v38 }
0x31bb   :  { %4955 = vpow2.f32 %v4294_v43 }
0x31c5   :  { %v4950_v20 = vpop.eup %4949 }
0x31c6   :  { %v4952_v17 = vpop.eup %4951  ;;  %3284 = vrot.lane.b32.xlu1 %v4950_v20, %s5041_s24 }
0x31c7   :  { %3286 = vrot.lane.b32.xlu0 %v4952_v17, %s5041_s24  ;;  %v4954_v40 = vpop.eup %4953 }
0x31c8   :  { %v4956_v21 = vpop.eup %4955  ;;  %v3266_v60 = vadd.f32 1.0, %v4954_v40 }
0x31c9   :  { %v3267_v44 = vadd.f32 1.0, %v4956_v21 }
0x31ca   :  { %4957 = vrcp.f32 %v3266_v60 }
0x31cb   :  { %4959 = vrcp.f32 %v3267_v44 }
0x31d7   :  { %v4958_v45 = vpop.eup %4957 }
0x31d8   :  { %v4960_v30 = vpop.eup %4959  ;;  %v3280_v61 = vmul.f32 %v4958_v45, %v3276_v63 }
0x31d9   :  { %v3281_v1 = vmul.f32 %v4960_v30, %v3277_v58 }
0x3238   :  { %v3285_v29 = vpop.permute.xlu1 %3284 }
0x3239   :  { %v3287_v13 = vpop.permute.xlu0 %3286  ;;  %v3290_v15 = vmul.f32 %v4958_v45, %v3285_v29 }
0x323a   :  { %v3291_v62 = vmul.f32 %v4960_v30, %v3287_v13 }
0x323b   :  { %3294 = vrot.lane.b32.xlu1 %v3290_v15, %s5042_s3 }
0x323c   :  { %3296 = vrot.lane.b32.xlu0 %v3291_v62, %s5042_s3 }
0x32ad   :  { %v3295_v49 = vpop.permute.xlu1 %3294 }
0x32ae   :  { %v3297_v7 = vpop.permute.xlu0 %3296  ;;  %v3300_v47 = vadd.f32 %v3295_v49, %v3280_v61 }
0x32af   :  { %v3301_v16 = vadd.f32 %v3297_v7, %v3281_v1 }
0x32b0   :  { %4961 = vtanh.f32 %v3300_v47  ;;  %v3416_v33 = vrot.slane %v3300_v47, 7 }
0x32b1   :  { %4963 = vtanh.f32 %v3301_v16  ;;  %v3417_v34 = vrot.slane %v3301_v16, 7 }
0x32bd   :  { %v4962_v53 = vpop.eup %4961 }
0x32be   :  { %v4964_v26 = vpop.eup %4963  ;;  %3306 = vrot.lane.b32.xlu1 %v4962_v53, %s5043_s25 }
0x32bf   :  { %3308 = vrot.lane.b32.xlu0 %v4964_v26, %s5043_s25 }
0x3330   :  { %v3307_v50 = vpop.permute.xlu1 %3306 }
0x3331   :  { %v3309_v5 = vpop.permute.xlu0 %3308  ;;  %v3312_v54 = vmul.f32 %v4958_v45, %v3307_v50 }
0x3332   :  { %v3313_v41 = vmul.f32 %v4960_v30, %v3309_v5 }
0x3333   :  { %v3316_v2 = vrot.slane %v3312_v54, 3 }
0x3334   :  { %v3317_v32 = vrot.slane %v3313_v41, 2 }
0x3336   :  { %v3318_v27 = vsel %vm294_vm2, %v3317_v32, %v3316_v2 }
0x3337   :  { %3319 = vrot.lane.b32.xlu1 %v3318_v27, %s5044_s26 }
0x33a9   :  { %v3320_v57 = vpop.permute.xlu1 %3319 }
0x33aa   :  { %4587 = vmatmul.mubr.msk.f32.vlgmr.msra.gmra.mxu0 %vm63_vm1, %v3320_v57 }
0x33ab   :  { %4597 = vmatpush3.msra.mxu0 %v5688_v19  ;;  %4600 = vmatprep.mubr.msk.f32.mxu0 %vm5040_vm0, %v5039_v0 }
0x33ac   :  { %4598 = vmatprep.subr.mxu0 %v5039_v0 }
0x33ad   :  { %4599 = vmatpush3.msra.mxu0 %v5696_v39 }
0x33ae   :  { %4610 = vmatprep.subr.mxu0 %v5039_v0 }
0x346a   :  { %v3389_v3 = vpop.f32.mrf.mxu0 }
0x346b   :  { %v3394_v14 = vrot.slane %v3389_v3, 4  ;;  %v3395_v6 = vrot.slane %v3389_v3, 5 }
0x346c   :  { %v4588_v46 = vpop.f32.mrf.mxu0 }
0x346d   :  { %v3398_v4 = vadd.f32 %v3394_v14, %v5743_v59  ;;  %v3399_v10 = vadd.f32 %v3395_v6, %v5740_v37 }
0x346f   :  { %4965 = vtanh.f32 %v3398_v4  ;;  %v4296_v56 = vmul.f32 -1.442695, %v3398_v4  ;;  %v4297_v48 = vmul.f32 -1.442695, %v3399_v10 }
0x3470   :  { %4967 = vtanh.f32 %v3399_v10 }
0x3471   :  { %4969 = vpow2.f32 %v4296_v56 }
0x3472   :  { %4971 = vpow2.f32 %v4297_v48 }
0x347c   :  { %v4966_v11 = vpop.eup %4965 }
0x347d   :  { %v4968_v55 = vpop.eup %4967  ;;  %3424 = vrot.lane.b32.xlu0 %v4966_v11, %s5041_s24 }
0x347e   :  { %3426 = vrot.lane.b32.xlu1 %v4968_v55, %s5041_s24  ;;  %v4970_v8 = vpop.eup %4969 }
0x347f   :  { %v4972_v9 = vpop.eup %4971  ;;  %v3406_v51 = vadd.f32 1.0, %v4970_v8 }
0x3480   :  { %v3407_v12 = vadd.f32 1.0, %v4972_v9 }
0x3481   :  { %4973 = vrcp.f32 %v3406_v51 }
0x3482   :  { %4975 = vrcp.f32 %v3407_v12 }
0x348e   :  { %v4974_v18 = vpop.eup %4973 }
0x348f   :  { %v4976_v52 = vpop.eup %4975  ;;  %v3420_v35 = vmul.f32 %v4974_v18, %v3416_v33 }
0x3490   :  { %v3421_v23 = vmul.f32 %v4976_v52, %v3417_v34 }
0x34ef   :  { %v3425_v22 = vpop.permute.xlu0 %3424 }
0x34f0   :  { %v3427_v24 = vpop.permute.xlu1 %3426  ;;  %v3430_v28 = vmul.f32 %v4974_v18, %v3425_v22 }
0x34f1   :  { %v3431_v31 = vmul.f32 %v4976_v52, %v3427_v24 }
0x34f2   :  { %3434 = vrot.lane.b32.xlu0 %v3430_v28, %s5042_s3  ;;  %v3876_v28 = vld [vmem:[%s5946_s12] sm:$0xff] }
0x34f3   :  { %3436 = vrot.lane.b32.xlu1 %v3431_v31, %s5042_s3 }
0x3564   :  { %v3435_v36 = vpop.permute.xlu0 %3434 }
0x3565   :  { %v3437_v20 = vpop.permute.xlu1 %3436  ;;  %v3440_v17 = vadd.f32 %v3435_v36, %v3420_v35 }
0x3566   :  { %v3441_v38 = vadd.f32 %v3437_v20, %v3421_v23 }
0x3567   :  { %4977 = vtanh.f32 %v3440_v17  ;;  %v3556_v57 = vrot.slane %v3440_v17, 7 }
0x3568   :  { %4979 = vtanh.f32 %v3441_v38  ;;  %v3557_v3 = vrot.slane %v3441_v38, 7 }
0x3574   :  { %v4978_v43 = vpop.eup %4977 }
0x3575   :  { %v4980_v40 = vpop.eup %4979  ;;  %3446 = vrot.lane.b32.xlu0 %v4978_v43, %s5043_s25 }
0x3576   :  { %3448 = vrot.lane.b32.xlu1 %v4980_v40, %s5043_s25 }
0x35e7   :  { %v3447_v21 = vpop.permute.xlu0 %3446 }
0x35e8   :  { %v3449_v60 = vpop.permute.xlu1 %3448  ;;  %v3452_v44 = vmul.f32 %v4974_v18, %v3447_v21 }
0x35e9   :  { %v3453_v45 = vmul.f32 %v4976_v52, %v3449_v60  ;;  %v3877_v52 = vld [vmem:[%s5946_s12 + $0x8] sm:$0xff] }
0x35ea   :  { %v3456_v29 = vrot.slane %v3452_v44, 4 }
0x35eb   :  { %v3457_v30 = vrot.slane %v3453_v45, 3 }
0x35ed   :  { %v3458_v13 = vsel %vm294_vm2, %v3457_v30, %v3456_v29 }
0x35ee   :  { %3459 = vrot.lane.b32.xlu0 %v3458_v13, %s5044_s26 }
0x3660   :  { %v3460_v15 = vpop.permute.xlu0 %3459 }
0x3661   :  { %4594 = vmatmul.mubr.msk.f32.vlgmr.msra.gmra.mxu1 %vm63_vm1, %v3460_v15 }
0x3662   :  { %4604 = vmatpush3.msra.mxu1 %v5688_v19  ;;  %4607 = vmatprep.mubr.msk.f32.mxu1 %vm5040_vm0, %v5039_v0 }
0x3663   :  { %4605 = vmatprep.subr.mxu1 %v5039_v0 }
0x3664   :  { %4606 = vmatpush3.msra.mxu1 %v5696_v39 }
0x3665   :  { %4617 = vmatprep.subr.mxu1 %v5039_v0 }
0x3721   :  { %v3529_v62 = vpop.f32.mrf.mxu1 }
0x3722   :  { %v3534_v63 = vrot.slane %v3529_v62, 3  ;;  %v3535_v58 = vrot.slane %v3529_v62, 4 }
0x3723   :  { %v4595_v61 = vpop.f32.mrf.mxu1 }
0x3724   :  { %v3538_v1 = vadd.f32 %v3534_v63, %v5743_v59  ;;  %v3539_v49 = vadd.f32 %v3535_v58, %v5740_v37 }
0x3726   :  { %4981 = vtanh.f32 %v3538_v1  ;;  %v4299_v47 = vmul.f32 -1.442695, %v3538_v1  ;;  %v4300_v39 = vmul.f32 -1.442695, %v3539_v49 }
0x3727   :  { %4983 = vtanh.f32 %v3539_v49 }
0x3728   :  { %4985 = vpow2.f32 %v4299_v47 }
0x3729   :  { %4987 = vpow2.f32 %v4300_v39 }
0x3733   :  { %v4982_v19 = vpop.eup %4981 }
0x3734   :  { %v4984_v7 = vpop.eup %4983  ;;  %3564 = vrot.lane.b32.xlu1 %v4982_v19, %s5041_s24 }
0x3735   :  { %3566 = vrot.lane.b32.xlu0 %v4984_v7, %s5041_s24  ;;  %v4986_v16 = vpop.eup %4985 }
0x3736   :  { %v4988_v53 = vpop.eup %4987  ;;  %v3546_v26 = vadd.f32 1.0, %v4986_v16 }
0x3737   :  { %v3547_v50 = vadd.f32 1.0, %v4988_v53 }
0x3738   :  { %4989 = vrcp.f32 %v3546_v26 }
0x3739   :  { %4991 = vrcp.f32 %v3547_v50 }
0x3745   :  { %v4990_v5 = vpop.eup %4989 }
0x3746   :  { %v4992_v41 = vpop.eup %4991  ;;  %v3560_v14 = vmul.f32 %v4990_v5, %v3556_v57 }
0x3747   :  { %v3561_v6 = vmul.f32 %v4992_v41, %v3557_v3  ;;  %v3874_v3 = vld [vmem:[%s5947_s11] sm:$0xff] }
0x37a6   :  { %v3565_v54 = vpop.permute.xlu1 %3564 }
0x37a7   :  { %v3567_v2 = vpop.permute.xlu0 %3566  ;;  %v3570_v32 = vmul.f32 %v4990_v5, %v3565_v54 }
0x37a8   :  { %v3571_v27 = vmul.f32 %v4992_v41, %v3567_v2 }
0x37a9   :  { %3574 = vrot.lane.b32.xlu1 %v3570_v32, %s5042_s3 }
0x37aa   :  { %3576 = vrot.lane.b32.xlu0 %v3571_v27, %s5042_s3  ;;  %v3875_v27 = vld [vmem:[%s5947_s11 + $0x8] sm:$0xff] }
0x381b   :  { %v3575_v46 = vpop.permute.xlu1 %3574 }
0x381c   :  { %v3577_v4 = vpop.permute.xlu0 %3576  ;;  %v5835_v10 = vadd.f32 %v3575_v46, %v3560_v14 }
0x381d   :  { %v5837_v11 = vadd.f32 %v3577_v4, %v3561_v6 }
0x381e   :  { %4993 = vtanh.f32 %v5835_v10  ;;  %v3696_v58 = vrot.slane %v5835_v10, 7 }
0x381f   :  { %4995 = vtanh.f32 %v5837_v11  ;;  %v3697_v61 = vrot.slane %v5837_v11, 7 }
0x382b   :  { %v4994_v55 = vpop.eup %4993 }
0x382c   :  { %v4996_v56 = vpop.eup %4995  ;;  %3586 = vrot.lane.b32.xlu1 %v4994_v55, %s5043_s25 }
0x382d   :  { %3588 = vrot.lane.b32.xlu0 %v4996_v56, %s5043_s25 }
0x389e   :  { %v3587_v48 = vpop.permute.xlu1 %3586 }
0x389f   :  { %v3589_v8 = vpop.permute.xlu0 %3588  ;;  %v3592_v9 = vmul.f32 %v4990_v5, %v3587_v48 }
0x38a0   :  { %v3593_v51 = vmul.f32 %v4992_v41, %v3589_v8 }
0x38a1   :  { %v3596_v12 = vrot.slane %v3592_v9, 5 }
0x38a2   :  { %v3597_v18 = vrot.slane %v3593_v51, 4 }
0x38a4   :  { %v3598_v22 = vsel %vm294_vm2, %v3597_v18, %v3596_v12 }
0x38a5   :  { %3599 = vrot.lane.b32.xlu1 %v3598_v22, %s5044_s26  ;;  %v4309_v22 = vld [vmem:[%s5948_s13] ss:$0 sm:$0xff] }
0x3917   :  { %v3600_v24 = vpop.permute.xlu1 %3599 }
0x3918   :  { %4601 = vmatmul.mubr.msk.f32.vlgmr.msra.gmra.mxu0 %vm63_vm1, %v3600_v24 }
0x3919   :  { %4611 = vmatpush3.msra.mxu0 %v3877_v52  ;;  %4614 = vmatprep.mubr.msk.f32.mxu0 %vm5040_vm0, %v5039_v0 }
0x391a   :  { %4612 = vmatprep.subr.mxu0 %v5039_v0 }
0x391b   :  { %4613 = vmatpush3.msra.mxu0 %v3876_v28 }
0x391c   :  { %4615 = vmatmul.mubr.msk.f32.vlgmr.msra.gmra.mxu0 %vm63_vm1, %v5733_v25  ;;  %4624 = vmatprep.subr.mxu0 %v5039_v0 }
0x391d   :  { %4628 = vmatprep.mubr.msk.f32.mxu0 %vm5040_vm0, %v5039_v0 }
0x39d8   :  { %v3669_v31 = vpop.f32.mrf.mxu0 }
0x39d9   :  { %v3674_v33 = vrot.slane %v3669_v31, 2  ;;  %v3675_v34 = vrot.slane %v3669_v31, 3 }
0x39da   :  { %v4602_v35 = vpop.f32.mrf.mxu0 }
0x39db   :  { %v3678_v23 = vadd.f32 %v3674_v33, %v5743_v59  ;;  %v3679_v36 = vadd.f32 %v3675_v34, %v5740_v37 }
0x39dc   :  { %v5862_v20 = vpop.f32.mrf.mxu0 }
0x39dd   :  { %4997 = vtanh.f32 %v3678_v23  ;;  %v4302_v43 = vmul.f32 -1.442695, %v3678_v23  ;;  %v4303_v40 = vmul.f32 -1.442695, %v3679_v36 }
0x39de   :  { %4999 = vtanh.f32 %v3679_v36  ;;  %v4616_v17 = vpop.f32.mrf.mxu0 }
0x39df   :  { %5001 = vpow2.f32 %v4302_v43 }
0x39e0   :  { %5003 = vpow2.f32 %v4303_v40 }
0x39ea   :  { %v4998_v38 = vpop.eup %4997 }
0x39eb   :  { %v5000_v25 = vpop.eup %4999  ;;  %3704 = vrot.lane.b32.xlu0 %v4998_v38, %s5041_s24 }
0x39ec   :  { %3706 = vrot.lane.b32.xlu1 %v5000_v25, %s5041_s24  ;;  %v5002_v21 = vpop.eup %5001 }
0x39ed   :  { %v5004_v60 = vpop.eup %5003  ;;  %v3686_v44 = vadd.f32 1.0, %v5002_v21 }
0x39ee   :  { %v3687_v45 = vadd.f32 1.0, %v5004_v60 }
0x39ef   :  { %5005 = vrcp.f32 %v3686_v44 }
0x39f0   :  { %5007 = vrcp.f32 %v3687_v45 }
0x39fc   :  { %v5006_v29 = vpop.eup %5005 }
0x39fd   :  { %v5008_v13 = vpop.eup %5007  ;;  %v3700_v1 = vmul.f32 %v5006_v29, %v3696_v58  ;;  %v4054_v58 = vld [vmem:[%s5950_s14] sm:$0xff] }
0x39fe   :  { %v3701_v49 = vmul.f32 %v5008_v13, %v3697_v61 }
0x3a5d   :  { %v3705_v30 = vpop.permute.xlu0 %3704 }
0x3a5e   :  { %v3707_v15 = vpop.permute.xlu1 %3706  ;;  %v3710_v62 = vmul.f32 %v5006_v29, %v3705_v30 }
0x3a5f   :  { %v3711_v63 = vmul.f32 %v5008_v13, %v3707_v15  ;;  %v4057_v15 = vld [vmem:[%s5949_s15 + $0x8] sm:$0xff] }
0x3a60   :  { %3714 = vrot.lane.b32.xlu0 %v3710_v62, %s5042_s3  ;;  %v4055_v62 = vld [vmem:[%s5950_s14 + $0x8] sm:$0xff]  ;;  %4625 = vmatpush3.msra.mxu0 %v4057_v15 }
0x3a61   :  { %3716 = vrot.lane.b32.xlu1 %v3711_v63, %s5042_s3  ;;  %v4056_v63 = vld [vmem:[%s5949_s15] sm:$0xff]  ;;  %4626 = vmatprep.subr.mxu0 %v5039_v0  ;;  %s5045_s15 = smov 48  }
0x3a62   :  { %4627 = vmatpush3.msra.mxu0 %v4056_v63 }
0x3ad2   :  { %v3715_v19 = vpop.permute.xlu0 %3714 }
0x3ad3   :  { %v3717_v7 = vpop.permute.xlu1 %3716  ;;  %v5870_v47 = vadd.f32 %v3715_v19, %v3700_v1 }
0x3ad4   :  { %v5872_v39 = vadd.f32 %v3717_v7, %v3701_v49 }
0x3ad5   :  { %5009 = vtanh.f32 %v5870_v47  ;;  %v3836_v38 = vrot.slane %v5870_v47, 7 }
0x3ad6   :  { %5011 = vtanh.f32 %v5872_v39  ;;  %v3837_v25 = vrot.slane %v5872_v39, 7 }
0x3ae2   :  { %v5010_v16 = vpop.eup %5009 }
0x3ae3   :  { %v5012_v53 = vpop.eup %5011  ;;  %3726 = vrot.lane.b32.xlu0 %v5010_v16, %s5043_s25 }
0x3ae4   :  { %3728 = vrot.lane.b32.xlu1 %v5012_v53, %s5043_s25 }
0x3b55   :  { %v3727_v26 = vpop.permute.xlu0 %3726 }
0x3b56   :  { %v3729_v50 = vpop.permute.xlu1 %3728  ;;  %v3732_v5 = vmul.f32 %v5006_v29, %v3727_v26 }
0x3b57   :  { %v3733_v54 = vmul.f32 %v5008_v13, %v3729_v50 }
0x3b58   :  { %v3736_v41 = vrot.slane %v3732_v5, 6 }
0x3b59   :  { %v3737_v2 = vrot.slane %v3733_v54, 5 }
0x3b5b   :  { %v3738_v32 = vsel %vm294_vm2, %v3737_v2, %v3736_v41  ;;  %v22_v41 = vstv %s5951_s16 }
0x3b5c   :  { %3739 = vrot.lane.b32.xlu0 %v3738_v32, %s5044_s26  ;;  %23 = vst [vmem:[#allocation4] sm:$0x1] %v22_v41 }
0x3bce   :  { %v3740_v57 = vpop.permute.xlu0 %3739 }
0x3bcf   :  { %4608 = vmatmul.mubr.msk.f32.vlgmr.msra.gmra.mxu1 %vm63_vm1, %v3740_v57 }
0x3bd0   :  { %4618 = vmatpush3.msra.mxu1 %v3875_v27  ;;  %4621 = vmatprep.mubr.msk.f32.mxu1 %vm5040_vm0, %v5039_v0  ;;  %v4313_v27 = vld [vmem:[#allocation4] ss:$0 sm:$0xff] }
0x3bd1   :  { %4619 = vmatprep.subr.mxu1 %v5039_v0 }
0x3bd2   :  { %4620 = vmatpush3.msra.mxu1 %v3874_v3 }
0x3bd3   :  { %4622 = vmatmul.mubr.msk.f32.vlgmr.msra.gmra.mxu1 %vm63_vm1, %v5703_v42  ;;  %4631 = vmatprep.subr.mxu1 %v5039_v0 }
0x3bd4   :  { %4635 = vmatprep.mubr.msk.f32.mxu1 %vm5040_vm0, %v5039_v0  ;;  %4632 = vmatpush3.msra.mxu1 %v4055_v62 }
0x3bd5   :  { %4633 = vmatprep.subr.mxu1 %v5039_v0 }
0x3bd6   :  { %4634 = vmatpush3.msra.mxu1 %v4054_v58 }
0x3c8f   :  { %v3809_v14 = vpop.f32.mrf.mxu1 }
0x3c90   :  { %v3814_v6 = vrot.slane %v3809_v14, 1  ;;  %v3815_v46 = vrot.slane %v3809_v14, 2 }
0x3c91   :  { %v4609_v4 = vpop.f32.mrf.mxu1 }
0x3c92   :  { %v3818_v10 = vadd.f32 %v3814_v6, %v5743_v59  ;;  %v3819_v11 = vadd.f32 %v3815_v46, %v5740_v37 }
0x3c93   :  { %v4024_v55 = vpop.f32.mrf.mxu1 }
0x3c94   :  { %5013 = vtanh.f32 %v3818_v10  ;;  %v4305_v42 = vmul.f32 -1.442695, %v3818_v10  ;;  %v4306_v9 = vmul.f32 -1.442695, %v3819_v11  ;;  %v4025_v37 = vadd.f32 %v4024_v55, %v5862_v20 }
0x3c95   :  { %5015 = vtanh.f32 %v3819_v11  ;;  %v4623_v56 = vpop.f32.mrf.mxu1 }
0x3c96   :  { %5017 = vpow2.f32 %v4305_v42  ;;  %v4035_v52 = vadd.f32 %v4309_v22, %v4025_v37 }
0x3c97   :  { %5019 = vpow2.f32 %v4306_v9 }
0x3c98   :  { %v4310_v36 = vmul.f32 -1.442695, %v4035_v52 }
0x3ca1   :  { %v5014_v48 = vpop.eup %5013 }
0x3ca2   :  { %v5016_v8 = vpop.eup %5015  ;;  %3844 = vrot.lane.b32.xlu1 %v5014_v48, %s5041_s24 }
0x3ca3   :  { %3846 = vrot.lane.b32.xlu0 %v5016_v8, %s5041_s24  ;;  %v5018_v51 = vpop.eup %5017 }
0x3ca4   :  { %v5020_v12 = vpop.eup %5019  ;;  %v3826_v18 = vadd.f32 1.0, %v5018_v51 }
0x3ca5   :  { %v3827_v59 = vadd.f32 1.0, %v5020_v12 }
0x3ca6   :  { %5021 = vrcp.f32 %v3826_v18 }
0x3ca7   :  { %5023 = vrcp.f32 %v3827_v59 }
0x3ca8   :  { %5025 = vtanh.f32 %v4035_v52 }
0x3ca9   :  { %5027 = vpow2.f32 %v4310_v36 }
0x3cb3   :  { %v5022_v24 = vpop.eup %5021 }
0x3cb4   :  { %v5024_v31 = vpop.eup %5023  ;;  %v3840_v43 = vmul.f32 %v5022_v24, %v3836_v38 }
0x3cb5   :  { %v5026_v23 = vpop.eup %5025  ;;  %v3841_v40 = vmul.f32 %v5024_v31, %v3837_v25 }
0x3cb6   :  { %v5028_v20 = vpop.eup %5027 }
0x3cb7   :  { %v4039_v17 = vadd.f32 1.0, %v5028_v20 }
0x3cb9   :  { %5029 = vrcp.f32 %v4039_v17 }
0x3cc6   :  { %v5030_v29 = vpop.eup %5029 }
0x3d14   :  { %v3845_v28 = vpop.permute.xlu1 %3844 }
0x3d15   :  { %v3847_v33 = vpop.permute.xlu0 %3846  ;;  %v3850_v34 = vmul.f32 %v5022_v24, %v3845_v28 }
0x3d16   :  { %v3851_v35 = vmul.f32 %v5024_v31, %v3847_v33 }
0x3d17   :  { %3854 = vrot.lane.b32.xlu1 %v3850_v34, %s5042_s3 }
0x3d18   :  { %3856 = vrot.lane.b32.xlu0 %v3851_v35, %s5042_s3 }
0x3d1b   :  { %4044 = vrot.lane.b32.xlu1 %v5026_v23, %s5041_s24 }
0x3d89   :  { %v3855_v21 = vpop.permute.xlu1 %3854 }
0x3d8a   :  { %v3857_v60 = vpop.permute.xlu0 %3856  ;;  %v3860_v44 = vadd.f32 %v3855_v21, %v3840_v43 }
0x3d8b   :  { %v3861_v45 = vadd.f32 %v3857_v60, %v3841_v40 }
0x3d8c   :  { %5031 = vtanh.f32 %v3860_v44 }
0x3d8d   :  { %5033 = vtanh.f32 %v3861_v45  ;;  %v4045_v30 = vpop.permute.xlu1 %4044 }
0x3d8e   :  { %v4047_v13 = vmul.f32 %v5030_v29, %v4045_v30 }
0x3d90   :  { %5035 = vtanh.f32 %v4047_v13 }
0x3d99   :  { %v5032_v61 = vpop.eup %5031 }
0x3d9a   :  { %v5034_v1 = vpop.eup %5033  ;;  %3866 = vrot.lane.b32.xlu0 %v5032_v61, %s5043_s25 }
0x3d9b   :  { %3868 = vrot.lane.b32.xlu1 %v5034_v1, %s5043_s25 }
0x3d9d   :  { %v5036_v49 = vpop.eup %5035 }
0x3d9e   :  { %4050 = vrot.lane.b32.xlu0 %v5036_v49, %s5045_s15 }
0x3e0c   :  { %v3867_v19 = vpop.permute.xlu0 %3866 }
0x3e0d   :  { %v3872_v7 = vmul.f32 %v5022_v24, %v3867_v19  ;;  %v3869_v47 = vpop.permute.xlu1 %3868 }
0x3e0e   :  { %v3873_v39 = vmul.f32 %v5024_v31, %v3869_v47 }
0x3e0f   :  { %v4135_v16 = vrot.slane %v3872_v7, 7 }
0x3e10   :  { %v4136_v53 = vrot.slane %v3873_v39, 6  ;;  %v4051_v26 = vpop.permute.xlu0 %4050 }
0x3e11   :  { %v4053_v50 = vmul.f32 %v5030_v29, %v4051_v26 }
0x3e12   :  { %v4137_v0 = vsel %vm294_vm2, %v4136_v53, %v4135_v16 }
0x3e13   :  { %4138 = vrot.lane.b32.xlu0 %v4137_v0, %s5044_s26  ;;  %4059 = vrot.lane.b32.xlu1 %v4053_v50, %s5044_s26 }
0x3e85   :  { %v4139_v5 = vpop.permute.xlu0 %4138  ;;  %v4060_v54 = vpop.permute.xlu1 %4059 }
0x3e86   :  { %4636 = vmatmul.mubr.msk.f32.vlgmr.msra.gmra.mxu1 %vm63_vm1, %v4139_v5  ;;  %4629 = vmatmul.mubr.msk.f32.vlgmr.msra.gmra.mxu0 %vm63_vm1, %v4060_v54 }
0x3f46   :  { %v4208_v2 = vpop.f32.mrf.mxu1  ;;  %v4129_v32 = vpop.f32.mrf.mxu0 }
0x3f47   :  { %v4209_v57 = vadd.f32 %v4208_v2, %v4129_v32 }
0x3f48   :  { %v4637_v3 = vpop.f32.mrf.mxu1  ;;  %v4630_v14 = vpop.f32.mrf.mxu0 }
0x3f49   :  { %v4219_v6 = vadd.f32 %v4313_v27, %v4209_v57 }
0x3f4b   :  { %5037 = vtanh.f32 %v4219_v6 }
0x3f58   :  { %v5038_v46 = vpop.eup %5037 }
0x3f59   :  { %4222 = vst.msk [vmem:[%s5952_s17] sm:$0x3] %vm4221_vm11, %v5038_v46 }

</bundles_post_ra>
